<compile_context>
chip_gen: v5e
topology: v5e:2x2
jax: 0.10.0
libtpu: 0.0.40
codegen_flags: <defaults>
</compile_context>

<pallas_src>
import functools

import jax
import jax.numpy as jnp
import numpy as np
from jax import lax
from jax.experimental import pallas as pl
from jax.experimental.pallas import tpu as pltpu

NEG_SLOPE = 0.01   # nn.LeakyReLU default negative slope ('lrelu')
LANE = 128
SUBLANE = 8


def _round_up(x, m):
    return ((x + m - 1) // m) * m


def _lrelu(x):
    # max(x, slope*x) == LeakyReLU for 0 < slope < 1 (single VALU op, no select).
    return jnp.maximum(x, NEG_SLOPE * x)


# ----------------------------------------------------------------------------
# Pallas kernel: one grid step == TB RNN timesteps (both arms + union context).
# ----------------------------------------------------------------------------
def _mtrnn_seq_kernel(xw_ref, u0_ref, h0_ref, wh_ref, decay_ref,
                      h_out_ref, u_fin_ref, u_scr, h_scr,
                      *, tb, t_total, mxu_dtype):
    g = pl.program_id(0)

    @pl.when(g == 0)
    def _init():
        u_scr[...] = u0_ref[...]
        h_scr[...] = h0_ref[...]

    # Hoisted out of the unrolled recurrence (JAX does not CSE broadcasts);
    # decay is already materialized at (b_pad, n_pad) on the host side.
    decay = decay_ref[...]

    def step(i, carry):
        t = g * tb + i
        u = u_scr[...]
        h = h_scr[...]
        # Serialized part only: h @ Wh (bf16 operands, f32 accumulate).  The
        # x @ Wx projection (gain already folded into the columns) was done
        # outside the kernel and streamed in as xw.
        y = xw_ref[i] + jnp.dot(h.astype(mxu_dtype), wh_ref[...],
                                preferred_element_type=jnp.float32)
        new_u = decay * u + y
        new_h = _lrelu(new_u)
        # Freeze the state on zero-padded tail steps (t >= t_total) so the
        # resident final-u output corresponds exactly to step t_total-1.
        valid = t < t_total
        u_scr[...] = jnp.where(valid, new_u, u)
        h_scr[...] = jnp.where(valid, new_h, h)
        h_out_ref[i] = new_h        # rows t >= t_total are sliced off outside
        return carry

    lax.fori_loop(0, tb, step, 0, unroll=True)
    u_fin_ref[...] = u_scr[...]     # resident output block (written back once)


# ----------------------------------------------------------------------------
# Wrapper module: parameter construction, weight fusion, state packing.
# ----------------------------------------------------------------------------
class MTRNNCellPallas:
    """JAX/Pallas port of MTRNNCell (use_bias=False, use_pb=False, 'lrelu')."""

    def __init__(self, input_dim_enc, input_dim_pose, input_dim_force,
                 input_dim_prox, fast_dim, slow_dim, union_dim,
                 fast_tau, slow_tau, union_tau, key,
                 time_block=32, mxu_dtype=jnp.bfloat16):
        self.fast_dim = fast_dim
        self.slow_dim = slow_dim
        self.union_dim = union_dim
        self.fast_tau = float(fast_tau)
        self.slow_tau = float(slow_tau)
        self.union_tau = float(union_tau)
        self.time_block = int(time_block)
        self.mxu_dtype = mxu_dtype

        F, S, U = fast_dim, slow_dim, union_dim
        dp, de, df, dq = input_dim_pose, input_dim_enc, input_dim_force, input_dim_prox
        self._mod_dims = [('pose', dp), ('enc', de), ('force', df), ('prox', dq)]

        # Packed layout along the fused output axis (== the h/u state axis):
        #   [ left fast (4F: pose,enc,force,prox) | left slow (S) |
        #     right fast (4F)                     | right slow (S) | union (U) | pad ]
        self.LF0 = 0
        self.LS0 = 4 * F
        self.RF0 = 4 * F + S
        self.RS0 = 8 * F + S
        self.UU0 = 8 * F + 2 * S
        self.n_feat = 8 * F + 2 * S + U
        self.n_pad = _round_up(self.n_feat, LANE)

        self.dx_feat = 2 * (dp + de + df + dq)     # [left inputs | right inputs]
        self.dx_pad = _round_up(self.dx_feat, LANE)

        # Raw per-modality weights, stored as (in, out) = PyTorch weight.T
        def _init(k, shape, scale=0.1):
            return scale * jax.random.normal(k, shape, dtype=jnp.float32)

        def make_side(k):
            ks = jax.random.split(k, 19)
            w = {}
            w['pose_i2f'] = _init(ks[0], (dp, F))
            w['enc_i2f'] = _init(ks[1], (de, F))
            w['force_i2f'] = _init(ks[2], (df, F))
            w['prox_i2f'] = _init(ks[3], (dq, F))
            w['pose_f2f'] = _init(ks[4], (F, F))
            w['pose_f2s'] = _init(ks[5], (F, S))
            w['enc_f2f'] = _init(ks[6], (F, F))
            w['enc_f2s'] = _init(ks[7], (F, S))
            w['force_f2f'] = _init(ks[8], (F, F))
            w['force_f2s'] = _init(ks[9], (F, S))
            w['prox_f2f'] = _init(ks[10], (F, F))
            w['prox_f2s'] = _init(ks[11], (F, S))
            w['s2s'] = _init(ks[12], (S, S))
            w['pose_s2f'] = _init(ks[13], (S, F))
            w['enc_s2f'] = _init(ks[14], (S, F))
            w['force_s2f'] = _init(ks[15], (S, F))
            w['prox_s2f'] = _init(ks[16], (S, F))
            w['s2u'] = _init(ks[17], (S, U))
            w['u2s'] = _init(ks[18], (U, S))
            return w

        kl, kr, ku = jax.random.split(key, 3)
        self.left = make_side(kl)
        self.right = make_side(kr)
        self.u2u = _init(ku, (U, U))

        # Per-column decay / gain, then fold gain into the fused weight columns.
        decay_vec, gain_vec = self._build_coefs()
        wx_np, wh_np = self._build_fused_weights()
        self.wx_scaled = jnp.asarray(wx_np * gain_vec[None, :])                    # f32
        self.wh_scaled = jnp.asarray(wh_np * gain_vec[None, :]).astype(mxu_dtype)  # bf16
        self.decay = jnp.asarray(decay_vec)                                        # (n_pad,)

    # ------------------------------------------------------------------
    def _build_fused_weights(self):
        F, S, U = self.fast_dim, self.slow_dim, self.union_dim
        wx = np.zeros((self.dx_pad, self.n_pad), np.float32)
        wh = np.zeros((self.n_pad, self.n_pad), np.float32)

        # input -> fast (block-diagonal per modality, per arm)
        row = 0
        for side_w, f0 in ((self.left, self.LF0), (self.right, self.RF0)):
            col = f0
            for name, d in self._mod_dims:
                wx[row:row + d, col:col + F] = np.asarray(side_w[name + '_i2f'])
                row += d
                col += F

        # recurrent connections
        for side_w, f0, s0 in ((self.left, self.LF0, self.LS0),
                               (self.right, self.RF0, self.RS0)):
            for m, (name, _) in enumerate(self._mod_dims):
                r = f0 + m * F
                wh[r:r + F, r:r + F] = np.asarray(side_w[name + '_f2f'])
                wh[r:r + F, s0:s0 + S] = np.asarray(side_w[name + '_f2s'])
                wh[s0:s0 + S, r:r + F] = np.asarray(side_w[name + '_s2f'])
            wh[s0:s0 + S, s0:s0 + S] = np.asarray(side_w['s2s'])
            wh[s0:s0 + S, self.UU0:self.UU0 + U] = np.asarray(side_w['s2u'])
            wh[self.UU0:self.UU0 + U, s0:s0 + S] = np.asarray(side_w['u2s'])
        wh[self.UU0:self.UU0 + U, self.UU0:self.UU0 + U] = np.asarray(self.u2u)
        return wx, wh

    def _build_coefs(self):
        F, S, U = self.fast_dim, self.slow_dim, self.union_dim
        decay = np.zeros((self.n_pad,), np.float32)
        gain = np.zeros((self.n_pad,), np.float32)
        for f0, s0 in ((self.LF0, self.LS0), (self.RF0, self.RS0)):
            decay[f0:f0 + 4 * F] = 1.0 - 1.0 / self.fast_tau
            gain[f0:f0 + 4 * F] = 1.0 / self.fast_tau
            decay[s0:s0 + S] = 1.0 - 1.0 / self.slow_tau
            gain[s0:s0 + S] = 1.0 / self.slow_tau
        # NOTE: the PyTorch reference scales the union input with 1/slow_tau
        # (not 1/union_tau); reproduced exactly here (and then folded into the
        # union weight columns).  Padded columns keep decay=gain=0, so padded
        # state provably stays zero across steps.
        decay[self.UU0:self.UU0 + U] = 1.0 - 1.0 / self.union_tau
        gain[self.UU0:self.UU0 + U] = 1.0 / self.slow_tau
        return decay, gain

    # ------------------------------------------------------------------
    def _zero_state(self, batch):
        F, S, U = self.fast_dim, self.slow_dim, self.union_dim
        z = lambda d: jnp.zeros((batch, d), jnp.float32)
        side = [z(F), z(F), z(F), z(F), z(S), z(F), z(F), z(F), z(F), z(S)]
        return [list(side), list(side), [z(U), z(U)]]

    def _pack_state(self, state, b_pad):
        def side(s):
            hf = jnp.concatenate(s[0:4], axis=1)
            uf = jnp.concatenate(s[5:9], axis=1)
            return hf, s[4], uf, s[9]
        l_hf, l_hs, l_uf, l_us = side(state[0])
        r_hf, r_hs, r_uf, r_us = side(state[1])
        hu, uu = state[2]
        h = jnp.concatenate([l_hf, l_hs, r_hf, r_hs, hu], axis=1)
        u = jnp.concatenate([l_uf, l_us, r_uf, r_us, uu], axis=1)
        pad = lambda a: jnp.pad(a, ((0, b_pad - a.shape[0]),
                                    (0, self.n_pad - a.shape[1])))
        return pad(u), pad(h)

    def _unpack_state(self, u_pad, h_pad, batch):
        F, S, U = self.fast_dim, self.slow_dim, self.union_dim

        def split4(x, f0):
            return [x[:batch, f0 + i * F: f0 + (i + 1) * F] for i in range(4)]

        def seg(x, o, d):
            return x[:batch, o:o + d]

        left = (split4(h_pad, self.LF0) + [seg(h_pad, self.LS0, S)]
                + split4(u_pad, self.LF0) + [seg(u_pad, self.LS0, S)])
        right = (split4(h_pad, self.RF0) + [seg(h_pad, self.RS0, S)]
                 + split4(u_pad, self.RF0) + [seg(u_pad, self.RS0, S)])
        union = [seg(h_pad, self.UU0, U), seg(u_pad, self.UU0, U)]
        return [left, right, union]

    def unpack_h(self, h_t):
        """Split an (B, n_feat) packed h row into the 11 per-modality h arrays."""
        F, S, U = self.fast_dim, self.slow_dim, self.union_dim
        out = []
        for f0, s0 in ((self.LF0, self.LS0), (self.RF0, self.RS0)):
            out += [h_t[:, f0 + i * F: f0 + (i + 1) * F] for i in range(4)]
            out.append(h_t[:, s0:s0 + S])
        out.append(h_t[:, self.UU0:self.UU0 + U])
        return out

    def _pack_inputs_seq(self, xl_pose, xl_enc, xl_force, xl_prox,
                         xr_pose, xr_enc, xr_force, xr_prox, b_pad, t_pad):
        x = jnp.concatenate([xl_pose, xl_enc, xl_force, xl_prox,
                             xr_pose, xr_enc, xr_force, xr_prox], axis=-1)
        T, B, D = x.shape
        return jnp.pad(x, ((0, t_pad - T), (0, b_pad - B), (0, self.dx_pad - D)))

    # ------------------------------------------------------------------
    def _run_kernel(self, xw, u0, h0, decay_full, tb, t_total):
        t_pad, b_pad, n_pad = xw.shape
        kernel = functools.partial(_mtrnn_seq_kernel, tb=tb, t_total=t_total,
                                   mxu_dtype=self.mxu_dtype)
        grid_spec = pltpu.PrefetchScalarGridSpec(
            num_scalar_prefetch=0,
            grid=(t_pad // tb,),
            in_specs=[
                pl.BlockSpec((tb, b_pad, n_pad), lambda g: (g, 0, 0)),   # xw slab
                pl.BlockSpec((b_pad, n_pad), lambda g: (0, 0)),          # u0 (resident)
                pl.BlockSpec((b_pad, n_pad), lambda g: (0, 0)),          # h0 (resident)
                pl.BlockSpec((n_pad, n_pad), lambda g: (0, 0)),          # Wh bf16 (resident)
                pl.BlockSpec((b_pad, n_pad), lambda g: (0, 0)),          # decay (resident)
            ],
            out_specs=(
                pl.BlockSpec((tb, b_pad, n_pad), lambda g: (g, 0, 0)),   # h slabs per block
                pl.BlockSpec((b_pad, n_pad), lambda g: (0, 0)),          # final u (resident)
            ),
            scratch_shapes=[pltpu.VMEM((b_pad, n_pad), jnp.float32),     # u state
                            pltpu.VMEM((b_pad, n_pad), jnp.float32)],    # h state
        )
        out_shape = (jax.ShapeDtypeStruct((t_pad, b_pad, n_pad), jnp.float32),
                     jax.ShapeDtypeStruct((b_pad, n_pad), jnp.float32))
        h_seq, u_fin = pl.pallas_call(
            kernel,
            grid_spec=grid_spec,
            out_shape=out_shape,
            compiler_params=pltpu.CompilerParams(
                dimension_semantics=("arbitrary",)),   # sequential recurrence
        )(xw, u0, h0, self.wh_scaled, decay_full)
        return h_seq, u_fin

    # ------------------------------------------------------------------
    def forward_sequence(self, xl_pose, xl_enc, xl_force, xl_prox,
                         xr_pose, xr_enc, xr_force, xr_prox,
                         state=None, pb=None):
        """Inputs are (T, B, d_*). Runs the whole rollout inside one kernel.

        Returns:
            h_seq: (T, B, n_feat) packed activations (use `unpack_h` per step).
            final_state: full PyTorch-format state after step T-1.
        """
        assert pb is None  # TODO(synk): use_pb=True would add `pb` to the slow-context input.
        T, B = xl_pose.shape[0], xl_pose.shape[1]
        b_pad = _round_up(max(B, SUBLANE), SUBLANE)
        tb = min(self.time_block, T)
        t_pad = _round_up(T, tb)
        if state is None or any(s is None for s in state):
            state = self._zero_state(B)
        u0, h0 = self._pack_state(state, b_pad)
        x_seq = self._pack_inputs_seq(xl_pose, xl_enc, xl_force, xl_prox,
                                      xr_pose, xr_enc, xr_force, xr_prox,
                                      b_pad, t_pad)
        # Hoisted, non-recurrent input projection (gain folded into wx columns):
        # one large, well-filled matmul over all T*B rows, outside the kernel.
        xw = jnp.einsum('tbd,dn->tbn', x_seq, self.wx_scaled,
                        precision=jax.lax.Precision.HIGHEST)
        decay_full = jnp.broadcast_to(self.decay[None, :], (b_pad, self.n_pad))
        # TODO(synk): on v7x with large batch, add a "parallel" batch-tile grid
        # axis so both TensorCores are used; with B<=8 (one sublane tile) it is moot.
        h_seq_pad, u_fin = self._run_kernel(xw, u0, h0, decay_full, tb, T)
        h_seq = h_seq_pad[:T, :B, :self.n_feat]
        final_state = self._unpack_state(u_fin, h_seq_pad[T - 1], B)
        return h_seq, final_state

    def __call__(self, xl_pose, xl_enc, xl_force, xl_prox,
                 xr_pose, xr_enc, xr_force, xr_prox, state=None, pb=None):
        """Single-step API (PyTorch-compatible state format); T=1 rollout."""
        # TODO(synk): for production per-step decoding, keep u/h VMEM-resident
        # across calls (input_output_aliases / cross-call futures) instead of a
        # full T=1 pallas_call per step.
        add_t = lambda a: a[None]
        _, new_state = self.forward_sequence(
            add_t(xl_pose), add_t(xl_enc), add_t(xl_force), add_t(xl_prox),
            add_t(xr_pose), add_t(xr_enc), add_t(xr_force), add_t(xr_prox),
            state=state, pb=pb)
        return new_state[0], new_state[1], new_state


# ----------------------------------------------------------------------------
# Pure-JAX reference (unpacked per-modality linears) for validation.
# ----------------------------------------------------------------------------
def _ref_forward(cell, xs_l, xs_r, state):
    ft, st, ut = cell.fast_tau, cell.slow_tau, cell.union_tau

    def side(w, xs, s, hu):
        (ph, eh, fh, xh, hs, pu, eu, fu, xu, us) = s
        xp, xe, xf, xx = xs

        def upd(u_prev, x, wi, h_prev, wff, wsf):
            return ((1.0 - 1.0 / ft) * u_prev
                    + (1.0 / ft) * (x @ wi + h_prev @ wff + hs @ wsf))

        n_pu = upd(pu, xp, w['pose_i2f'], ph, w['pose_f2f'], w['pose_s2f'])
        n_eu = upd(eu, xe, w['enc_i2f'], eh, w['enc_f2f'], w['enc_s2f'])
        n_fu = upd(fu, xf, w['force_i2f'], fh, w['force_f2f'], w['force_s2f'])
        n_xu = upd(xu, xx, w['prox_i2f'], xh, w['prox_f2f'], w['prox_s2f'])
        slow_in = (ph @ w['pose_f2s'] + eh @ w['enc_f2s'] + fh @ w['force_f2s']
                   + xh @ w['prox_f2s'] + hs @ w['s2s'] + hu @ w['u2s'])
        n_us = (1.0 - 1.0 / st) * us + (1.0 / st) * slow_in
        return n_pu, n_eu, n_fu, n_xu, n_us, hs @ w['s2u']

    hu, uu = state[2]
    l = side(cell.left, xs_l, state[0], hu)
    r = side(cell.right, xs_r, state[1], hu)
    n_uu = ((1.0 - 1.0 / ut) * uu
            + (1.0 / st) * (l[5] + r[5] + hu @ cell.u2u))
    left_hid = [_lrelu(v) for v in l[:5]] + list(l[:5])
    right_hid = [_lrelu(v) for v in r[:5]] + list(r[:5])
    return left_hid, right_hid, [left_hid, right_hid, [_lrelu(n_uu), n_uu]]


# ----------------------------------------------------------------------------
if __name__ == "__main__":
    B, T = 2, 12
    D_POSE, D_ENC, D_FORCE, D_PROX = 7, 8, 6, 4
    FAST, SLOW, UNION = 32, 16, 16
    FAST_TAU, SLOW_TAU, UNION_TAU = 2.0, 12.0, 25.0
    TOL = dict(atol=2e-2, rtol=2e-2)   # loosened for bf16 MXU operands

    root = jax.random.PRNGKey(0)
    k_param, k_in = jax.random.split(root)
    # time_block=8 with T=12 exercises multi-block rollout + tail masking.
    cell = MTRNNCellPallas(D_ENC, D_POSE, D_FORCE, D_PROX,
                           FAST, SLOW, UNION,
                           FAST_TAU, SLOW_TAU, UNION_TAU, key=k_param,
                           time_block=8, mxu_dtype=jnp.bfloat16)

    ks = jax.random.split(k_in, 8)
    mk = lambda k, d: jax.random.normal(k, (T, B, d), jnp.float32)
    xl_pose, xl_enc = mk(ks[0], D_POSE), mk(ks[1], D_ENC)
    xl_force, xl_prox = mk(ks[2], D_FORCE), mk(ks[3], D_PROX)
    xr_pose, xr_enc = mk(ks[4], D_POSE), mk(ks[5], D_ENC)
    xr_force, xr_prox = mk(ks[6], D_FORCE), mk(ks[7], D_PROX)

    # Whole T-step rollout inside one time-blocked Pallas kernel.
    h_seq, final_state = cell.forward_sequence(
        xl_pose, xl_enc, xl_force, xl_prox,
        xr_pose, xr_enc, xr_force, xr_prox, state=None)
    jax.block_until_ready((h_seq, jax.tree_util.tree_leaves(final_state)))

    # Single-step API (T=1 rollout) still works with the PyTorch state format.
    lh1, rh1, st1 = cell(xl_pose[0], xl_enc[0], xl_force[0], xl_prox[0],
                         xr_pose[0], xr_enc[0], xr_force[0], xr_prox[0],
                         state=None)
    jax.block_until_ready(jax.tree_util.tree_leaves(st1))

    # Validate every timestep's activations against the pure-JAX reference,
    # plus the full final state (h and u).
    ref_state = cell._zero_state(B)
    for t in range(T):
        xs_l = (xl_pose[t], xl_enc[t], xl_force[t], xl_prox[t])
        xs_r = (xr_pose[t], xr_enc[t], xr_force[t], xr_prox[t])
        _, _, ref_state = _ref_forward(cell, xs_l, xs_r, ref_state)
        ref_h = (list(ref_state[0][:5]) + list(ref_state[1][:5])
                 + [ref_state[2][0]])
        pal_h = cell.unpack_h(h_seq[t])
        for a, b in zip(pal_h, ref_h):
            assert jnp.allclose(a, b, **TOL), (t, a, b)
    for a, b in zip(jax.tree_util.tree_leaves(final_state),
                    jax.tree_util.tree_leaves(ref_state)):
        assert jnp.allclose(a, b, **TOL)

    # Also check the single-step path against step 0 of the reference.
    ref0 = _ref_forward(cell,
                        (xl_pose[0], xl_enc[0], xl_force[0], xl_prox[0]),
                        (xr_pose[0], xr_enc[0], xr_force[0], xr_prox[0]),
                        cell._zero_state(B))[2]
    for a, b in zip(jax.tree_util.tree_leaves(st1),
                    jax.tree_util.tree_leaves(ref0)):
        assert jnp.allclose(a, b, **TOL)

    print("KERNEL_OK")
</pallas_src>

<mosaic_0001>
module attributes {stable_mosaic.version = 11 : i64} {
  func.func @_mtrnn_seq_kernel(%arg0: i32, %arg1: memref<8x8x384xf32, #tpu.memory_space<vmem>>, %arg2: memref<8x384xf32, #tpu.memory_space<vmem>>, %arg3: memref<8x384xf32, #tpu.memory_space<vmem>>, %arg4: memref<384x384xbf16, #tpu.memory_space<vmem>>, %arg5: memref<8x384xf32, #tpu.memory_space<vmem>>, %arg6: memref<8x8x384xf32, #tpu.memory_space<vmem>>, %arg7: memref<8x384xf32, #tpu.memory_space<vmem>>, %arg8: memref<8x384xf32, #tpu.memory_space<vmem>>, %arg9: memref<8x384xf32, #tpu.memory_space<vmem>>) attributes {dimension_semantics = [#tpu.dimension_semantics<arbitrary>], iteration_bounds = array<i64: 2>, scalar_prefetch = 0 : i64, scratch_operands = 2 : i64, tpu.core_type = #tpu.core_type<tc>, window_params = [{transform_indices = @transform_0, window_bounds = array<i64: 8, 8, 384>}, {pipeline_mode = #tpu.pipeline_mode<synchronous>, transform_indices = @transform_1, window_bounds = array<i64: 8, 384>}, {pipeline_mode = #tpu.pipeline_mode<synchronous>, transform_indices = @transform_2, window_bounds = array<i64: 8, 384>}, {pipeline_mode = #tpu.pipeline_mode<synchronous>, transform_indices = @transform_3, window_bounds = array<i64: 384, 384>}, {pipeline_mode = #tpu.pipeline_mode<synchronous>, transform_indices = @transform_4, window_bounds = array<i64: 8, 384>}, {transform_indices = @transform_5, window_bounds = array<i64: 8, 8, 384>}, {pipeline_mode = #tpu.pipeline_mode<synchronous>, transform_indices = @transform_6, window_bounds = array<i64: 8, 384>}]} {
    %c0_i32 = arith.constant 0 : i32
    %0 = arith.cmpi eq, %arg0, %c0_i32 : i32
    %1 = arith.extui %0 : i1 to i32
    %c0_i32_0 = arith.constant 0 : i32
    %2 = arith.cmpi ne, %1, %c0_i32_0 : i32
    scf.if %2 {
      %c0_149 = arith.constant 0 : index
      %c0_150 = arith.constant 0 : index
      %206 = vector.load %arg2[%c0_149, %c0_150] : memref<8x384xf32, #tpu.memory_space<vmem>>, vector<8x384xf32>
      %c0_151 = arith.constant 0 : index
      %c0_152 = arith.constant 0 : index
      %207 = vector.load %arg8[%c0_151, %c0_152] : memref<8x384xf32, #tpu.memory_space<vmem>>, vector<8x384xf32>
      tpu.vector_store %arg8[%c0_151, %c0_152], %206 {strides = array<i32>} : memref<8x384xf32, #tpu.memory_space<vmem>>, vector<8x384xf32>,
      %c0_153 = arith.constant 0 : index
      %c0_154 = arith.constant 0 : index
      %208 = vector.load %arg3[%c0_153, %c0_154] : memref<8x384xf32, #tpu.memory_space<vmem>>, vector<8x384xf32>
      %c0_155 = arith.constant 0 : index
      %c0_156 = arith.constant 0 : index
      %209 = vector.load %arg9[%c0_155, %c0_156] : memref<8x384xf32, #tpu.memory_space<vmem>>, vector<8x384xf32>
      tpu.vector_store %arg9[%c0_155, %c0_156], %208 {strides = array<i32>} : memref<8x384xf32, #tpu.memory_space<vmem>>, vector<8x384xf32>,
    } else {
    }
    %c0 = arith.constant 0 : index
    %c0_1 = arith.constant 0 : index
    %3 = vector.load %arg5[%c0, %c0_1] : memref<8x384xf32, #tpu.memory_space<vmem>>, vector<8x384xf32>
    %c0_i32_2 = arith.constant 0 : i32
    %c8_i32 = arith.constant 8 : i32
    %4 = arith.muli %arg0, %c8_i32 : i32
    %5 = arith.addi %4, %c0_i32_2 : i32
    %c0_3 = arith.constant 0 : index
    %c0_4 = arith.constant 0 : index
    %6 = vector.load %arg8[%c0_3, %c0_4] : memref<8x384xf32, #tpu.memory_space<vmem>>, vector<8x384xf32>
    %c0_5 = arith.constant 0 : index
    %c0_6 = arith.constant 0 : index
    %7 = vector.load %arg9[%c0_5, %c0_6] : memref<8x384xf32, #tpu.memory_space<vmem>>, vector<8x384xf32>
    %8 = arith.index_cast %c0_i32_2 : i32 to index
    %c0_7 = arith.constant 0 : index
    %c0_8 = arith.constant 0 : index
    %9 = vector.load %arg1[%8, %c0_7, %c0_8] : memref<8x8x384xf32, #tpu.memory_space<vmem>>, vector<1x8x384xf32>
    %10 = vector.shape_cast %9 : vector<1x8x384xf32> to vector<8x384xf32>
    %11 = arith.truncf %7 : vector<8x384xf32> to vector<8x384xbf16>
    %c0_9 = arith.constant 0 : index
    %c0_10 = arith.constant 0 : index
    %12 = vector.load %arg4[%c0_9, %c0_10] : memref<384x384xbf16, #tpu.memory_space<vmem>>, vector<384x384xbf16>
    %cst = arith.constant dense<0.000000e+00> : vector<8x384xf32>
    %13 = tpu.matmul %11, %12, %cst {dimension_numbers = #tpu.dot_dimension_numbers<[1], [0], [0], [1], [0, 0, 1, 1], [], []>} : vector<8x384xbf16>, vector<384x384xbf16>, vector<8x384xf32> -> vector<8x384xf32>
    %14 = arith.addf %10, %13 : vector<8x384xf32>
    %15 = arith.mulf %3, %6 : vector<8x384xf32>
    %16 = arith.addf %15, %14 : vector<8x384xf32>
    %cst_11 = arith.constant 0.00999999977 : f32
    %17 = vector.broadcast %cst_11 : f32 to vector<8x384xf32>
    %18 = arith.mulf %17, %16 : vector<8x384xf32>
    %19 = arith.maximumf %16, %18 : vector<8x384xf32>
    %c12_i32 = arith.constant 12 : i32
    %20 = arith.cmpi slt, %5, %c12_i32 : i32
    %21 = arith.select %20, %16, %6 : vector<8x384xf32>
    %c0_12 = arith.constant 0 : index
    %c0_13 = arith.constant 0 : index
    %22 = vector.load %arg8[%c0_12, %c0_13] : memref<8x384xf32, #tpu.memory_space<vmem>>, vector<8x384xf32>
    tpu.vector_store %arg8[%c0_12, %c0_13], %21 {strides = array<i32>} : memref<8x384xf32, #tpu.memory_space<vmem>>, vector<8x384xf32>,
    %23 = arith.select %20, %19, %7 : vector<8x384xf32>
    %c0_14 = arith.constant 0 : index
    %c0_15 = arith.constant 0 : index
    %24 = vector.load %arg9[%c0_14, %c0_15] : memref<8x384xf32, #tpu.memory_space<vmem>>, vector<8x384xf32>
    tpu.vector_store %arg9[%c0_14, %c0_15], %23 {strides = array<i32>} : memref<8x384xf32, #tpu.memory_space<vmem>>, vector<8x384xf32>,
    %25 = arith.index_cast %c0_i32_2 : i32 to index
    %c0_16 = arith.constant 0 : index
    %c0_17 = arith.constant 0 : index
    %26 = vector.load %arg6[%25, %c0_16, %c0_17] : memref<8x8x384xf32, #tpu.memory_space<vmem>>, vector<1x8x384xf32>
    %27 = vector.shape_cast %26 : vector<1x8x384xf32> to vector<8x384xf32>
    %28 = vector.shape_cast %19 : vector<8x384xf32> to vector<1x8x384xf32>
    tpu.vector_store %arg6[%25, %c0_16, %c0_17], %28 {strides = array<i32>} : memref<8x8x384xf32, #tpu.memory_space<vmem>>, vector<1x8x384xf32>,
    %c1_i32 = arith.constant 1 : i32
    %c8_i32_18 = arith.constant 8 : i32
    %29 = arith.muli %arg0, %c8_i32_18 : i32
    %30 = arith.addi %29, %c1_i32 : i32
    %c0_19 = arith.constant 0 : index
    %c0_20 = arith.constant 0 : index
    %31 = vector.load %arg8[%c0_19, %c0_20] : memref<8x384xf32, #tpu.memory_space<vmem>>, vector<8x384xf32>
    %c0_21 = arith.constant 0 : index
    %c0_22 = arith.constant 0 : index
    %32 = vector.load %arg9[%c0_21, %c0_22] : memref<8x384xf32, #tpu.memory_space<vmem>>, vector<8x384xf32>
    %33 = arith.index_cast %c1_i32 : i32 to index
    %c0_23 = arith.constant 0 : index
    %c0_24 = arith.constant 0 : index
    %34 = vector.load %arg1[%33, %c0_23, %c0_24] : memref<8x8x384xf32, #tpu.memory_space<vmem>>, vector<1x8x384xf32>
    %35 = vector.shape_cast %34 : vector<1x8x384xf32> to vector<8x384xf32>
    %36 = arith.truncf %32 : vector<8x384xf32> to vector<8x384xbf16>
    %c0_25 = arith.constant 0 : index
    %c0_26 = arith.constant 0 : index
    %37 = vector.load %arg4[%c0_25, %c0_26] : memref<384x384xbf16, #tpu.memory_space<vmem>>, vector<384x384xbf16>
    %cst_27 = arith.constant dense<0.000000e+00> : vector<8x384xf32>
    %38 = tpu.matmul %36, %37, %cst_27 {dimension_numbers = #tpu.dot_dimension_numbers<[1], [0], [0], [1], [0, 0, 1, 1], [], []>} : vector<8x384xbf16>, vector<384x384xbf16>, vector<8x384xf32> -> vector<8x384xf32>
    %39 = arith.addf %35, %38 : vector<8x384xf32>
    %40 = arith.mulf %3, %31 : vector<8x384xf32>
    %41 = arith.addf %40, %39 : vector<8x384xf32>
    %cst_28 = arith.constant 0.00999999977 : f32
    %42 = vector.broadcast %cst_28 : f32 to vector<8x384xf32>
    %43 = arith.mulf %42, %41 : vector<8x384xf32>
    %44 = arith.maximumf %41, %43 : vector<8x384xf32>
    %c12_i32_29 = arith.constant 12 : i32
    %45 = arith.cmpi slt, %30, %c12_i32_29 : i32
    %46 = arith.select %45, %41, %31 : vector<8x384xf32>
    %c0_30 = arith.constant 0 : index
    %c0_31 = arith.constant 0 : index
    %47 = vector.load %arg8[%c0_30, %c0_31] : memref<8x384xf32, #tpu.memory_space<vmem>>, vector<8x384xf32>
    tpu.vector_store %arg8[%c0_30, %c0_31], %46 {strides = array<i32>} : memref<8x384xf32, #tpu.memory_space<vmem>>, vector<8x384xf32>,
    %48 = arith.select %45, %44, %32 : vector<8x384xf32>
    %c0_32 = arith.constant 0 : index
    %c0_33 = arith.constant 0 : index
    %49 = vector.load %arg9[%c0_32, %c0_33] : memref<8x384xf32, #tpu.memory_space<vmem>>, vector<8x384xf32>
    tpu.vector_store %arg9[%c0_32, %c0_33], %48 {strides = array<i32>} : memref<8x384xf32, #tpu.memory_space<vmem>>, vector<8x384xf32>,
    %50 = arith.index_cast %c1_i32 : i32 to index
    %c0_34 = arith.constant 0 : index
    %c0_35 = arith.constant 0 : index
    %51 = vector.load %arg6[%50, %c0_34, %c0_35] : memref<8x8x384xf32, #tpu.memory_space<vmem>>, vector<1x8x384xf32>
    %52 = vector.shape_cast %51 : vector<1x8x384xf32> to vector<8x384xf32>
    %53 = vector.shape_cast %44 : vector<8x384xf32> to vector<1x8x384xf32>
    tpu.vector_store %arg6[%50, %c0_34, %c0_35], %53 {strides = array<i32>} : memref<8x8x384xf32, #tpu.memory_space<vmem>>, vector<1x8x384xf32>,
    %c2_i32 = arith.constant 2 : i32
    %c8_i32_36 = arith.constant 8 : i32
    %54 = arith.muli %arg0, %c8_i32_36 : i32
    %55 = arith.addi %54, %c2_i32 : i32
    %c0_37 = arith.constant 0 : index
    %c0_38 = arith.constant 0 : index
    %56 = vector.load %arg8[%c0_37, %c0_38] : memref<8x384xf32, #tpu.memory_space<vmem>>, vector<8x384xf32>
    %c0_39 = arith.constant 0 : index
    %c0_40 = arith.constant 0 : index
    %57 = vector.load %arg9[%c0_39, %c0_40] : memref<8x384xf32, #tpu.memory_space<vmem>>, vector<8x384xf32>
    %58 = arith.index_cast %c2_i32 : i32 to index
    %c0_41 = arith.constant 0 : index
    %c0_42 = arith.constant 0 : index
    %59 = vector.load %arg1[%58, %c0_41, %c0_42] : memref<8x8x384xf32, #tpu.memory_space<vmem>>, vector<1x8x384xf32>
    %60 = vector.shape_cast %59 : vector<1x8x384xf32> to vector<8x384xf32>
    %61 = arith.truncf %57 : vector<8x384xf32> to vector<8x384xbf16>
    %c0_43 = arith.constant 0 : index
    %c0_44 = arith.constant 0 : index
    %62 = vector.load %arg4[%c0_43, %c0_44] : memref<384x384xbf16, #tpu.memory_space<vmem>>, vector<384x384xbf16>
    %cst_45 = arith.constant dense<0.000000e+00> : vector<8x384xf32>
    %63 = tpu.matmul %61, %62, %cst_45 {dimension_numbers = #tpu.dot_dimension_numbers<[1], [0], [0], [1], [0, 0, 1, 1], [], []>} : vector<8x384xbf16>, vector<384x384xbf16>, vector<8x384xf32> -> vector<8x384xf32>
    %64 = arith.addf %60, %63 : vector<8x384xf32>
    %65 = arith.mulf %3, %56 : vector<8x384xf32>
    %66 = arith.addf %65, %64 : vector<8x384xf32>
    %cst_46 = arith.constant 0.00999999977 : f32
    %67 = vector.broadcast %cst_46 : f32 to vector<8x384xf32>
    %68 = arith.mulf %67, %66 : vector<8x384xf32>
    %69 = arith.maximumf %66, %68 : vector<8x384xf32>
    %c12_i32_47 = arith.constant 12 : i32
    %70 = arith.cmpi slt, %55, %c12_i32_47 : i32
    %71 = arith.select %70, %66, %56 : vector<8x384xf32>
    %c0_48 = arith.constant 0 : index
    %c0_49 = arith.constant 0 : index
    %72 = vector.load %arg8[%c0_48, %c0_49] : memref<8x384xf32, #tpu.memory_space<vmem>>, vector<8x384xf32>
    tpu.vector_store %arg8[%c0_48, %c0_49], %71 {strides = array<i32>} : memref<8x384xf32, #tpu.memory_space<vmem>>, vector<8x384xf32>,
    %73 = arith.select %70, %69, %57 : vector<8x384xf32>
    %c0_50 = arith.constant 0 : index
    %c0_51 = arith.constant 0 : index
    %74 = vector.load %arg9[%c0_50, %c0_51] : memref<8x384xf32, #tpu.memory_space<vmem>>, vector<8x384xf32>
    tpu.vector_store %arg9[%c0_50, %c0_51], %73 {strides = array<i32>} : memref<8x384xf32, #tpu.memory_space<vmem>>, vector<8x384xf32>,
    %75 = arith.index_cast %c2_i32 : i32 to index
    %c0_52 = arith.constant 0 : index
    %c0_53 = arith.constant 0 : index
    %76 = vector.load %arg6[%75, %c0_52, %c0_53] : memref<8x8x384xf32, #tpu.memory_space<vmem>>, vector<1x8x384xf32>
    %77 = vector.shape_cast %76 : vector<1x8x384xf32> to vector<8x384xf32>
    %78 = vector.shape_cast %69 : vector<8x384xf32> to vector<1x8x384xf32>
    tpu.vector_store %arg6[%75, %c0_52, %c0_53], %78 {strides = array<i32>} : memref<8x8x384xf32, #tpu.memory_space<vmem>>, vector<1x8x384xf32>,
    %c3_i32 = arith.constant 3 : i32
    %c8_i32_54 = arith.constant 8 : i32
    %79 = arith.muli %arg0, %c8_i32_54 : i32
    %80 = arith.addi %79, %c3_i32 : i32
    %c0_55 = arith.constant 0 : index
    %c0_56 = arith.constant 0 : index
    %81 = vector.load %arg8[%c0_55, %c0_56] : memref<8x384xf32, #tpu.memory_space<vmem>>, vector<8x384xf32>
    %c0_57 = arith.constant 0 : index
    %c0_58 = arith.constant 0 : index
    %82 = vector.load %arg9[%c0_57, %c0_58] : memref<8x384xf32, #tpu.memory_space<vmem>>, vector<8x384xf32>
    %83 = arith.index_cast %c3_i32 : i32 to index
    %c0_59 = arith.constant 0 : index
    %c0_60 = arith.constant 0 : index
    %84 = vector.load %arg1[%83, %c0_59, %c0_60] : memref<8x8x384xf32, #tpu.memory_space<vmem>>, vector<1x8x384xf32>
    %85 = vector.shape_cast %84 : vector<1x8x384xf32> to vector<8x384xf32>
    %86 = arith.truncf %82 : vector<8x384xf32> to vector<8x384xbf16>
    %c0_61 = arith.constant 0 : index
    %c0_62 = arith.constant 0 : index
    %87 = vector.load %arg4[%c0_61, %c0_62] : memref<384x384xbf16, #tpu.memory_space<vmem>>, vector<384x384xbf16>
    %cst_63 = arith.constant dense<0.000000e+00> : vector<8x384xf32>
    %88 = tpu.matmul %86, %87, %cst_63 {dimension_numbers = #tpu.dot_dimension_numbers<[1], [0], [0], [1], [0, 0, 1, 1], [], []>} : vector<8x384xbf16>, vector<384x384xbf16>, vector<8x384xf32> -> vector<8x384xf32>
    %89 = arith.addf %85, %88 : vector<8x384xf32>
    %90 = arith.mulf %3, %81 : vector<8x384xf32>
    %91 = arith.addf %90, %89 : vector<8x384xf32>
    %cst_64 = arith.constant 0.00999999977 : f32
    %92 = vector.broadcast %cst_64 : f32 to vector<8x384xf32>
    %93 = arith.mulf %92, %91 : vector<8x384xf32>
    %94 = arith.maximumf %91, %93 : vector<8x384xf32>
    %c12_i32_65 = arith.constant 12 : i32
    %95 = arith.cmpi slt, %80, %c12_i32_65 : i32
    %96 = arith.select %95, %91, %81 : vector<8x384xf32>
    %c0_66 = arith.constant 0 : index
    %c0_67 = arith.constant 0 : index
    %97 = vector.load %arg8[%c0_66, %c0_67] : memref<8x384xf32, #tpu.memory_space<vmem>>, vector<8x384xf32>
    tpu.vector_store %arg8[%c0_66, %c0_67], %96 {strides = array<i32>} : memref<8x384xf32, #tpu.memory_space<vmem>>, vector<8x384xf32>,
    %98 = arith.select %95, %94, %82 : vector<8x384xf32>
    %c0_68 = arith.constant 0 : index
    %c0_69 = arith.constant 0 : index
    %99 = vector.load %arg9[%c0_68, %c0_69] : memref<8x384xf32, #tpu.memory_space<vmem>>, vector<8x384xf32>
    tpu.vector_store %arg9[%c0_68, %c0_69], %98 {strides = array<i32>} : memref<8x384xf32, #tpu.memory_space<vmem>>, vector<8x384xf32>,
    %100 = arith.index_cast %c3_i32 : i32 to index
    %c0_70 = arith.constant 0 : index
    %c0_71 = arith.constant 0 : index
    %101 = vector.load %arg6[%100, %c0_70, %c0_71] : memref<8x8x384xf32, #tpu.memory_space<vmem>>, vector<1x8x384xf32>
    %102 = vector.shape_cast %101 : vector<1x8x384xf32> to vector<8x384xf32>
    %103 = vector.shape_cast %94 : vector<8x384xf32> to vector<1x8x384xf32>
    tpu.vector_store %arg6[%100, %c0_70, %c0_71], %103 {strides = array<i32>} : memref<8x8x384xf32, #tpu.memory_space<vmem>>, vector<1x8x384xf32>,
    %c4_i32 = arith.constant 4 : i32
    %c8_i32_72 = arith.constant 8 : i32
    %104 = arith.muli %arg0, %c8_i32_72 : i32
    %105 = arith.addi %104, %c4_i32 : i32
    %c0_73 = arith.constant 0 : index
    %c0_74 = arith.constant 0 : index
    %106 = vector.load %arg8[%c0_73, %c0_74] : memref<8x384xf32, #tpu.memory_space<vmem>>, vector<8x384xf32>
    %c0_75 = arith.constant 0 : index
    %c0_76 = arith.constant 0 : index
    %107 = vector.load %arg9[%c0_75, %c0_76] : memref<8x384xf32, #tpu.memory_space<vmem>>, vector<8x384xf32>
    %108 = arith.index_cast %c4_i32 : i32 to index
    %c0_77 = arith.constant 0 : index
    %c0_78 = arith.constant 0 : index
    %109 = vector.load %arg1[%108, %c0_77, %c0_78] : memref<8x8x384xf32, #tpu.memory_space<vmem>>, vector<1x8x384xf32>
    %110 = vector.shape_cast %109 : vector<1x8x384xf32> to vector<8x384xf32>
    %111 = arith.truncf %107 : vector<8x384xf32> to vector<8x384xbf16>
    %c0_79 = arith.constant 0 : index
    %c0_80 = arith.constant 0 : index
    %112 = vector.load %arg4[%c0_79, %c0_80] : memref<384x384xbf16, #tpu.memory_space<vmem>>, vector<384x384xbf16>
    %cst_81 = arith.constant dense<0.000000e+00> : vector<8x384xf32>
    %113 = tpu.matmul %111, %112, %cst_81 {dimension_numbers = #tpu.dot_dimension_numbers<[1], [0], [0], [1], [0, 0, 1, 1], [], []>} : vector<8x384xbf16>, vector<384x384xbf16>, vector<8x384xf32> -> vector<8x384xf32>
    %114 = arith.addf %110, %113 : vector<8x384xf32>
    %115 = arith.mulf %3, %106 : vector<8x384xf32>
    %116 = arith.addf %115, %114 : vector<8x384xf32>
    %cst_82 = arith.constant 0.00999999977 : f32
    %117 = vector.broadcast %cst_82 : f32 to vector<8x384xf32>
    %118 = arith.mulf %117, %116 : vector<8x384xf32>
    %119 = arith.maximumf %116, %118 : vector<8x384xf32>
    %c12_i32_83 = arith.constant 12 : i32
    %120 = arith.cmpi slt, %105, %c12_i32_83 : i32
    %121 = arith.select %120, %116, %106 : vector<8x384xf32>
    %c0_84 = arith.constant 0 : index
    %c0_85 = arith.constant 0 : index
    %122 = vector.load %arg8[%c0_84, %c0_85] : memref<8x384xf32, #tpu.memory_space<vmem>>, vector<8x384xf32>
    tpu.vector_store %arg8[%c0_84, %c0_85], %121 {strides = array<i32>} : memref<8x384xf32, #tpu.memory_space<vmem>>, vector<8x384xf32>,
    %123 = arith.select %120, %119, %107 : vector<8x384xf32>
    %c0_86 = arith.constant 0 : index
    %c0_87 = arith.constant 0 : index
    %124 = vector.load %arg9[%c0_86, %c0_87] : memref<8x384xf32, #tpu.memory_space<vmem>>, vector<8x384xf32>
    tpu.vector_store %arg9[%c0_86, %c0_87], %123 {strides = array<i32>} : memref<8x384xf32, #tpu.memory_space<vmem>>, vector<8x384xf32>,
    %125 = arith.index_cast %c4_i32 : i32 to index
    %c0_88 = arith.constant 0 : index
    %c0_89 = arith.constant 0 : index
    %126 = vector.load %arg6[%125, %c0_88, %c0_89] : memref<8x8x384xf32, #tpu.memory_space<vmem>>, vector<1x8x384xf32>
    %127 = vector.shape_cast %126 : vector<1x8x384xf32> to vector<8x384xf32>
    %128 = vector.shape_cast %119 : vector<8x384xf32> to vector<1x8x384xf32>
    tpu.vector_store %arg6[%125, %c0_88, %c0_89], %128 {strides = array<i32>} : memref<8x8x384xf32, #tpu.memory_space<vmem>>, vector<1x8x384xf32>,
    %c5_i32 = arith.constant 5 : i32
    %c8_i32_90 = arith.constant 8 : i32
    %129 = arith.muli %arg0, %c8_i32_90 : i32
    %130 = arith.addi %129, %c5_i32 : i32
    %c0_91 = arith.constant 0 : index
    %c0_92 = arith.constant 0 : index
    %131 = vector.load %arg8[%c0_91, %c0_92] : memref<8x384xf32, #tpu.memory_space<vmem>>, vector<8x384xf32>
    %c0_93 = arith.constant 0 : index
    %c0_94 = arith.constant 0 : index
    %132 = vector.load %arg9[%c0_93, %c0_94] : memref<8x384xf32, #tpu.memory_space<vmem>>, vector<8x384xf32>
    %133 = arith.index_cast %c5_i32 : i32 to index
    %c0_95 = arith.constant 0 : index
    %c0_96 = arith.constant 0 : index
    %134 = vector.load %arg1[%133, %c0_95, %c0_96] : memref<8x8x384xf32, #tpu.memory_space<vmem>>, vector<1x8x384xf32>
    %135 = vector.shape_cast %134 : vector<1x8x384xf32> to vector<8x384xf32>
    %136 = arith.truncf %132 : vector<8x384xf32> to vector<8x384xbf16>
    %c0_97 = arith.constant 0 : index
    %c0_98 = arith.constant 0 : index
    %137 = vector.load %arg4[%c0_97, %c0_98] : memref<384x384xbf16, #tpu.memory_space<vmem>>, vector<384x384xbf16>
    %cst_99 = arith.constant dense<0.000000e+00> : vector<8x384xf32>
    %138 = tpu.matmul %136, %137, %cst_99 {dimension_numbers = #tpu.dot_dimension_numbers<[1], [0], [0], [1], [0, 0, 1, 1], [], []>} : vector<8x384xbf16>, vector<384x384xbf16>, vector<8x384xf32> -> vector<8x384xf32>
    %139 = arith.addf %135, %138 : vector<8x384xf32>
    %140 = arith.mulf %3, %131 : vector<8x384xf32>
    %141 = arith.addf %140, %139 : vector<8x384xf32>
    %cst_100 = arith.constant 0.00999999977 : f32
    %142 = vector.broadcast %cst_100 : f32 to vector<8x384xf32>
    %143 = arith.mulf %142, %141 : vector<8x384xf32>
    %144 = arith.maximumf %141, %143 : vector<8x384xf32>
    %c12_i32_101 = arith.constant 12 : i32
    %145 = arith.cmpi slt, %130, %c12_i32_101 : i32
    %146 = arith.select %145, %141, %131 : vector<8x384xf32>
    %c0_102 = arith.constant 0 : index
    %c0_103 = arith.constant 0 : index
    %147 = vector.load %arg8[%c0_102, %c0_103] : memref<8x384xf32, #tpu.memory_space<vmem>>, vector<8x384xf32>
    tpu.vector_store %arg8[%c0_102, %c0_103], %146 {strides = array<i32>} : memref<8x384xf32, #tpu.memory_space<vmem>>, vector<8x384xf32>,
    %148 = arith.select %145, %144, %132 : vector<8x384xf32>
    %c0_104 = arith.constant 0 : index
    %c0_105 = arith.constant 0 : index
    %149 = vector.load %arg9[%c0_104, %c0_105] : memref<8x384xf32, #tpu.memory_space<vmem>>, vector<8x384xf32>
    tpu.vector_store %arg9[%c0_104, %c0_105], %148 {strides = array<i32>} : memref<8x384xf32, #tpu.memory_space<vmem>>, vector<8x384xf32>,
    %150 = arith.index_cast %c5_i32 : i32 to index
    %c0_106 = arith.constant 0 : index
    %c0_107 = arith.constant 0 : index
    %151 = vector.load %arg6[%150, %c0_106, %c0_107] : memref<8x8x384xf32, #tpu.memory_space<vmem>>, vector<1x8x384xf32>
    %152 = vector.shape_cast %151 : vector<1x8x384xf32> to vector<8x384xf32>
    %153 = vector.shape_cast %144 : vector<8x384xf32> to vector<1x8x384xf32>
    tpu.vector_store %arg6[%150, %c0_106, %c0_107], %153 {strides = array<i32>} : memref<8x8x384xf32, #tpu.memory_space<vmem>>, vector<1x8x384xf32>,
    %c6_i32 = arith.constant 6 : i32
    %c8_i32_108 = arith.constant 8 : i32
    %154 = arith.muli %arg0, %c8_i32_108 : i32
    %155 = arith.addi %154, %c6_i32 : i32
    %c0_109 = arith.constant 0 : index
    %c0_110 = arith.constant 0 : index
    %156 = vector.load %arg8[%c0_109, %c0_110] : memref<8x384xf32, #tpu.memory_space<vmem>>, vector<8x384xf32>
    %c0_111 = arith.constant 0 : index
    %c0_112 = arith.constant 0 : index
    %157 = vector.load %arg9[%c0_111, %c0_112] : memref<8x384xf32, #tpu.memory_space<vmem>>, vector<8x384xf32>
    %158 = arith.index_cast %c6_i32 : i32 to index
    %c0_113 = arith.constant 0 : index
    %c0_114 = arith.constant 0 : index
    %159 = vector.load %arg1[%158, %c0_113, %c0_114] : memref<8x8x384xf32, #tpu.memory_space<vmem>>, vector<1x8x384xf32>
    %160 = vector.shape_cast %159 : vector<1x8x384xf32> to vector<8x384xf32>
    %161 = arith.truncf %157 : vector<8x384xf32> to vector<8x384xbf16>
    %c0_115 = arith.constant 0 : index
    %c0_116 = arith.constant 0 : index
    %162 = vector.load %arg4[%c0_115, %c0_116] : memref<384x384xbf16, #tpu.memory_space<vmem>>, vector<384x384xbf16>
    %cst_117 = arith.constant dense<0.000000e+00> : vector<8x384xf32>
    %163 = tpu.matmul %161, %162, %cst_117 {dimension_numbers = #tpu.dot_dimension_numbers<[1], [0], [0], [1], [0, 0, 1, 1], [], []>} : vector<8x384xbf16>, vector<384x384xbf16>, vector<8x384xf32> -> vector<8x384xf32>
    %164 = arith.addf %160, %163 : vector<8x384xf32>
    %165 = arith.mulf %3, %156 : vector<8x384xf32>
    %166 = arith.addf %165, %164 : vector<8x384xf32>
    %cst_118 = arith.constant 0.00999999977 : f32
    %167 = vector.broadcast %cst_118 : f32 to vector<8x384xf32>
    %168 = arith.mulf %167, %166 : vector<8x384xf32>
    %169 = arith.maximumf %166, %168 : vector<8x384xf32>
    %c12_i32_119 = arith.constant 12 : i32
    %170 = arith.cmpi slt, %155, %c12_i32_119 : i32
    %171 = arith.select %170, %166, %156 : vector<8x384xf32>
    %c0_120 = arith.constant 0 : index
    %c0_121 = arith.constant 0 : index
    %172 = vector.load %arg8[%c0_120, %c0_121] : memref<8x384xf32, #tpu.memory_space<vmem>>, vector<8x384xf32>
    tpu.vector_store %arg8[%c0_120, %c0_121], %171 {strides = array<i32>} : memref<8x384xf32, #tpu.memory_space<vmem>>, vector<8x384xf32>,
    %173 = arith.select %170, %169, %157 : vector<8x384xf32>
    %c0_122 = arith.constant 0 : index
    %c0_123 = arith.constant 0 : index
    %174 = vector.load %arg9[%c0_122, %c0_123] : memref<8x384xf32, #tpu.memory_space<vmem>>, vector<8x384xf32>
    tpu.vector_store %arg9[%c0_122, %c0_123], %173 {strides = array<i32>} : memref<8x384xf32, #tpu.memory_space<vmem>>, vector<8x384xf32>,
    %175 = arith.index_cast %c6_i32 : i32 to index
    %c0_124 = arith.constant 0 : index
    %c0_125 = arith.constant 0 : index
    %176 = vector.load %arg6[%175, %c0_124, %c0_125] : memref<8x8x384xf32, #tpu.memory_space<vmem>>, vector<1x8x384xf32>
    %177 = vector.shape_cast %176 : vector<1x8x384xf32> to vector<8x384xf32>
    %178 = vector.shape_cast %169 : vector<8x384xf32> to vector<1x8x384xf32>
    tpu.vector_store %arg6[%175, %c0_124, %c0_125], %178 {strides = array<i32>} : memref<8x8x384xf32, #tpu.memory_space<vmem>>, vector<1x8x384xf32>,
    %c7_i32 = arith.constant 7 : i32
    %c8_i32_126 = arith.constant 8 : i32
    %179 = arith.muli %arg0, %c8_i32_126 : i32
    %180 = arith.addi %179, %c7_i32 : i32
    %c0_127 = arith.constant 0 : index
    %c0_128 = arith.constant 0 : index
    %181 = vector.load %arg8[%c0_127, %c0_128] : memref<8x384xf32, #tpu.memory_space<vmem>>, vector<8x384xf32>
    %c0_129 = arith.constant 0 : index
    %c0_130 = arith.constant 0 : index
    %182 = vector.load %arg9[%c0_129, %c0_130] : memref<8x384xf32, #tpu.memory_space<vmem>>, vector<8x384xf32>
    %183 = arith.index_cast %c7_i32 : i32 to index
    %c0_131 = arith.constant 0 : index
    %c0_132 = arith.constant 0 : index
    %184 = vector.load %arg1[%183, %c0_131, %c0_132] : memref<8x8x384xf32, #tpu.memory_space<vmem>>, vector<1x8x384xf32>
    %185 = vector.shape_cast %184 : vector<1x8x384xf32> to vector<8x384xf32>
    %186 = arith.truncf %182 : vector<8x384xf32> to vector<8x384xbf16>
    %c0_133 = arith.constant 0 : index
    %c0_134 = arith.constant 0 : index
    %187 = vector.load %arg4[%c0_133, %c0_134] : memref<384x384xbf16, #tpu.memory_space<vmem>>, vector<384x384xbf16>
    %cst_135 = arith.constant dense<0.000000e+00> : vector<8x384xf32>
    %188 = tpu.matmul %186, %187, %cst_135 {dimension_numbers = #tpu.dot_dimension_numbers<[1], [0], [0], [1], [0, 0, 1, 1], [], []>} : vector<8x384xbf16>, vector<384x384xbf16>, vector<8x384xf32> -> vector<8x384xf32>
    %189 = arith.addf %185, %188 : vector<8x384xf32>
    %190 = arith.mulf %3, %181 : vector<8x384xf32>
    %191 = arith.addf %190, %189 : vector<8x384xf32>
    %cst_136 = arith.constant 0.00999999977 : f32
    %192 = vector.broadcast %cst_136 : f32 to vector<8x384xf32>
    %193 = arith.mulf %192, %191 : vector<8x384xf32>
    %194 = arith.maximumf %191, %193 : vector<8x384xf32>
    %c12_i32_137 = arith.constant 12 : i32
    %195 = arith.cmpi slt, %180, %c12_i32_137 : i32
    %196 = arith.select %195, %191, %181 : vector<8x384xf32>
    %c0_138 = arith.constant 0 : index
    %c0_139 = arith.constant 0 : index
    %197 = vector.load %arg8[%c0_138, %c0_139] : memref<8x384xf32, #tpu.memory_space<vmem>>, vector<8x384xf32>
    tpu.vector_store %arg8[%c0_138, %c0_139], %196 {strides = array<i32>} : memref<8x384xf32, #tpu.memory_space<vmem>>, vector<8x384xf32>,
    %198 = arith.select %195, %194, %182 : vector<8x384xf32>
    %c0_140 = arith.constant 0 : index
    %c0_141 = arith.constant 0 : index
    %199 = vector.load %arg9[%c0_140, %c0_141] : memref<8x384xf32, #tpu.memory_space<vmem>>, vector<8x384xf32>
    tpu.vector_store %arg9[%c0_140, %c0_141], %198 {strides = array<i32>} : memref<8x384xf32, #tpu.memory_space<vmem>>, vector<8x384xf32>,
    %200 = arith.index_cast %c7_i32 : i32 to index
    %c0_142 = arith.constant 0 : index
    %c0_143 = arith.constant 0 : index
    %201 = vector.load %arg6[%200, %c0_142, %c0_143] : memref<8x8x384xf32, #tpu.memory_space<vmem>>, vector<1x8x384xf32>
    %202 = vector.shape_cast %201 : vector<1x8x384xf32> to vector<8x384xf32>
    %203 = vector.shape_cast %194 : vector<8x384xf32> to vector<1x8x384xf32>
    tpu.vector_store %arg6[%200, %c0_142, %c0_143], %203 {strides = array<i32>} : memref<8x8x384xf32, #tpu.memory_space<vmem>>, vector<1x8x384xf32>,
    %c8_i32_144 = arith.constant 8 : i32
    %c0_145 = arith.constant 0 : index
    %c0_146 = arith.constant 0 : index
    %204 = vector.load %arg8[%c0_145, %c0_146] : memref<8x384xf32, #tpu.memory_space<vmem>>, vector<8x384xf32>
    %c0_147 = arith.constant 0 : index
    %c0_148 = arith.constant 0 : index
    %205 = vector.load %arg7[%c0_147, %c0_148] : memref<8x384xf32, #tpu.memory_space<vmem>>, vector<8x384xf32>
    tpu.vector_store %arg7[%c0_147, %c0_148], %204 {strides = array<i32>} : memref<8x384xf32, #tpu.memory_space<vmem>>, vector<8x384xf32>,
    return
  }
  func.func @transform_0(%arg0: i32) -> (i32, i32, i32) {
    %c0_i32 = arith.constant 0 : i32
    %c0_i32_0 = arith.constant 0 : i32
    %c0_i32_1 = arith.constant 0 : i32
    return %arg0, %c0_i32, %c0_i32_0 : i32, i32, i32
  }
  func.func @transform_1(%arg0: i32) -> (i32, i32) {
    %c0_i32 = arith.constant 0 : i32
    %c0_i32_0 = arith.constant 0 : i32
    %c0_i32_1 = arith.constant 0 : i32
    return %c0_i32, %c0_i32_0 : i32, i32
  }
  func.func @transform_2(%arg0: i32) -> (i32, i32) {
    %c0_i32 = arith.constant 0 : i32
    %c0_i32_0 = arith.constant 0 : i32
    %c0_i32_1 = arith.constant 0 : i32
    return %c0_i32, %c0_i32_0 : i32, i32
  }
  func.func @transform_3(%arg0: i32) -> (i32, i32) {
    %c0_i32 = arith.constant 0 : i32
    %c0_i32_0 = arith.constant 0 : i32
    %c0_i32_1 = arith.constant 0 : i32
    return %c0_i32, %c0_i32_0 : i32, i32
  }
  func.func @transform_4(%arg0: i32) -> (i32, i32) {
    %c0_i32 = arith.constant 0 : i32
    %c0_i32_0 = arith.constant 0 : i32
    %c0_i32_1 = arith.constant 0 : i32
    return %c0_i32, %c0_i32_0 : i32, i32
  }
  func.func @transform_5(%arg0: i32) -> (i32, i32, i32) {
    %c0_i32 = arith.constant 0 : i32
    %c0_i32_0 = arith.constant 0 : i32
    %c0_i32_1 = arith.constant 0 : i32
    return %arg0, %c0_i32, %c0_i32_0 : i32, i32, i32
  }
  func.func @transform_6(%arg0: i32) -> (i32, i32) {
    %c0_i32 = arith.constant 0 : i32
    %c0_i32_0 = arith.constant 0 : i32
    %c0_i32_1 = arith.constant 0 : i32
    return %c0_i32, %c0_i32_0 : i32, i32
  }
}

</mosaic_0001>

<bundles_post_ra>
// kernel: tpu_custom_call.1
= control target key start
LH: loop header
LB: loop body
LE: loop exit
PB: predicated region body
PF: predicated region fallthrough
CT: control target
= control target key end

     0   :  { %s9798_s0 = inlined_call_operand.hbm [shape: f32[16,8,384], index: 0, kind: input, shape index: {}]   ;;  %s9799_s1 = inlined_call_operand.hbm [shape: f32[8,384], index: 1, kind: input, shape index: {}]   ;;  %s9800_s2 = inlined_call_operand.hbm [shape: f32[8,384], index: 2, kind: input, shape index: {}]   ;;  %s9801_s3 = inlined_call_operand.hbm [shape: bf16[384,384], index: 3, kind: input, shape index: {}]   ;;  %s9802_s4 = inlined_call_operand.hbm [shape: f32[8,384], index: 4, kind: input, shape index: {}]   ;;  %s9803_s5 = inlined_call_operand.hbm [shape: f32[16,8,384], index: 5, kind: output, shape index: {0}]   ;;  %s9804_s6 = inlined_call_operand.hbm [shape: f32[8,384], index: 6, kind: output, shape index: {1}]  }
   0x1   :  { %9806 = sst [smem:[#allocation21_spill]] %s9799_s1 }
   0x2   :  { %9807 = sst [smem:[#allocation22_spill]] %s9800_s2 }
   0x3   :  { %12 = vsyncpa [#allocation5], 0 }
   0x4   :  { %14 = vsyncpa [#allocation5 + $0x1], 0 }
   0x5   :  { %15 = vsyncpa [#allocation8], 0 }
   0x6   :  { %16 = vsyncpa [#allocation11], 0 }
   0x7   :  { %17 = vsyncpa [#allocation6], 0 }
   0x8   :  { %19 = vsyncpa [#allocation6 + $0x1], 0 }
   0x9   :  { %20 = vsyncpa [#allocation15], 0  ;;  %s9041_s21 = smov 0   ;;  %s9043_s22 = smov 0  }
   0xa   :  { %s9045_s23 = smov 0   ;;  %s9047_s24 = smov 0  }
   0xb LB: > { %s9062_s25 = sadd.s32 4294967295, %s8993_s24   ;;  %s5677_s26 = sadd.s32 4294967294, %s8993_s24   ;;  %s8993_s24 = sphi %s9047_s24, %s9832_s24   ;;  %s8989_s23 = sphi %s9045_s23, %s9831_s23   ;;  %s8985_s22 = sphi %s9043_s22, %s9830_s22   ;;  %s8981_s21 = sphi %s9041_s21, %s9829_s21  }
   0xc   : > { %p46_p0 = scmp.ne.s32.totalorder %s8985_s22, %s8981_s21  ;;  %p47_p1 = scmp.eq.s32.totalorder %s9062_s25, 0 }
   0xd   : > { %p9805_p2 = scmp.eq.s32.totalorder %s9062_s25, 1  ;;  %p160_p3 = scmp.eq.s32.totalorder %s5677_s26, 1 }
   0xe   : > { %p9071_p4 = por %p47_p1, %p46_p0  ;;  %p5678_p5 = scmp.ge.s32.totalorder %s8993_s24, 1 }
   0xf   : > { %p9076_p6 = por %p160_p3, %p46_p0  ;;  %p188_p7 = scmp.lt.s32.totalorder %s8993_s24, 3 }
  0x10   : > { %s9810_s1 = sld [smem:[#allocation21_spill]]  ;;  %s8995_s9 = smov [#allocation7]  }
  0x11   : > { %p9085_p9 = pnand %p5678_p5, %p188_p7  ;;  %s202_s10 = sshll.u32 %s8995_s9, 4  ;;  %s203_s10 = int_to_ptr.vmem [resolvable:$true] %s202_s10 }
  0x12   : > { %s223_s13 = sshll.u32 %s9801_s3, 4  ;;  %s8996_s15 = smov [#allocation10]   ;;  %s224_s13 = int_to_ptr.hbm [resolvable:$true] %s223_s13 }
  0x13   : > { %p8651_p11 = pneg %p9085_p9  ;;  %s225_s16 = sshll.u32 %s8996_s15, 4  ;;  %s226_s16 = int_to_ptr.vmem [resolvable:$true] %s225_s16 }
  0x14   : > { %s8997_s17 = smov 192   ;;  %s8998_s18 = smov 12  }
  0x15   : > { %p9097_p12 = pnand %p8651_p11, %p47_p1  ;;  %s9813_s2 = sld [smem:[#allocation22_spill]] }
  0x16   : > { %s200_s7 = sshll.u32 %s9810_s1, 4  ;;  %s8999_s29 = smov [#allocation9]   ;;  %s201_s7 = int_to_ptr.hbm [resolvable:$true] %s200_s7 }
  0x17   : > { %8654 = dma.hbm_to_vmem [thread:$0]  (!%p9097_p12), %s201_s7, 384, %s203_s10, [#allocation8]  }
  0x18   : > { %8660 = dma.hbm_to_vmem [thread:$0]  (!%p9097_p12), %s224_s13, 9216, %s226_s16, [#allocation11], %s8997_s17, %s8997_s17, %s8998_s18  }
  0x19   : > { %s214_s30 = sshll.u32 %s8999_s29, 4  ;;  %s238_s10 = sshll.u32 %s9802_s4, 4  ;;  %s215_s30 = int_to_ptr.vmem [resolvable:$true] %s214_s30  ;;  %s239_s10 = int_to_ptr.hbm [resolvable:$true] %s238_s10 }
  0x1a   : > { %s9000_s11 = smov [#allocation12]   ;;  %s9116_s13 = sadd.s32 1, %s8993_s24  }
  0x1b   : > { %s212_s26 = sshll.u32 %s9813_s2, 4  ;;  %s240_s12 = sshll.u32 %s9000_s11, 4  ;;  %s213_s26 = int_to_ptr.hbm [resolvable:$true] %s212_s26  ;;  %s241_s12 = int_to_ptr.vmem [resolvable:$true] %s240_s12 }
  0x1c   : > { %8657 = dma.hbm_to_vmem [thread:$0]  (!%p9097_p12), %s213_s26, 384, %s215_s30, [#allocation8]  }
  0x1d   : > { %8663 = dma.hbm_to_vmem [thread:$0]  (!%p9097_p12), %s239_s10, 384, %s241_s12, [#allocation11]  }
  0x1e   : > { %s33_s15 = sadd.s32 1, %s8989_s23  ;;  %s30_s16 = ssub.s32 %s8993_s24, %s9116_s13 }
  0x1f   : > { %p40_p13 = scmp.ne.s32.totalorder %s8989_s23, %s8985_s22  ;;  %p31_p0 = scmp.eq.s32.totalorder %s30_s16, 0 }
  0x20   : > { %p41_p3 = scmp.eq.s32.totalorder %s8993_s24, 0  ;;  %p8676_p7 = scmp.lt.s32.totalorder %s8993_s24, 2 }
  0x21   : > { %p9126_p5 = por %p9805_p2, %p40_p13  ;;  %s251_s19 = sand.u32 1, %s8989_s23  }
  0x22   : > { %s9132_s18 = scalar_select %p31_p0, %s8989_s23, %s33_s15  }
  0x23   : > { %p42_p11 = por %p41_p3, %p40_p13  ;;  %s8623_s14 = smul.u32 192, %s251_s19 }
  0x24   : > { %s8624_s20 = smul.u32 192, %s8993_s24  ;;  %s252_s12 = scalar_lea.sflag [#allocation5], %s251_s19 }
  0x25   : > { %p9136_p12 = pnand %p8676_p7, %p42_p11  ;;  %s255_s9 = scalar_lea.vmem [#allocation4], %s8623_s14 }
  0x26   : > { %s261_s7 = scalar_lea.hbm %s9798_s0, %s8624_s20  ;;  %s264_s10 = sshll.u32 %s255_s9, 4  ;;  %s265_s10 = int_to_ptr.vmem [resolvable:$true] %s264_s10 }
  0x27   : > { %s262_s11 = sshll.u32 %s261_s7, 4  ;;  %p8861_p0 = pneg %p9136_p12  ;;  %s263_s11 = int_to_ptr.hbm [resolvable:$true] %s262_s11 }
  0x28   : > { %s8857_s15 = sshra.s32 %s263_s11, 4  ;;  %s8864_s29 = scalar_lea.hbm %s9798_s0, 384  ;;  %s8858_s15 = int_to_ptr.hbm [resolvable:$true] %s8857_s15 }
  0x29   : > { %s8859_s16 = scalar_lea.hbm %s8858_s15, 192  ;;  %p8865_p11 = scmp.lt.s32.totalorder %s8858_s15, %s9798_s0 }
  0x2a   : > { %p8860_p13 = scmp.ne.s32.totalorder %s8858_s15, %s8859_s16  ;;  %p8866_p10 = scmp.lt.s32.totalorder %s8864_s29, %s8859_s16 }
  0x2c   : > { %p8862_p3 = pnand %p8861_p0, %p8860_p13  ;;  %p8867_p2 = por %p8866_p10, %p8865_p11 }
  0x2e   : > { %p8863_p7 = pneg %p8862_p3 }
  0x30   : > { %p8868_p8 = pnand %p8867_p2, %p8863_p7 }
  0x32   : > { %8871 = shalt.err (!%p8868_p8)
}
  0x33   : > { %s9001_s19 = smov 384   ;;  %s9002_s14 = smov 24  }
  0x34   : > { %8667 = dma.hbm_to_vmem [thread:$0]  (!%p9136_p12), %s263_s11, 3072, %s265_s10, %s252_s12, %s9001_s19, %s9001_s19, %s9002_s14  }
  0x35   : > { %276 = sbr.rel (%p9085_p9) target bundleno = 1441 (0x5a1), region = 40  ;;  %s9156_s1 = sand.u32 (!%p9085_p9), 1, %s8985_s22  }
  0x36   : > { %s8625_s2 = smul.u32 (!%p9085_p9), 192, %s9156_s1  ;;  %s279_s7 = scalar_lea.sflag (!%p9085_p9), [#allocation5], %s9156_s1 }
  0x38   : > { %s9160_s9 = scalar_lea.vmem (!%p9085_p9), [#allocation4], %s8625_s2 }
  0x3a   : > { %8960 = dma.done.wait (%p9071_p4), %s279_s7, 3072  }
  0x3b   : > { %8962 = vsyncadd (%p9071_p4), %s279_s7, 4294964224 }
  0x3c   : > { %8964 = dma.done.wait (%p47_p1), [#allocation8], 768  }
  0x3d   : > { %8966 = vsyncadd (%p47_p1), [#allocation8], 4294966528 }
  0x3e   : > { %8968 = dma.done.wait (%p47_p1), [#allocation11], 9600  }
  0x3f   : > { %8970 = vsyncadd (%p47_p1), [#allocation11], 4294957696  ;;  %s9174_s8 = scalar_lea.vmem [#allocation13], %s8625_s2  ;;  %p9816_p2 = scmp.ne.s32.totalorder %s9062_s25, 0 }
  0x41   : > { %337 = sbr.rel (%p9816_p2) target bundleno = 77 (0x4d), region = 64 }
  0x46   : > { %v338_v0 = vld [vmem:[#allocation7] sm:$0xff]  ;;  %v339_v1 = vld [vmem:[#allocation7 + $0x8] sm:$0xff]  ;;  %v340_v2 = vld [vmem:[#allocation7 + $0x10] sm:$0xff] }
  0x47   : > { %341 = vst [vmem:[#allocation2 + $0x10] sm:$0xff] %v338_v0  ;;  %v344_v3 = vld [vmem:[#allocation9] sm:$0xff]  ;;  %v345_v4 = vld [vmem:[#allocation9 + $0x8] sm:$0xff]  ;;  %v346_v5 = vld [vmem:[#allocation9 + $0x10] sm:$0xff] }
  0x48   : > { %342 = vst [vmem:[#allocation2] sm:$0xff] %v339_v1 }
  0x49   : > { %343 = vst [vmem:[#allocation2 + $0x8] sm:$0xff] %v340_v2 }
  0x4a   : > { %347 = vst [vmem:[#allocation3 + $0x8] sm:$0xff] %v344_v3 }
  0x4b   : > { %348 = vst [vmem:[#allocation3] sm:$0xff] %v345_v4 }
  0x4c   : > { %349 = vst [vmem:[#allocation3 + $0x10] sm:$0xff] %v346_v5 }
  0x4d PF: > { %v5780_v6 = vld [vmem:[#allocation10 + $0xa8] sm:$0xf]  ;;  %v8069_v7 = vld [vmem:[#allocation10 + $0xb0] sm:$0xf0]  ;;  %v5768_v11 = vld [vmem:[#allocation10 + $0x90] sm:$0xf] }
  0x4e   : > { %v5876_v8 = vld [vmem:[#allocation10 + $0x168] sm:$0xf]  ;;  %v5781_v9 = vor.u32 %v8069_v7, %v5780_v6  ;;  %v8093_v10 = vld [vmem:[#allocation10 + $0x170] sm:$0xf0]  ;;  %v8066_v12 = vld [vmem:[#allocation10 + $0x98] sm:$0xf0] }
  0x4f   : > { %v5877_v13 = vor.u32 %v8093_v10, %v5876_v8  ;;  %v5864_v14 = vld [vmem:[#allocation10 + $0x150] sm:$0xf]  ;;  %v8090_v15 = vld [vmem:[#allocation10 + $0x158] sm:$0xf0]  ;;  %v5769_v16 = vor.u32 %v8066_v12, %v5768_v11  ;;  %v5972_v17 = vld [vmem:[#allocation10 + $0x228] sm:$0xf] }
  0x50   : > { %846 = vmatpush.bf16.msra.mxu0 %v5781_v9  ;;  %v8117_v18 = vld [vmem:[#allocation10 + $0x230] sm:$0xf0]  ;;  %v5865_v19 = vor.u32 %v8090_v15, %v5864_v14  ;;  %v5756_v20 = vld [vmem:[#allocation10 + $0x78] sm:$0xf]  ;;  %v8063_v21 = vld [vmem:[#allocation10 + $0x80] sm:$0xf0] }
  0x51   : > { %859 = vmatpush.bf16.msra.mxu1 %v5877_v13  ;;  %v5973_v22 = vor.u32 %v8117_v18, %v5972_v17  ;;  %v5852_v23 = vld [vmem:[#allocation10 + $0x138] sm:$0xf]  ;;  %v8087_v24 = vld [vmem:[#allocation10 + $0x140] sm:$0xf0]  ;;  %v5960_v25 = vld [vmem:[#allocation10 + $0x210] sm:$0xf]  ;;  %v5757_v30 = vor.u32 %v8063_v21, %v5756_v20 }
  0x52   : > { %v8114_v26 = vld [vmem:[#allocation10 + $0x218] sm:$0xf0]  ;;  %v8068_v28 = vld [vmem:[#allocation10 + $0xac] sm:$0xf]  ;;  %v5782_v29 = vld [vmem:[#allocation10 + $0xb4] sm:$0xf0]  ;;  %v5853_v34 = vor.u32 %v8087_v24, %v5852_v23 }
  0x53   : > { %872 = vmatpush.bf16.msra.mxu2 %v5973_v22  ;;  %v5961_v27 = vor.u32 %v8114_v26, %v5960_v25  ;;  %v5744_v31 = vld [vmem:[#allocation10 + $0x60] sm:$0xf]  ;;  %v8060_v32 = vld [vmem:[#allocation10 + $0x68] sm:$0xf0]  ;;  %v5785_v33 = vor.u32 %v8068_v28, %v5782_v29  ;;  %v5948_v35 = vld [vmem:[#allocation10 + $0x1f8] sm:$0xf] }
  0x54   : > { %847 = vmatpush.bf16.msra.mxu0 %v5769_v16  ;;  %v8111_v36 = vld [vmem:[#allocation10 + $0x200] sm:$0xf0]  ;;  %v8065_v37 = vld [vmem:[#allocation10 + $0x94] sm:$0xf]  ;;  %v5840_v38 = vld [vmem:[#allocation10 + $0x120] sm:$0xf]  ;;  %v5745_v44 = vor.u32 %v8060_v32, %v5744_v31 }
  0x55   : > { %860 = vmatpush.bf16.msra.mxu1 %v5865_v19  ;;  %885 = vmatpush.bf16.msra.mxu3 %v5785_v33  ;;  %v8084_v39 = vld [vmem:[#allocation10 + $0x128] sm:$0xf0]  ;;  %v5770_v40 = vld [vmem:[#allocation10 + $0x9c] sm:$0xf0]  ;;  %v5949_v41 = vor.u32 %v8111_v36, %v5948_v35  ;;  %v8062_v46 = vld [vmem:[#allocation10 + $0x7c] sm:$0xf] }
  0x56   : > { %v5773_v42 = vor.u32 %v8065_v37, %v5770_v40  ;;  %v5936_v43 = vld [vmem:[#allocation10 + $0x1e0] sm:$0xf]  ;;  %v8108_v45 = vld [vmem:[#allocation10 + $0x1e8] sm:$0xf0]  ;;  %v5758_v47 = vld [vmem:[#allocation10 + $0x84] sm:$0xf0]  ;;  %v5841_v48 = vor.u32 %v8084_v39, %v5840_v38 }
  0x57   : > { %873 = vmatpush.bf16.msra.mxu2 %v5961_v27  ;;  %v5732_v49 = vld [vmem:[#allocation10 + $0x48] sm:$0xf]  ;;  %v8057_v50 = vld [vmem:[#allocation10 + $0x50] sm:$0xf0]  ;;  %v5761_v53 = vor.u32 %v8062_v46, %v5758_v47  ;;  %v5937_v54 = vor.u32 %v8108_v45, %v5936_v43  ;;  %v8059_v55 = vld [vmem:[#allocation10 + $0x64] sm:$0xf] }
  0x58   : > { %848 = vmatpush.bf16.msra.mxu0 %v5757_v30  ;;  %v5828_v51 = vld [vmem:[#allocation10 + $0x108] sm:$0xf]  ;;  %v8081_v52 = vld [vmem:[#allocation10 + $0x110] sm:$0xf0]  ;;  %v5746_v56 = vld [vmem:[#allocation10 + $0x6c] sm:$0xf0]  ;;  %v5733_v57 = vor.u32 %v8057_v50, %v5732_v49 }
  0x59   : > { %861 = vmatpush.bf16.msra.mxu1 %v5853_v34  ;;  %886 = vmatpush.bf16.msra.mxu3 %v5773_v42  ;;  %v5924_v58 = vld [vmem:[#allocation10 + $0x1c8] sm:$0xf]  ;;  %v8105_v59 = vld [vmem:[#allocation10 + $0x1d0] sm:$0xf0]  ;;  %v5829_v60 = vor.u32 %v8081_v52, %v5828_v51  ;;  %v5720_v61 = vld [vmem:[#allocation10 + $0x30] sm:$0xf]  ;;  %v5749_v1 = vor.u32 %v8059_v55, %v5746_v56 }
  0x5a   : > { %v8054_v62 = vld [vmem:[#allocation10 + $0x38] sm:$0xf0]  ;;  %v5816_v63 = vld [vmem:[#allocation10 + $0xf0] sm:$0xf]  ;;  %v5925_v2 = vor.u32 %v8105_v59, %v5924_v58  ;;  %v8056_v3 = vld [vmem:[#allocation10 + $0x4c] sm:$0xf] }
  0x5b   : > { %874 = vmatpush.bf16.msra.mxu2 %v5949_v41  ;;  %v8078_v0 = vld [vmem:[#allocation10 + $0xf8] sm:$0xf0]  ;;  %v5734_v4 = vld [vmem:[#allocation10 + $0x54] sm:$0xf0]  ;;  %v5721_v5 = vor.u32 %v8054_v62, %v5720_v61  ;;  %v5912_v6 = vld [vmem:[#allocation10 + $0x1b0] sm:$0xf] }
  0x5c   : > { %849 = vmatpush.bf16.msra.mxu0 %v5745_v44  ;;  %v8102_v7 = vld [vmem:[#allocation10 + $0x1b8] sm:$0xf0]  ;;  %v5817_v8 = vor.u32 %v8078_v0, %v5816_v63  ;;  %v5708_v9 = vld [vmem:[#allocation10 + $0x18] sm:$0xf]  ;;  %v8051_v10 = vld [vmem:[#allocation10 + $0x20] sm:$0xf0]  ;;  %v5737_v13 = vor.u32 %v8056_v3, %v5734_v4 }
  0x5d   : > { %862 = vmatpush.bf16.msra.mxu1 %v5841_v48  ;;  %887 = vmatpush.bf16.msra.mxu3 %v5761_v53  ;;  %v5804_v11 = vld [vmem:[#allocation10 + $0xd8] sm:$0xf]  ;;  %v8075_v12 = vld [vmem:[#allocation10 + $0xe0] sm:$0xf0]  ;;  %v5696_v14 = vld [vmem:[#allocation10] sm:$0xf]  ;;  %v5913_v15 = vor.u32 %v8102_v7, %v5912_v6  ;;  %v5709_v18 = vor.u32 %v8051_v10, %v5708_v9 }
  0x5e   : > { %v8053_v16 = vld [vmem:[#allocation10 + $0x34] sm:$0xf]  ;;  %v5722_v17 = vld [vmem:[#allocation10 + $0x3c] sm:$0xf0]  ;;  %v8048_v19 = vld [vmem:[#allocation10 + $0x8] sm:$0xf0]  ;;  %v5805_v22 = vor.u32 %v8075_v12, %v5804_v11 }
  0x5f   : > { %875 = vmatpush.bf16.msra.mxu2 %v5937_v54  ;;  %v5900_v20 = vld [vmem:[#allocation10 + $0x198] sm:$0xf]  ;;  %v8099_v21 = vld [vmem:[#allocation10 + $0x1a0] sm:$0xf0]  ;;  %v8092_v23 = vld [vmem:[#allocation10 + $0x16c] sm:$0xf]  ;;  %v5725_v28 = vor.u32 %v8053_v16, %v5722_v17  ;;  %v5697_v33 = vor.u32 %v8048_v19, %v5696_v14 }
  0x60   : > { %850 = vmatpush.bf16.msra.mxu0 %v5733_v57  ;;  %v5878_v24 = vld [vmem:[#allocation10 + $0x174] sm:$0xf0]  ;;  %v5792_v25 = vld [vmem:[#allocation10 + $0xc0] sm:$0xf]  ;;  %v8072_v26 = vld [vmem:[#allocation10 + $0xc8] sm:$0xf0]  ;;  %v5901_v30 = vor.u32 %v8099_v21, %v5900_v20 }
  0x61   : > { %863 = vmatpush.bf16.msra.mxu1 %v5829_v60  ;;  %888 = vmatpush.bf16.msra.mxu3 %v5749_v1  ;;  %v8116_v27 = vld [vmem:[#allocation10 + $0x22c] sm:$0xf]  ;;  %v5974_v29 = vld [vmem:[#allocation10 + $0x234] sm:$0xf0]  ;;  %v8050_v31 = vld [vmem:[#allocation10 + $0x1c] sm:$0xf]  ;;  %v5881_v37 = vor.u32 %v8092_v23, %v5878_v24  ;;  %v5793_v38 = vor.u32 %v8072_v26, %v5792_v25 }
  0x62   : > { %v5710_v32 = vld [vmem:[#allocation10 + $0x24] sm:$0xf0]  ;;  %v5888_v34 = vld [vmem:[#allocation10 + $0x180] sm:$0xf]  ;;  %v8096_v35 = vld [vmem:[#allocation10 + $0x188] sm:$0xf0]  ;;  %v5977_v42 = vor.u32 %v8116_v27, %v5974_v29 }
  0x63   : > { %876 = vmatpush.bf16.msra.mxu2 %v5925_v2  ;;  %v5788_v36 = vld [vmem:[#allocation10 + $0xb0] sm:$0xf]  ;;  %v8070_v39 = vld [vmem:[#allocation10 + $0xb8] sm:$0xf0]  ;;  %v9178_v40 = vld [vmem:[#allocation3 + $0x8] sm:$0xff]  ;;  %v5713_v45 = vor.u32 %v8050_v31, %v5710_v32  ;;  %v5889_v48 = vor.u32 %v8096_v35, %v5888_v34  ;;  %s9202_s27 = sshll.u32 %s9062_s25, 3 }
  0x64   : > { %851 = vmatpush.bf16.msra.mxu0 %v5721_v5  ;;  %v9180_v41 = vld [vmem:[#allocation3] sm:$0xff]  ;;  %v8089_v43 = vld [vmem:[#allocation10 + $0x154] sm:$0xf]  ;;  %v5866_v44 = vld [vmem:[#allocation10 + $0x15c] sm:$0xf0]  ;;  %v9184_v50 = vpack.c.bf16 %v9178_v40, %v9178_v40  ;;  %v5789_v53 = vor.u32 %v8070_v39, %v5788_v36  ;;  %p978_p1 = scmp.lt.s32.totalorder %s9202_s27, 12 }
  0x65   : > { %864 = vmatpush.bf16.msra.mxu1 %v5817_v8  ;;  %889 = vmatpush.bf16.msra.mxu3 %v5737_v13  ;;  %v8113_v46 = vld [vmem:[#allocation10 + $0x214] sm:$0xf]  ;;  %v5962_v47 = vld [vmem:[#allocation10 + $0x21c] sm:$0xf0]  ;;  %v359_v49 = vld [vmem:[#allocation3 + $0x10] sm:$0xff]  ;;  %v9188_v55 = vpack.c.bf16 %v9180_v41, %v9180_v41  ;;  %v5869_v56 = vor.u32 %v8089_v43, %v5866_v44  ;;  %s997_s10 = sadd.s32 1, %s9202_s27 }
  0x66   : > { %v8047_v51 = vld [vmem:[#allocation10 + $0x4] sm:$0xf]  ;;  %v5698_v52 = vld [vmem:[#allocation10 + $0xc] sm:$0xf0]  ;;  %v8094_v57 = vld [vmem:[#allocation10 + $0x178] sm:$0xf0]  ;;  %v5965_v60 = vor.u32 %v8113_v46, %v5962_v47  ;;  %v9190_v63 = vpack.c.bf16 %v359_v49, %v359_v49 }
  0x67   : > { %877 = vmatpush.bf16.msra.mxu2 %v5913_v15  ;;  %v5884_v54 = vld [vmem:[#allocation10 + $0x170] sm:$0xf]  ;;  %v5776_v58 = vld [vmem:[#allocation10 + $0x98] sm:$0xf]  ;;  %v8067_v59 = vld [vmem:[#allocation10 + $0xa0] sm:$0xf0]  ;;  %v5701_v2 = vor.u32 %v8047_v51, %v5698_v52 }
  0x68   : > { %852 = vmatpush.bf16.msra.mxu0 %v5709_v18  ;;  %v8086_v61 = vld [vmem:[#allocation10 + $0x13c] sm:$0xf]  ;;  %v5854_v62 = vld [vmem:[#allocation10 + $0x144] sm:$0xf0]  ;;  %v5885_v3 = vor.u32 %v8094_v57, %v5884_v54  ;;  %v5777_v4 = vor.u32 %v8067_v59, %v5776_v58  ;;  %v5872_v5 = vld [vmem:[#allocation10 + $0x158] sm:$0xf] }
  0x69   : > { %865 = vmatpush.bf16.msra.mxu1 %v5805_v22  ;;  %890 = vmatpush.bf16.msra.mxu3 %v5725_v28  ;;  %v8110_v0 = vld [vmem:[#allocation10 + $0x1fc] sm:$0xf]  ;;  %v5950_v1 = vld [vmem:[#allocation10 + $0x204] sm:$0xf0]  ;;  %v5857_v6 = vor.u32 %v8086_v61, %v5854_v62  ;;  %v8091_v7 = vld [vmem:[#allocation10 + $0x160] sm:$0xf0] }
  0x6a   : > { %v5764_v8 = vld [vmem:[#allocation10 + $0x80] sm:$0xf]  ;;  %v8064_v9 = vld [vmem:[#allocation10 + $0x88] sm:$0xf0]  ;;  %v5953_v10 = vor.u32 %v8110_v0, %v5950_v1  ;;  %v8083_v11 = vld [vmem:[#allocation10 + $0x124] sm:$0xf]  ;;  %v5873_v15 = vor.u32 %v8091_v7, %v5872_v5 }
  0x6b   : > { %878 = vmatpush.bf16.msra.mxu2 %v5901_v30  ;;  %v5842_v12 = vld [vmem:[#allocation10 + $0x12c] sm:$0xf0]  ;;  %v8107_v13 = vld [vmem:[#allocation10 + $0x1e4] sm:$0xf]  ;;  %v5765_v16 = vor.u32 %v8064_v9, %v5764_v8  ;;  %v5860_v17 = vld [vmem:[#allocation10 + $0x140] sm:$0xf] }
  0x6c   : > { %853 = vmatpush.bf16.msra.mxu0 %v5697_v33  ;;  %v5938_v14 = vld [vmem:[#allocation10 + $0x1ec] sm:$0xf0]  ;;  %v5845_v18 = vor.u32 %v8083_v11, %v5842_v12  ;;  %v8088_v19 = vld [vmem:[#allocation10 + $0x148] sm:$0xf0]  ;;  %v5752_v20 = vld [vmem:[#allocation10 + $0x68] sm:$0xf] }
  0x6d   : > { %866 = vmatpush.bf16.msra.mxu1 %v5793_v38  ;;  %891 = vmatpush.bf16.msra.mxu3 %v5713_v45  ;;  %v8061_v21 = vld [vmem:[#allocation10 + $0x70] sm:$0xf0]  ;;  %v5941_v22 = vor.u32 %v8107_v13, %v5938_v14  ;;  %v8080_v23 = vld [vmem:[#allocation10 + $0x10c] sm:$0xf]  ;;  %v5830_v24 = vld [vmem:[#allocation10 + $0x114] sm:$0xf0]  ;;  %v5861_v27 = vor.u32 %v8088_v19, %v5860_v17 }
  0x6e   : > { %v8104_v25 = vld [vmem:[#allocation10 + $0x1cc] sm:$0xf]  ;;  %v5926_v26 = vld [vmem:[#allocation10 + $0x1d4] sm:$0xf0]  ;;  %v5753_v28 = vor.u32 %v8061_v21, %v5752_v20  ;;  %v5848_v29 = vld [vmem:[#allocation10 + $0x128] sm:$0xf]  ;;  %v5833_v30 = vor.u32 %v8080_v23, %v5830_v24 }
  0x6f   : > { %879 = vmatpush.bf16.msra.mxu2 %v5889_v48  ;;  %854 = vmatmul.bf16.vlgmr.msra.gmra.mxu0 %v9184_v50  ;;  %v8085_v31 = vld [vmem:[#allocation10 + $0x130] sm:$0xf0]  ;;  %v5740_v32 = vld [vmem:[#allocation10 + $0x50] sm:$0xf]  ;;  %v8058_v33 = vld [vmem:[#allocation10 + $0x58] sm:$0xf0]  ;;  %v5929_v34 = vor.u32 %v8104_v25, %v5926_v26 }
  0x70   : > { %898 = vmatpush.bf16.msrb.mxu0 %v5881_v37  ;;  %867 = vmatmul.bf16.vlgmr.msra.gmra.mxu1 %v9188_v55  ;;  %v8077_v35 = vld [vmem:[#allocation10 + $0xf4] sm:$0xf]  ;;  %v5818_v36 = vld [vmem:[#allocation10 + $0xfc] sm:$0xf0]  ;;  %v5849_v39 = vor.u32 %v8085_v31, %v5848_v29  ;;  %v5836_v43 = vld [vmem:[#allocation10 + $0x110] sm:$0xf] }
  0x71   : > { %911 = vmatpush.bf16.msrb.mxu1 %v5977_v42  ;;  %892 = vmatpush.bf16.msra.mxu3 %v5701_v2  ;;  %v8101_v37 = vld [vmem:[#allocation10 + $0x1b4] sm:$0xf]  ;;  %v5914_v38 = vld [vmem:[#allocation10 + $0x1bc] sm:$0xf0]  ;;  %v5741_v42 = vor.u32 %v8058_v33, %v5740_v32  ;;  %v5821_v44 = vor.u32 %v8077_v35, %v5818_v36  ;;  %v8082_v45 = vld [vmem:[#allocation10 + $0x118] sm:$0xf0] }
  0x72   : > { %880 = vmatmul.bf16.vlgmr.msra.gmra.mxu2 %v9190_v63  ;;  %v5728_v46 = vld [vmem:[#allocation10 + $0x38] sm:$0xf]  ;;  %v8055_v47 = vld [vmem:[#allocation10 + $0x40] sm:$0xf0]  ;;  %v5917_v48 = vor.u32 %v8101_v37, %v5914_v38  ;;  %v8074_v49 = vld [vmem:[#allocation10 + $0xdc] sm:$0xf]  ;;  %v5837_v54 = vor.u32 %v8082_v45, %v5836_v43 }
  0x73   : > { %924 = vmatpush.bf16.msrb.mxu2 %v5789_v53  ;;  %v5806_v51 = vld [vmem:[#allocation10 + $0xe4] sm:$0xf0]  ;;  %v8098_v52 = vld [vmem:[#allocation10 + $0x19c] sm:$0xf]  ;;  %v5824_v57 = vld [vmem:[#allocation10 + $0xf8] sm:$0xf] }
  0x74   : > { %899 = vmatpush.bf16.msrb.mxu0 %v5869_v56  ;;  %893 = vmatmul.bf16.vlgmr.msra.gmra.mxu3 %v9184_v50  ;;  %v5902_v53 = vld [vmem:[#allocation10 + $0x1a4] sm:$0xf0]  ;;  %v5729_v56 = vor.u32 %v8055_v47, %v5728_v46  ;;  %v5809_v58 = vor.u32 %v8074_v49, %v5806_v51  ;;  %v8079_v59 = vld [vmem:[#allocation10 + $0x100] sm:$0xf0]  ;;  %v8052_v61 = vld [vmem:[#allocation10 + $0x28] sm:$0xf0] }
  0x75   : > { %912 = vmatpush.bf16.msrb.mxu1 %v5965_v60  ;;  %937 = vmatpush.bf16.msrb.mxu3 %v5885_v3  ;;  %v5716_v60 = vld [vmem:[#allocation10 + $0x20] sm:$0xf]  ;;  %v5905_v62 = vor.u32 %v8098_v52, %v5902_v53  ;;  %v8071_v0 = vld [vmem:[#allocation10 + $0xc4] sm:$0xf]  ;;  %v5794_v1 = vld [vmem:[#allocation10 + $0xcc] sm:$0xf0] }
  0x76   : > { %v5980_v2 = vld [vmem:[#allocation10 + $0x230] sm:$0xf]  ;;  %v8118_v3 = vld [vmem:[#allocation10 + $0x238] sm:$0xf0]  ;;  %v5717_v7 = vor.u32 %v8052_v61, %v5716_v60  ;;  %v5797_v8 = vor.u32 %v8071_v0, %v5794_v1  ;;  %v5812_v9 = vld [vmem:[#allocation10 + $0xe0] sm:$0xf] }
  0x77   : > { %925 = vmatpush.bf16.msrb.mxu2 %v5777_v4  ;;  %v8095_v4 = vld [vmem:[#allocation10 + $0x184] sm:$0xf]  ;;  %v5890_v5 = vld [vmem:[#allocation10 + $0x18c] sm:$0xf0]  ;;  %v5981_v11 = vor.u32 %v8118_v3, %v5980_v2  ;;  %v5704_v13 = vld [vmem:[#allocation10 + $0x8] sm:$0xf] }
  0x78   : > { %900 = vmatpush.bf16.msrb.mxu0 %v5857_v6  ;;  %v5825_v6 = vor.u32 %v8079_v59, %v5824_v57  ;;  %v5893_v12 = vor.u32 %v8095_v4, %v5890_v5  ;;  %v8049_v14 = vld [vmem:[#allocation10 + $0x10] sm:$0xf0]  ;;  %v6071_v21 = vld [vmem:[#allocation10 + $0xa8] sm:$0xf]  ;;  %v5956_v24 = vld [vmem:[#allocation10 + $0x200] sm:$0xf] }
  0x79   : > { %913 = vmatpush.bf16.msrb.mxu1 %v5953_v10  ;;  %938 = vmatpush.bf16.msrb.mxu3 %v5873_v15  ;;  %v8076_v10 = vld [vmem:[#allocation10 + $0xe8] sm:$0xf0]  ;;  %v5968_v15 = vld [vmem:[#allocation10 + $0x218] sm:$0xf]  ;;  %v5705_v19 = vor.u32 %v8049_v14, %v5704_v13  ;;  %v8073_v20 = vld [vmem:[#allocation10 + $0xd0] sm:$0xf0] }
  0x7a   : > { %v5813_v17 = vor.u32 %v8076_v10, %v5812_v9  ;;  %v8112_v26 = vld [vmem:[#allocation10 + $0x208] sm:$0xf0]  ;;  %v5944_v31 = vld [vmem:[#allocation10 + $0x1e8] sm:$0xf]  ;;  %v8109_v33 = vld [vmem:[#allocation10 + $0x1f0] sm:$0xf0] }
  0x7b   : > { %926 = vmatpush.bf16.msrb.mxu2 %v5765_v16  ;;  %v8115_v16 = vld [vmem:[#allocation10 + $0x220] sm:$0xf0]  ;;  %v5945_v36 = vor.u32 %v8109_v33, %v5944_v31  ;;  %v5932_v37 = vld [vmem:[#allocation10 + $0x1d0] sm:$0xf]  ;;  %v8132_v43 = vld [vmem:[#allocation10 + $0x68] sm:$0xf0] }
  0x7c   : > { %901 = vmatpush.bf16.msrb.mxu0 %v5845_v18  ;;  %v5800_v18 = vld [vmem:[#allocation10 + $0xc8] sm:$0xf]  ;;  %v5969_v23 = vor.u32 %v8115_v16, %v5968_v15  ;;  %v8135_v35 = vld [vmem:[#allocation10 + $0x80] sm:$0xf0]  ;;  %v5920_v45 = vld [vmem:[#allocation10 + $0x1b8] sm:$0xf] }
  0x7d   : > { %914 = vmatpush.bf16.msrb.mxu1 %v5941_v22  ;;  %939 = vmatpush.bf16.msrb.mxu3 %v5861_v27  ;;  %v8141_v22 = vld [vmem:[#allocation10 + $0xb0] sm:$0xf0]  ;;  %v6059_v27 = vld [vmem:[#allocation10 + $0x90] sm:$0xf]  ;;  %v5801_v29 = vor.u32 %v8073_v20, %v5800_v18  ;;  %v8103_v47 = vld [vmem:[#allocation10 + $0x1c0] sm:$0xf0] }
  0x7e   : > { %v6072_v25 = vor.u32 %v8141_v22, %v6071_v21  ;;  %v8129_v49 = vld [vmem:[#allocation10 + $0x50] sm:$0xf0]  ;;  %v5908_v51 = vld [vmem:[#allocation10 + $0x1a0] sm:$0xf]  ;;  %v8100_v53 = vld [vmem:[#allocation10 + $0x1a8] sm:$0xf0] }
  0x7f   : > { %927 = vmatpush.bf16.msrb.mxu2 %v5753_v28  ;;  %v8138_v28 = vld [vmem:[#allocation10 + $0x98] sm:$0xf0]  ;;  %v8097_v59 = vld [vmem:[#allocation10 + $0x190] sm:$0xf0]  ;;  %v8140_v60 = vld [vmem:[#allocation10 + $0xac] sm:$0xf] }
  0x80   : > { %902 = vmatpush.bf16.msrb.mxu0 %v5833_v30  ;;  %v5957_v30 = vor.u32 %v8112_v26, %v5956_v24  ;;  %v6060_v32 = vor.u32 %v8138_v28, %v6059_v27  ;;  %v6073_v61 = vld [vmem:[#allocation10 + $0xb4] sm:$0xf0]  ;;  %v8137_v1 = vld [vmem:[#allocation10 + $0x94] sm:$0xf]  ;;  %v6061_v2 = vld [vmem:[#allocation10 + $0x9c] sm:$0xf0] }
  0x81   : > { %915 = vmatpush.bf16.msrb.mxu1 %v5929_v34  ;;  %940 = vmatpush.bf16.msrb.mxu3 %v5849_v39  ;;  %v6047_v34 = vld [vmem:[#allocation10 + $0x78] sm:$0xf]  ;;  %v8106_v39 = vld [vmem:[#allocation10 + $0x1d8] sm:$0xf0]  ;;  %v6076_v0 = vor.u32 %v8140_v60, %v6073_v61  ;;  %v6064_v3 = vor.u32 %v8137_v1, %v6061_v2  ;;  %v6049_v5 = vld [vmem:[#allocation10 + $0x84] sm:$0xf0] }
  0x82   : > { %v6048_v38 = vor.u32 %v8135_v35, %v6047_v34  ;;  %v8134_v4 = vld [vmem:[#allocation10 + $0x7c] sm:$0xf]  ;;  %v8128_v10 = vld [vmem:[#allocation10 + $0x4c] sm:$0xf]  ;;  %v8125_v13 = vld [vmem:[#allocation10 + $0x34] sm:$0xf] }
  0x83   : > { %928 = vmatpush.bf16.msrb.mxu2 %v5741_v42  ;;  %v6035_v42 = vld [vmem:[#allocation10 + $0x60] sm:$0xf]  ;;  %v5999_v16 = vld [vmem:[#allocation10 + $0x18] sm:$0xf]  ;;  %v8120_v22 = vld [vmem:[#allocation10 + $0x8] sm:$0xf0] }
  0x84   : > { %903 = vmatpush.bf16.msrb.mxu0 %v5821_v44  ;;  %v5933_v44 = vor.u32 %v8106_v39, %v5932_v37  ;;  %v6036_v46 = vor.u32 %v8132_v43, %v6035_v42  ;;  %v6013_v14 = vld [vmem:[#allocation10 + $0x3c] sm:$0xf0]  ;;  %v6167_v24 = vld [vmem:[#allocation10 + $0x168] sm:$0xf]  ;;  %v8164_v26 = vld [vmem:[#allocation10 + $0x16c] sm:$0xf] }
  0x85   : > { %916 = vmatpush.bf16.msrb.mxu1 %v5917_v48  ;;  %941 = vmatpush.bf16.msrb.mxu3 %v5837_v54  ;;  %v6023_v48 = vld [vmem:[#allocation10 + $0x48] sm:$0xf]  ;;  %v6011_v54 = vld [vmem:[#allocation10 + $0x30] sm:$0xf]  ;;  %v6016_v15 = vor.u32 %v8125_v13, %v6013_v14  ;;  %v5987_v21 = vld [vmem:[#allocation10] sm:$0xf] }
  0x86   : > { %v6024_v52 = vor.u32 %v8129_v49, %v6023_v48  ;;  %v6169_v28 = vld [vmem:[#allocation10 + $0x174] sm:$0xf0]  ;;  %v5989_v31 = vld [vmem:[#allocation10 + $0xc] sm:$0xf0]  ;;  %v8166_v34 = vld [vmem:[#allocation10 + $0x178] sm:$0xf0] }
  0x87   : > { %929 = vmatpush.bf16.msrb.mxu2 %v5729_v56  ;;  %v8126_v56 = vld [vmem:[#allocation10 + $0x38] sm:$0xf0]  ;;  %v6175_v33 = vld [vmem:[#allocation10 + $0x170] sm:$0xf]  ;;  %v6157_v42 = vld [vmem:[#allocation10 + $0x15c] sm:$0xf0] }
  0x88   : > { %904 = vmatpush.bf16.msrb.mxu0 %v5809_v58  ;;  %v6012_v57 = vor.u32 %v8126_v56, %v6011_v54  ;;  %v5896_v58 = vld [vmem:[#allocation10 + $0x188] sm:$0xf]  ;;  %v6176_v35 = vor.u32 %v8166_v34, %v6175_v33  ;;  %v8162_v37 = vld [vmem:[#allocation10 + $0x158] sm:$0xf0]  ;;  %v8159_v48 = vld [vmem:[#allocation10 + $0x140] sm:$0xf0] }
  0x89   : > { %917 = vmatpush.bf16.msrb.mxu1 %v5905_v62  ;;  %942 = vmatpush.bf16.msrb.mxu3 %v5825_v6  ;;  %v5897_v62 = vor.u32 %v8097_v59, %v5896_v58  ;;  %v6052_v6 = vor.u32 %v8134_v4, %v6049_v5  ;;  %v8158_v49 = vld [vmem:[#allocation10 + $0x13c] sm:$0xf]  ;;  %v8160_v54 = vld [vmem:[#allocation10 + $0x148] sm:$0xf0]  ;;  %v8155_v58 = vld [vmem:[#allocation10 + $0x124] sm:$0xf] }
  0x8a   : > { %v6133_v60 = vld [vmem:[#allocation10 + $0x12c] sm:$0xf0]  ;;  %v6119_v2 = vld [vmem:[#allocation10 + $0x108] sm:$0xf]  ;;  %s9209_s26 = scalar_select %p978_p1, 1, 0 }
  0x8b   : > { %930 = vmatpush.bf16.msrb.mxu2 %v5717_v7  ;;  %v8131_v7 = vld [vmem:[#allocation10 + $0x64] sm:$0xf]  ;;  %v6136_v61 = vor.u32 %v8155_v58, %v6133_v60  ;;  %v6263_v4 = vld [vmem:[#allocation10 + $0x228] sm:$0xf]  ;;  %v6107_v14 = vld [vmem:[#allocation10 + $0xf0] sm:$0xf] }
  0x8c   : > { %905 = vmatpush.bf16.msrb.mxu0 %v5797_v8  ;;  %v6037_v8 = vld [vmem:[#allocation10 + $0x6c] sm:$0xf0]  ;;  %v6097_v33 = vld [vmem:[#allocation10 + $0xe4] sm:$0xf0]  ;;  %v8145_v58 = vld [vmem:[#allocation10 + $0xd0] sm:$0xf0] }
  0x8d   : > { %918 = vmatpush.bf16.msrb.mxu1 %v5893_v12  ;;  %943 = vmatpush.bf16.msrb.mxu3 %v5813_v17  ;;  %v6040_v9 = vor.u32 %v8131_v7, %v6037_v8  ;;  %v8123_v17 = vld [vmem:[#allocation10 + $0x20] sm:$0xf0]  ;;  %v8152_v7 = vld [vmem:[#allocation10 + $0x10c] sm:$0xf]  ;;  %v6121_v8 = vld [vmem:[#allocation10 + $0x114] sm:$0xf0] }
  0x8e   : > { %v6000_v18 = vor.u32 %v8123_v17, %v5999_v16  ;;  %v6251_v16 = vld [vmem:[#allocation10 + $0x210] sm:$0xf]  ;;  %p9280_p4 = scmp.lt.s32.totalorder %s997_s10, 12  ;;  %s1643_s15 = sadd.s32 2, %s9202_s27 }
  0x8f   : > { %906 = vmatmul.bf16.vlgmr.msrb.gmra.mxu0 %v9188_v55  ;;  %931 = vmatpush.bf16.msrb.mxu2 %v5705_v19  ;;  %v6001_v19 = vld [vmem:[#allocation10 + $0x24] sm:$0xf0]  ;;  %p9353_p8 = scmp.lt.s32.totalorder %s1643_s15, 12  ;;  %s2289_s30 = sadd.s32 3, %s9202_s27 }
  0x90   : > { %950 = vmatpush.bf16.msra.mxu0 %v5981_v11  ;;  %919 = vmatmul.bf16.vlgmr.msrb.gmra.mxu1 %v9190_v63  ;;  %v6025_v11 = vld [vmem:[#allocation10 + $0x54] sm:$0xf0]  ;;  %s1624_s12 = scalar_select %p9280_p4, 1, 0 }
  0x91   : > { %1491 = vmatpush.bf16.msra.mxu1 %v6072_v25  ;;  %944 = vmatpush.bf16.msrb.mxu3 %v5801_v29  ;;  %v6028_v12 = vor.u32 %v8128_v10, %v6025_v11  ;;  %v8165_v25 = vld [vmem:[#allocation10 + $0x170] sm:$0xf0]  ;;  %v6172_v29 = vor.u32 %v8164_v26, %v6169_v28  ;;  %v6124_v10 = vor.u32 %v8152_v7, %v6121_v8  ;;  %v6127_v11 = vld [vmem:[#allocation10 + $0x110] sm:$0xf]  ;;  %v8147_v28 = vld [vmem:[#allocation10 + $0xe0] sm:$0xf0] }
  0x92   : > { %932 = vmatmul.bf16.vlgmr.msrb.gmra.mxu2 %v9184_v50  ;;  %v5921_v50 = vor.u32 %v8103_v47, %v5920_v45  ;;  %v6168_v27 = vor.u32 %v8165_v25, %v6167_v24  ;;  %v8163_v45 = vld [vmem:[#allocation10 + $0x160] sm:$0xf0]  ;;  %v6143_v47 = vld [vmem:[#allocation10 + $0x138] sm:$0xf]  ;;  %s2270_s29 = scalar_select %p9353_p8, 1, 0 }
  0x93   : > { %v8151_v24 = vld [vmem:[#allocation10 + $0x100] sm:$0xf0]  ;;  %p9426_p9 = scmp.lt.s32.totalorder %s2289_s30, 12  ;;  %s2935_s14 = sadd.s32 4, %s9202_s27 }
  0x94   : > { %951 = vmatpush.bf16.msra.mxu0 %v5969_v23  ;;  %945 = vmatmul.bf16.vlgmr.msrb.gmra.mxu3 %v9188_v55  ;;  %v5909_v55 = vor.u32 %v8100_v53, %v5908_v51  ;;  %v5988_v23 = vor.u32 %v8120_v22, %v5987_v21  ;;  %v6145_v51 = vld [vmem:[#allocation10 + $0x144] sm:$0xf0]  ;;  %v6151_v53 = vld [vmem:[#allocation10 + $0x140] sm:$0xf]  ;;  %p9493_p10 = scmp.lt.s32.totalorder %s2935_s14, 12  ;;  %s9003_s2 = smov [#allocation14]  }
  0x95   : > { %1492 = vmatpush.bf16.msra.mxu1 %v6060_v32  ;;  %1504 = vmatpush.bf16.msra.mxu2 %v6168_v27  ;;  %v6152_v56 = vor.u32 %v8160_v54, %v6151_v53  ;;  %v6095_v27 = vld [vmem:[#allocation10 + $0xd8] sm:$0xf]  ;;  %v8188_v53 = vld [vmem:[#allocation10 + $0x22c] sm:$0xf]  ;;  %s2916_s19 = scalar_select %p9426_p9, 1, 0 }
  0x96   : > { %v6265_v54 = vld [vmem:[#allocation10 + $0x234] sm:$0xf0]  ;;  %s3562_s7 = scalar_select %p9493_p10, 1, 0 }
  0x97   : > { %p9825_p3 = scmp.eq.s32.totalorder %s9062_s25, 1  ;;  %s5526_s15 = scalar_lea.sflag [#allocation6], %s9156_s1 }
  0x98   : > { %952 = vmatpush.bf16.msra.mxu0 %v5957_v30  ;;  %v8119_v30 = vld [vmem:[#allocation10 + $0x4] sm:$0xf]  ;;  %s8935_s20 = scalar_lea.hbm %s9803_s5, 384 }
  0x99   : > { %1493 = vmatpush.bf16.msra.mxu1 %v6048_v38  ;;  %v5992_v32 = vor.u32 %v8119_v30, %v5989_v31  ;;  %v8161_v38 = vld [vmem:[#allocation10 + $0x154] sm:$0xf]  ;;  %v6096_v30 = vor.u32 %v8147_v28, %v6095_v27  ;;  %v8183_v31 = vld [vmem:[#allocation10 + $0x200] sm:$0xf0]  ;;  %v6229_v28 = vld [vmem:[#allocation10 + $0x1ec] sm:$0xf0] }
  0x9a   : > { %v6160_v43 = vor.u32 %v8161_v38, %v6157_v42  ;;  %v9205_v38 = vld [vmem:[#allocation12] sm:$0xff] }
  0x9b   : > { %v6083_v42 = vld [vmem:[#allocation10 + $0xc0] sm:$0xf]  ;;  %v8179_v27 = vld [vmem:[#allocation10 + $0x1e4] sm:$0xf] }
  0x9c   : > { %953 = vmatpush.bf16.msra.mxu0 %v5945_v36  ;;  %v6155_v36 = vld [vmem:[#allocation10 + $0x150] sm:$0xf] }
  0x9d   : > { %1494 = vmatpush.bf16.msra.mxu1 %v6036_v46  ;;  %v6156_v39 = vor.u32 %v8162_v37, %v6155_v36  ;;  %v6103_v36 = vld [vmem:[#allocation10 + $0xe0] sm:$0xf]  ;;  %v8148_v37 = vld [vmem:[#allocation10 + $0xe8] sm:$0xf0] }
  0x9f   : > { %1505 = vmatpush.bf16.msra.mxu2 %v6156_v39  ;;  %v6104_v39 = vor.u32 %v8148_v37, %v6103_v36  ;;  %v6179_v36 = vld [vmem:[#allocation10 + $0x180] sm:$0xf]  ;;  %v8168_v37 = vld [vmem:[#allocation10 + $0x188] sm:$0xf0] }
  0xa0   : > { %954 = vmatpush.bf16.msra.mxu0 %v5933_v44  ;;  %v6163_v44 = vld [vmem:[#allocation10 + $0x158] sm:$0xf] }
  0xa1   : > { %1495 = vmatpush.bf16.msra.mxu1 %v6024_v52  ;;  %v6164_v46 = vor.u32 %v8163_v45, %v6163_v44  ;;  %v6148_v52 = vor.u32 %v8158_v49, %v6145_v51  ;;  %v6227_v44 = vld [vmem:[#allocation10 + $0x1e0] sm:$0xf]  ;;  %v6085_v49 = vld [vmem:[#allocation10 + $0xcc] sm:$0xf0] }
  0xa4   : > { %955 = vmatpush.bf16.msra.mxu0 %v5921_v50  ;;  %v6144_v50 = vor.u32 %v8159_v48, %v6143_v47  ;;  %v8180_v47 = vld [vmem:[#allocation10 + $0x1e8] sm:$0xf0]  ;;  %v8143_v48 = vld [vmem:[#allocation10 + $0xc4] sm:$0xf] }
  0xa5   : > { %1496 = vmatpush.bf16.msra.mxu1 %v6012_v57  ;;  %v8156_v57 = vld [vmem:[#allocation10 + $0x128] sm:$0xf0]  ;;  %v6228_v51 = vor.u32 %v8180_v47, %v6227_v44  ;;  %v6079_v44 = vld [vmem:[#allocation10 + $0xb0] sm:$0xf] }
  0xa6   : > { %1506 = vmatpush.bf16.msra.mxu2 %v6144_v50  ;;  %v354_v50 = vld [vmem:[#allocation2 + $0x10] sm:$0xff] }
  0xa8   : > { %956 = vmatpush.bf16.msra.mxu0 %v5909_v55  ;;  %v6131_v55 = vld [vmem:[#allocation10 + $0x120] sm:$0xf] }
  0xa9   : > { %1497 = vmatpush.bf16.msra.mxu1 %v6000_v18  ;;  %v6132_v59 = vor.u32 %v8156_v57, %v6131_v55  ;;  %v8186_v18 = vld [vmem:[#allocation10 + $0x218] sm:$0xf0]  ;;  %v6268_v55 = vor.u32 %v8188_v53, %v6265_v54  ;;  %v6091_v57 = vld [vmem:[#allocation10 + $0xc8] sm:$0xf]  ;;  %v8139_v54 = vld [vmem:[#allocation10 + $0xa0] sm:$0xf0] }
  0xaa   : > { %v6252_v21 = vor.u32 %v8186_v18, %v6251_v16  ;;  %v6241_v16 = vld [vmem:[#allocation10 + $0x204] sm:$0xf0] }
  0xab   : > { %1507 = vmatpush.bf16.msra.mxu2 %v6132_v59  ;;  %v360_v59 = vld [vmem:[%s9160_s9] sm:$0xff]  ;;  %v9236_v53 = vld [vmem:[#allocation12 + $0x8] sm:$0xff] }
  0xac   : > { %957 = vmatpush.bf16.msra.mxu0 %v5897_v62  ;;  %v6139_v62 = vld [vmem:[#allocation10 + $0x128] sm:$0xf] }
  0xad   : > { %1498 = vmatpush.bf16.msra.mxu1 %v5988_v23  ;;  %v6115_v23 = vld [vmem:[#allocation10 + $0xf8] sm:$0xf] }
  0xae   : > { %v6116_v26 = vor.u32 %v8151_v24, %v6115_v23  ;;  %v6191_v23 = vld [vmem:[#allocation10 + $0x198] sm:$0xf]  ;;  %v8171_v24 = vld [vmem:[#allocation10 + $0x1a0] sm:$0xf0] }
  0xaf   : > { %958 = vmatmul.bf16.vlgmr.msra.gmra.mxu0 %v9190_v63  ;;  %v8122_v63 = vld [vmem:[#allocation10 + $0x1c] sm:$0xf] }
  0xb0   : > { %1530 = vmatpush.bf16.msrb.mxu0 %v6076_v0  ;;  %v6004_v20 = vor.u32 %v8122_v63, %v6001_v19  ;;  %v8157_v0 = vld [vmem:[#allocation10 + $0x130] sm:$0xf0]  ;;  %v6109_v19 = vld [vmem:[#allocation10 + $0xfc] sm:$0xf0] }
  0xb1   : > { %1543 = vmatpush.bf16.msrb.mxu1 %v6172_v29  ;;  %v6140_v1 = vor.u32 %v8157_v0, %v6139_v62  ;;  %v8149_v63 = vld [vmem:[#allocation10 + $0xf4] sm:$0xf]  ;;  %v6239_v29 = vld [vmem:[#allocation10 + $0x1f8] sm:$0xf]  ;;  %v6092_v62 = vor.u32 %v8145_v58, %v6091_v57  ;;  %v6215_v0 = vld [vmem:[#allocation10 + $0x1c8] sm:$0xf] }
  0xb2   : > { %v6112_v22 = vor.u32 %v8149_v63, %v6109_v19  ;;  %v6240_v34 = vor.u32 %v8183_v31, %v6239_v29  ;;  %v6259_v31 = vld [vmem:[#allocation10 + $0x218] sm:$0xf]  ;;  %v6235_v57 = vld [vmem:[#allocation10 + $0x1e8] sm:$0xf]  ;;  %v8181_v58 = vld [vmem:[#allocation10 + $0x1f0] sm:$0xf0] }
  0xb4   : > { %1531 = vmatpush.bf16.msrb.mxu0 %v6064_v3  ;;  %v8153_v3 = vld [vmem:[#allocation10 + $0x110] sm:$0xf0] }
  0xb5   : > { %1544 = vmatpush.bf16.msrb.mxu1 %v6160_v43  ;;  %v6120_v5 = vor.u32 %v8153_v3, %v6119_v2  ;;  %v8144_v43 = vld [vmem:[#allocation10 + $0xc8] sm:$0xf0]  ;;  %v966_v3 = vmul.f32 %v354_v50, %v9205_v38 }
  0xb7   : > { %1508 = vmatpush.bf16.msra.mxu2 %v6120_v5  ;;  %v8185_v5 = vld [vmem:[#allocation10 + $0x214] sm:$0xf] }
  0xb8   : > { %1532 = vmatpush.bf16.msrb.mxu0 %v6052_v6  ;;  %v8189_v6 = vld [vmem:[#allocation10 + $0x230] sm:$0xf0] }
  0xb9   : > { %1545 = vmatpush.bf16.msrb.mxu1 %v6148_v52  ;;  %v6088_v52 = vor.u32 %v8143_v48, %v6085_v49  ;;  %v6247_v48 = vld [vmem:[#allocation10 + $0x200] sm:$0xf]  ;;  %v8184_v49 = vld [vmem:[#allocation10 + $0x208] sm:$0xf0] }
  0xbc   : > { %1533 = vmatpush.bf16.msrb.mxu0 %v6040_v9  ;;  %v6264_v9 = vor.u32 %v8189_v6, %v6263_v4  ;;  %v6253_v6 = vld [vmem:[#allocation10 + $0x21c] sm:$0xf0] }
  0xbd   : > { %1546 = vmatpush.bf16.msrb.mxu1 %v6136_v61  ;;  %v6256_v7 = vor.u32 %v8185_v5, %v6253_v6  ;;  %v6236_v6 = vor.u32 %v8181_v58, %v6235_v57 }
  0xbe   : > { %1517 = vmatpush.bf16.msra.mxu3 %v6264_v9  ;;  %v980_v9 = vstv %s9209_s26  ;;  %s3581_s26 = sadd.s32 5, %s9202_s27 }
  0xbf   : > { %vm9216_vm0 = vcmp.eq.s32.totalorder %v980_v9, 1  ;;  %v6223_v9 = vld [vmem:[#allocation10 + $0x1d0] sm:$0xf]  ;;  %p9580_p12 = scmp.lt.s32.totalorder %s3581_s26, 12 }
  0xc0   : > { %1534 = vmatpush.bf16.msrb.mxu0 %v6028_v12  ;;  %v8154_v12 = vld [vmem:[#allocation10 + $0x118] sm:$0xf0] }
  0xc1   : > { %1547 = vmatpush.bf16.msrb.mxu1 %v6124_v10  ;;  %v6128_v13 = vor.u32 %v8154_v12, %v6127_v11  ;;  %v6203_v11 = vld [vmem:[#allocation10 + $0x1b0] sm:$0xf]  ;;  %v8174_v12 = vld [vmem:[#allocation10 + $0x1b8] sm:$0xf0]  ;;  %s4208_s11 = scalar_select %p9580_p12, 1, 0 }
  0xc2   : > { %1518 = vmatpush.bf16.msra.mxu3 %v6252_v21 }
  0xc4   : > { %1535 = vmatpush.bf16.msrb.mxu0 %v6016_v15  ;;  %v8150_v15 = vld [vmem:[#allocation10 + $0xf8] sm:$0xf0] }
  0xc5   : > { %v6108_v17 = vor.u32 %v8150_v15, %v6107_v14  ;;  %1548 = vmatpush.bf16.msrb.mxu1 %v6112_v22  ;;  %v6204_v14 = vor.u32 %v8174_v12, %v6203_v11  ;;  %v8182_v15 = vld [vmem:[#allocation10 + $0x1fc] sm:$0xf] }
  0xc6   : > { %1519 = vmatpush.bf16.msra.mxu3 %v6240_v34  ;;  %v6244_v18 = vor.u32 %v8182_v15, %v6241_v16  ;;  %v8190_v22 = vld [vmem:[#allocation10 + $0x238] sm:$0xf0]  ;;  %v8167_v15 = vld [vmem:[#allocation10 + $0x184] sm:$0xf]  ;;  %v6043_v16 = vld [vmem:[#allocation10 + $0x68] sm:$0xf] }
  0xc7   : > { %1509 = vmatpush.bf16.msra.mxu2 %v6108_v17  ;;  %v8178_v11 = vld [vmem:[#allocation10 + $0x1d8] sm:$0xf0]  ;;  %v6341_v17 = vld [vmem:[#allocation10 + $0x78] sm:$0xf] }
  0xc8   : > { %1536 = vmatpush.bf16.msrb.mxu0 %v6004_v20 }
  0xca   : > { %1520 = vmatpush.bf16.msra.mxu3 %v6228_v51  ;;  %v6205_v51 = vld [vmem:[#allocation10 + $0x1bc] sm:$0xf0] }
  0xcb   : > { %1510 = vmatpush.bf16.msra.mxu2 %v6096_v30 }
  0xcc   : > { %1537 = vmatpush.bf16.msrb.mxu0 %v5992_v32  ;;  %v8146_v32 = vld [vmem:[#allocation10 + $0xdc] sm:$0xf] }
  0xd0   : > { %1582 = vmatpush.bf16.msra.mxu0 %v6176_v35  ;;  %v6100_v35 = vor.u32 %v8146_v32, %v6097_v33  ;;  %v6232_v32 = vor.u32 %v8179_v27, %v6229_v28 }
  0xd2   : > { %1549 = vmatpush.bf16.msrb.mxu1 %v6100_v35  ;;  %v8187_v35 = vld [vmem:[#allocation10 + $0x220] sm:$0xf0] }
  0xd4   : > { %1583 = vmatpush.bf16.msra.mxu0 %v6164_v46  ;;  %v6084_v46 = vor.u32 %v8144_v43, %v6083_v42  ;;  %v8176_v42 = vld [vmem:[#allocation10 + $0x1cc] sm:$0xf]  ;;  %v6217_v43 = vld [vmem:[#allocation10 + $0x1d4] sm:$0xf0] }
  0xd6   : > { %1511 = vmatpush.bf16.msra.mxu2 %v6084_v46  ;;  %1550 = vmatpush.bf16.msrb.mxu1 %v6088_v52  ;;  %v6220_v46 = vor.u32 %v8176_v42, %v6217_v43  ;;  %v6067_v52 = vld [vmem:[#allocation10 + $0x98] sm:$0xf]  ;;  %v8127_v43 = vld [vmem:[#allocation10 + $0x40] sm:$0xf0] }
  0xd7   : > { %v6019_v42 = vld [vmem:[#allocation10 + $0x38] sm:$0xf] }
  0xd8   : > { %1584 = vmatpush.bf16.msra.mxu0 %v6152_v56 }
  0xda   : > { %1556 = vmatpush.bf16.msrb.mxu2 %v6268_v55  ;;  %v6248_v55 = vor.u32 %v8184_v49, %v6247_v48  ;;  %v6007_v48 = vld [vmem:[#allocation10 + $0x20] sm:$0xf]  ;;  %v8124_v49 = vld [vmem:[#allocation10 + $0x28] sm:$0xf0] }
  0xdc   : > { %1585 = vmatpush.bf16.msra.mxu0 %v6140_v1  ;;  %v8177_v1 = vld [vmem:[#allocation10 + $0x1d0] sm:$0xf0] }
  0xdd   : > { %v6216_v4 = vor.u32 %v8177_v1, %v6215_v0  ;;  %v8170_v1 = vld [vmem:[#allocation10 + $0x19c] sm:$0xf] }
  0xde   : > { %1557 = vmatpush.bf16.msrb.mxu2 %v6256_v7  ;;  %v8136_v7 = vld [vmem:[#allocation10 + $0x88] sm:$0xf0] }
  0xdf   : > { %1521 = vmatpush.bf16.msra.mxu3 %v6216_v4  ;;  %v361_v4 = vld [vmem:[%s9160_s9 + $0x8] sm:$0xff] }
  0xe0   : > { %1586 = vmatpush.bf16.msra.mxu0 %v6128_v13 }
  0xe2   : > { %1558 = vmatpush.bf16.msrb.mxu2 %v6244_v18  ;;  %v6224_v18 = vor.u32 %v8178_v11, %v6223_v9  ;;  %v8727_v9 = vld [vmem:[#allocation3 + $0x10] sm:$0xff] }
  0xe3   : > { %1522 = vmatpush.bf16.msra.mxu3 %v6204_v14 }
  0xe4   : > { %1587 = vmatpush.bf16.msra.mxu0 %v6116_v26  ;;  %v6192_v26 = vor.u32 %v8171_v24, %v6191_v23  ;;  %v6211_v24 = vld [vmem:[#allocation10 + $0x1b8] sm:$0xf] }
  0xe6   : > { %1559 = vmatpush.bf16.msrb.mxu2 %v6232_v32  ;;  %v8130_v32 = vld [vmem:[#allocation10 + $0x58] sm:$0xf0] }
  0xe7   : > { %1523 = vmatpush.bf16.msra.mxu3 %v6192_v26 }
  0xe8   : > { %1588 = vmatpush.bf16.msra.mxu0 %v6104_v39  ;;  %v6180_v39 = vor.u32 %v8168_v37, %v6179_v36  ;;  %v6199_v36 = vld [vmem:[#allocation10 + $0x1a0] sm:$0xf] }
  0xea   : > { %1560 = vmatpush.bf16.msrb.mxu2 %v6220_v46  ;;  %v6020_v46 = vor.u32 %v8127_v43, %v6019_v42  ;;  %v8234_v42 = vld [vmem:[#allocation10 + $0x158] sm:$0xf0] }
  0xeb   : > { %1524 = vmatpush.bf16.msra.mxu3 %v6180_v39  ;;  %v8172_v39 = vld [vmem:[#allocation10 + $0x1a8] sm:$0xf0] }
  0xec   : > { %v855_v20 = vpop.f32.mrf.mxu0  ;;  %1589 = vmatpush.bf16.msra.mxu0 %v6092_v62 }
  0xed   : > { %v868_v25 = vpop.f32.mrf.mxu1 }
  0xee   : > { %v869_v45 = vadd.f32 %v868_v25, %v855_v20  ;;  %v6271_v20 = vld [vmem:[#allocation10 + $0x230] sm:$0xf] }
  0xef   : > { %v6272_v30 = vor.u32 %v8190_v22, %v6271_v20 }
  0xf4   : > { %v857_v56 = vpop.f32.mrf.mxu0 }
  0xf5   : > { %v881_v60 = vpop.f32.mrf.mxu2  ;;  %v870_v61 = vpop.f32.mrf.mxu1  ;;  %v355_v56 = vld [vmem:[#allocation2] sm:$0xff] }
  0xf6   : > { %v882_v2 = vadd.f32 %v881_v60, %v869_v45  ;;  %v6260_v45 = vor.u32 %v8187_v35, %v6259_v31  ;;  %v6068_v60 = vor.u32 %v8139_v54, %v6067_v52  ;;  %v967_v5 = vmul.f32 %v355_v56, %v9236_v53  ;;  %v6031_v31 = vld [vmem:[#allocation10 + $0x50] sm:$0xf] }
  0xf7   : > { %v9214_v10 = vpop.f32.mrf.mxu3  ;;  %v6032_v37 = vor.u32 %v8130_v32, %v6031_v31  ;;  %v6317_v31 = vld [vmem:[#allocation10 + $0x48] sm:$0xf]  ;;  %v8201_v32 = vld [vmem:[#allocation10 + $0x50] sm:$0xf0] }
  0xf8   : > { %v963_v8 = vadd.f32 %v882_v2, %v360_v59  ;;  %v6193_v2 = vld [vmem:[#allocation10 + $0x1a4] sm:$0xf0] }
  0xf9   : > { %v6196_v12 = vor.u32 %v8170_v1, %v6193_v2 }
  0xfa   : > { %v969_v13 = vadd.f32 %v966_v3, %v963_v8  ;;  %v6055_v3 = vld [vmem:[#allocation10 + $0x80] sm:$0xf] }
  0xfc   : > { %v972_v63 = vmul.f32 0.01, %v969_v13  ;;  %v9222_v19 = vsel %vm9216_vm0, %v969_v13, %v354_v50  ;;  %v8173_v50 = vld [vmem:[#allocation10 + $0x1b4] sm:$0xf] }
  0xfd   : > { %v883_v21 = vpop.f32.mrf.mxu2  ;;  %v6208_v59 = vor.u32 %v8173_v50, %v6205_v51  ;;  %v6187_v50 = vld [vmem:[#allocation10 + $0x188] sm:$0xf]  ;;  %v8169_v51 = vld [vmem:[#allocation10 + $0x190] sm:$0xf0] }
  0xfe   : > { %v975_v25 = vmax.f32 %v969_v13, %v972_v63  ;;  %v6056_v13 = vor.u32 %v8136_v7, %v6055_v3  ;;  %v8133_v63 = vld [vmem:[#allocation10 + $0x70] sm:$0xf0]  ;;  %v6188_v54 = vor.u32 %v8169_v51, %v6187_v50 }
  0xff   : > { %v896_v34 = vpop.f32.mrf.mxu3  ;;  %1561 = vmatpush.bf16.msrb.mxu2 %v6208_v59  ;;  %v6044_v22 = vor.u32 %v8133_v63, %v6043_v16  ;;  %v8210_v16 = vld [vmem:[#allocation10 + $0x98] sm:$0xf0]  ;;  %v8207_v63 = vld [vmem:[#allocation10 + $0x80] sm:$0xf0] }
 0x100   : > { %v9227_v29 = vsel %vm9216_vm0, %v975_v25, %v9178_v40  ;;  %994 = vst [vmem:[%s9174_s8] sm:$0xff] %v975_v25  ;;  %v8142_v40 = vld [vmem:[#allocation10 + $0xb8] sm:$0xf0]  ;;  %v8175_v25 = vld [vmem:[#allocation10 + $0x1c0] sm:$0xf0] }
 0x101   : > { %v9232_v33 = vpack.c.bf16 %v9227_v29, %v9227_v29  ;;  %v6080_v47 = vor.u32 %v8142_v40, %v6079_v44  ;;  %v6212_v35 = vor.u32 %v8175_v25, %v6211_v24  ;;  %v8212_v24 = vld [vmem:[#allocation10 + $0xac] sm:$0xf]  ;;  %v6367_v25 = vld [vmem:[#allocation10 + $0xb4] sm:$0xf0] }
 0x103   : > { %1499 = vmatmul.bf16.vlgmr.msra.gmra.mxu1 %v9232_v33  ;;  %1538 = vmatmul.bf16.vlgmr.msrb.gmra.mxu0 %v9232_v33 }
 0x104   : > { %1595 = vmatpush.bf16.msra.mxu1 %v6272_v30  ;;  %1569 = vmatpush.bf16.msrb.mxu3 %v6080_v47  ;;  %v6200_v47 = vor.u32 %v8172_v39, %v6199_v36  ;;  %v6355_v36 = vld [vmem:[#allocation10 + $0x9c] sm:$0xf0]  ;;  %v6449_v39 = vld [vmem:[#allocation10 + $0x150] sm:$0xf] }
 0x105   : > { %1562 = vmatpush.bf16.msrb.mxu2 %v6196_v12  ;;  %v6450_v43 = vor.u32 %v8234_v42, %v6449_v39  ;;  %v6439_v42 = vld [vmem:[#allocation10 + $0x144] sm:$0xf0] }
 0x108   : > { %1596 = vmatpush.bf16.msra.mxu1 %v6260_v45  ;;  %1570 = vmatpush.bf16.msrb.mxu3 %v6068_v60  ;;  %v9253_v60 = vld [vmem:[#allocation12 + $0x10] sm:$0xff] }
 0x10c   : > { %v907_v61 = vpop.f32.mrf.mxu0  ;;  %1597 = vmatpush.bf16.msra.mxu1 %v6248_v55  ;;  %1571 = vmatpush.bf16.msrb.mxu3 %v6056_v13  ;;  %v8121_v55 = vld [vmem:[#allocation10 + $0x10] sm:$0xf0]  ;;  %v6365_v13 = vld [vmem:[#allocation10 + $0xa8] sm:$0xf] }
 0x10d   : > { %v908_v62 = vadd.f32 %v907_v61, %v9214_v10  ;;  %v920_v0 = vpop.f32.mrf.mxu1  ;;  %v6181_v10 = vld [vmem:[#allocation10 + $0x18c] sm:$0xf0]  ;;  %v356_v61 = vld [vmem:[#allocation2 + $0x8] sm:$0xff] }
 0x10e   : > { %v6184_v21 = vor.u32 %v8167_v15, %v6181_v10  ;;  %v968_v2 = vmul.f32 %v356_v61, %v9253_v60  ;;  %v6353_v10 = vld [vmem:[#allocation10 + $0x90] sm:$0xf] }
 0x10f   : > { %v921_v8 = vadd.f32 %v920_v0, %v908_v62  ;;  %v362_v62 = vld [vmem:[%s9160_s9 + $0x10] sm:$0xff] }
 0x110   : > { %1598 = vmatpush.bf16.msra.mxu1 %v6236_v6  ;;  %1572 = vmatpush.bf16.msrb.mxu3 %v6044_v22  ;;  %v8204_v22 = vld [vmem:[#allocation10 + $0x68] sm:$0xf0] }
 0x111   : > { %v964_v14 = vadd.f32 %v921_v8, %v361_v4  ;;  %1563 = vmatpush.bf16.msrb.mxu2 %v6184_v21  ;;  %v6329_v21 = vld [vmem:[#allocation10 + $0x60] sm:$0xf] }
 0x113   : > { %v970_v20 = vadd.f32 %v967_v5, %v964_v14  ;;  %v8213_v14 = vld [vmem:[#allocation10 + $0xb0] sm:$0xf0] }
 0x114   : > { %v909_v23 = vpop.f32.mrf.mxu0  ;;  %1599 = vmatpush.bf16.msra.mxu1 %v6224_v18  ;;  %1573 = vmatpush.bf16.msrb.mxu3 %v6032_v37  ;;  %v6366_v15 = vor.u32 %v8213_v14, %v6365_v13  ;;  %v6354_v18 = vor.u32 %v8210_v16, %v6353_v10  ;;  %v6463_v14 = vld [vmem:[#allocation10 + $0x174] sm:$0xf0]  ;;  %v6413_v10 = vld [vmem:[#allocation10 + $0x108] sm:$0xf]  ;;  %v8225_v16 = vld [vmem:[#allocation10 + $0x110] sm:$0xf0] }
 0x115   : > { %v973_v26 = vmul.f32 0.01, %v970_v20  ;;  %v9243_v27 = vsel %vm9216_vm0, %v970_v20, %v355_v56  ;;  %v922_v28 = vpop.f32.mrf.mxu1  ;;  %v933_v30 = vpop.f32.mrf.mxu2  ;;  %v5995_v56 = vld [vmem:[#allocation10 + $0x8] sm:$0xf]  ;;  %v6330_v23 = vor.u32 %v8204_v22, %v6329_v21  ;;  %v8197_v21 = vld [vmem:[#allocation10 + $0x34] sm:$0xf] }
 0x116   : > { %v5996_v58 = vor.u32 %v8121_v55, %v5995_v56  ;;  %v8237_v28 = vld [vmem:[#allocation10 + $0x170] sm:$0xf0]  ;;  %v6293_v56 = vld [vmem:[#allocation10 + $0x18] sm:$0xf]  ;;  %v8195_v55 = vld [vmem:[#allocation10 + $0x20] sm:$0xf0] }
 0x117   : > { %v976_v34 = vmax.f32 %v970_v20, %v973_v26  ;;  %v946_v40 = vpop.f32.mrf.mxu3  ;;  %v6342_v20 = vor.u32 %v8207_v63, %v6341_v17  ;;  %v6370_v26 = vor.u32 %v8212_v24, %v6367_v25  ;;  %v6414_v17 = vor.u32 %v8225_v16, %v6413_v10  ;;  %v8261_v63 = vld [vmem:[#allocation10 + $0x230] sm:$0xf0]  ;;  %v6307_v22 = vld [vmem:[#allocation10 + $0x3c] sm:$0xf0]  ;;  %v6457_v10 = vld [vmem:[#allocation10 + $0x158] sm:$0xf] }
 0x118   : > { %1600 = vmatpush.bf16.msra.mxu1 %v6212_v35  ;;  %1574 = vmatpush.bf16.msrb.mxu3 %v6020_v46  ;;  %v947_v59 = vadd.f32 %v946_v40, %v933_v30  ;;  %v8209_v35 = vld [vmem:[#allocation10 + $0x94] sm:$0xf]  ;;  %v6305_v40 = vld [vmem:[#allocation10 + $0x30] sm:$0xf]  ;;  %v6310_v24 = vor.u32 %v8197_v21, %v6307_v22  ;;  %v6451_v25 = vld [vmem:[#allocation10 + $0x15c] sm:$0xf0] }
 0x119   : > { %v9248_v44 = vsel %vm9216_vm0, %v976_v34, %v9180_v41  ;;  %995 = vst [vmem:[%s9174_s8 + $0x8] sm:$0xff] %v976_v34  ;;  %v6008_v41 = vor.u32 %v8124_v49, %v6007_v48  ;;  %v6318_v34 = vor.u32 %v8201_v32, %v6317_v31  ;;  %v6358_v37 = vor.u32 %v8209_v35, %v6355_v36  ;;  %v6343_v48 = vld [vmem:[#allocation10 + $0x84] sm:$0xf0]  ;;  %v8258_v32 = vld [vmem:[#allocation10 + $0x218] sm:$0xf0] }
 0x11a   : > { %v1009_v45 = vpack.c.bf16 %v9248_v44, %v9248_v44  ;;  %v8194_v35 = vld [vmem:[#allocation10 + $0x1c] sm:$0xf]  ;;  %v6295_v36 = vld [vmem:[#allocation10 + $0x24] sm:$0xf0]  ;;  %v8235_v16 = vld [vmem:[#allocation10 + $0x160] sm:$0xf0] }
 0x11b   : > { %v6298_v39 = vor.u32 %v8194_v35, %v6295_v36  ;;  %v8257_v21 = vld [vmem:[#allocation10 + $0x214] sm:$0xf]  ;;  %v6547_v22 = vld [vmem:[#allocation10 + $0x21c] sm:$0xf0] }
 0x11c   : > { %1512 = vmatmul.bf16.vlgmr.msra.gmra.mxu2 %v1009_v45  ;;  %1551 = vmatmul.bf16.vlgmr.msrb.gmra.mxu1 %v1009_v45 }
 0x11d   : > { %1590 = vmatmul.bf16.vlgmr.msra.gmra.mxu0 %v1009_v45  ;;  %v935_v52 = vpop.f32.mrf.mxu2  ;;  %1601 = vmatpush.bf16.msra.mxu1 %v6200_v47  ;;  %v8198_v45 = vld [vmem:[#allocation10 + $0x38] sm:$0xf0] }
 0x11e   : > { %1575 = vmatpush.bf16.msrb.mxu3 %v6008_v41  ;;  %2137 = vmatpush.bf16.msra.mxu2 %v6366_v15  ;;  %v6306_v46 = vor.u32 %v8198_v45, %v6305_v40  ;;  %v8206_v47 = vld [vmem:[#allocation10 + $0x7c] sm:$0xf]  ;;  %v6437_v52 = vld [vmem:[#allocation10 + $0x138] sm:$0xf]  ;;  %v8231_v41 = vld [vmem:[#allocation10 + $0x140] sm:$0xf0] }
 0x11f   : > { %v948_v57 = vpop.f32.mrf.mxu3  ;;  %v6346_v51 = vor.u32 %v8206_v47, %v6343_v48  ;;  %v6389_v40 = vld [vmem:[#allocation10 + $0xd8] sm:$0xf]  ;;  %v8219_v45 = vld [vmem:[#allocation10 + $0xe0] sm:$0xf0] }
 0x120   : > { %v6294_v57 = vor.u32 %v8195_v55, %v6293_v56  ;;  %v6390_v47 = vor.u32 %v8219_v45, %v6389_v40  ;;  %v8255_v48 = vld [vmem:[#allocation10 + $0x200] sm:$0xf0]  ;;  %v6427_v55 = vld [vmem:[#allocation10 + $0x12c] sm:$0xf0]  ;;  %v8218_v40 = vld [vmem:[#allocation10 + $0xdc] sm:$0xf] }
 0x121   : > { %1602 = vmatpush.bf16.msra.mxu1 %v6188_v54  ;;  %v6438_v54 = vor.u32 %v8231_v41, %v6437_v52  ;;  %v8191_v52 = vld [vmem:[#allocation10 + $0x4] sm:$0xf]  ;;  %v6283_v41 = vld [vmem:[#allocation10 + $0xc] sm:$0xf0]  ;;  %v6391_v45 = vld [vmem:[#allocation10 + $0xe4] sm:$0xf0] }
 0x122   : > { %1576 = vmatpush.bf16.msrb.mxu3 %v5996_v58  ;;  %2138 = vmatpush.bf16.msra.mxu2 %v6354_v18  ;;  %v8203_v58 = vld [vmem:[#allocation10 + $0x64] sm:$0xf]  ;;  %v6557_v18 = vld [vmem:[#allocation10 + $0x228] sm:$0xf]  ;;  %v6286_v56 = vor.u32 %v8191_v52, %v6283_v41  ;;  %v6485_v52 = vld [vmem:[#allocation10 + $0x198] sm:$0xf] }
 0x123   : > { %v8243_v41 = vld [vmem:[#allocation10 + $0x1a0] sm:$0xf0] }
 0x125   : > { %2176 = vmatpush.bf16.msrb.mxu1 %v6370_v26 }
 0x126   : > { %2139 = vmatpush.bf16.msra.mxu2 %v6342_v20  ;;  %v6558_v20 = vor.u32 %v8261_v63, %v6557_v18  ;;  %v6458_v18 = vor.u32 %v8235_v16, %v6457_v10  ;;  %v8249_v63 = vld [vmem:[#allocation10 + $0x1d0] sm:$0xf0]  ;;  %v6409_v16 = vld [vmem:[#allocation10 + $0xf8] sm:$0xf] }
 0x128   : > { %2163 = vmatpush.bf16.msrb.mxu0 %v6558_v20 }
 0x129   : > { %2177 = vmatpush.bf16.msrb.mxu1 %v6358_v37  ;;  %v8230_v37 = vld [vmem:[#allocation10 + $0x13c] sm:$0xf] }
 0x12a   : > { %2140 = vmatpush.bf16.msra.mxu2 %v6330_v23  ;;  %v8233_v23 = vld [vmem:[#allocation10 + $0x154] sm:$0xf] }
 0x12b   : > { %v6454_v26 = vor.u32 %v8233_v23, %v6451_v25  ;;  %v6550_v23 = vor.u32 %v8257_v21, %v6547_v22  ;;  %v6403_v25 = vld [vmem:[#allocation10 + $0xfc] sm:$0xf0]  ;;  %v6361_v21 = vld [vmem:[#allocation10 + $0x98] sm:$0xf] }
 0x12c   : > { %v959_v0 = vpop.f32.mrf.mxu0 }
 0x12d   : > { %v960_v1 = vadd.f32 %v959_v0, %v947_v59  ;;  %2178 = vmatpush.bf16.msrb.mxu1 %v6346_v51  ;;  %v6331_v59 = vld [vmem:[#allocation10 + $0x6c] sm:$0xf0]  ;;  %v8228_v0 = vld [vmem:[#allocation10 + $0x128] sm:$0xf0] }
 0x12e   : > { %2141 = vmatpush.bf16.msra.mxu2 %v6318_v34 }
 0x12f   : > { %v965_v3 = vadd.f32 %v960_v1, %v362_v62  ;;  %v6425_v62 = vld [vmem:[#allocation10 + $0x120] sm:$0xf] }
 0x130   : > { %v6281_v1 = vld [vmem:[#allocation10] sm:$0xf] }
 0x131   : > { %v971_v4 = vadd.f32 %v968_v2, %v965_v3  ;;  %v6426_v2 = vor.u32 %v8228_v0, %v6425_v62  ;;  %v8192_v3 = vld [vmem:[#allocation10 + $0x8] sm:$0xf0]  ;;  %v6377_v62 = vld [vmem:[#allocation10 + $0xc0] sm:$0xf] }
 0x132   : > { %2142 = vmatpush.bf16.msra.mxu2 %v6306_v46  ;;  %v6533_v46 = vld [vmem:[#allocation10 + $0x1f8] sm:$0xf]  ;;  %v8216_v0 = vld [vmem:[#allocation10 + $0xc8] sm:$0xf0] }
 0x133   : > { %v974_v5 = vmul.f32 0.01, %v971_v4  ;;  %v9259_v6 = vsel %vm9216_vm0, %v971_v4, %v356_v61  ;;  %v6334_v61 = vor.u32 %v8203_v58, %v6331_v59  ;;  %v6534_v51 = vor.u32 %v8255_v48, %v6533_v46  ;;  %v8238_v58 = vld [vmem:[#allocation10 + $0x178] sm:$0xf0]  ;;  %v8229_v48 = vld [vmem:[#allocation10 + $0x130] sm:$0xf0] }
 0x134   : > { %v961_v7 = vpop.f32.mrf.mxu0  ;;  %v6394_v46 = vor.u32 %v8218_v40, %v6391_v45  ;;  %v8239_v40 = vld [vmem:[#allocation10 + $0x184] sm:$0xf]  ;;  %v6475_v45 = vld [vmem:[#allocation10 + $0x18c] sm:$0xf0] }
 0x135   : > { %v977_v8 = vmax.f32 %v971_v4, %v974_v5  ;;  %2179 = vmatpush.bf16.msrb.mxu1 %v6334_v61  ;;  %v6282_v4 = vor.u32 %v8192_v3, %v6281_v1  ;;  %v8200_v5 = vld [vmem:[#allocation10 + $0x4c] sm:$0xf]  ;;  %v6319_v7 = vld [vmem:[#allocation10 + $0x54] sm:$0xf0]  ;;  %v6521_v1 = vld [vmem:[#allocation10 + $0x1e0] sm:$0xf]  ;;  %v6378_v3 = vor.u32 %v8216_v0, %v6377_v62 }
 0x136   : > { %2143 = vmatpush.bf16.msra.mxu2 %v6294_v57  ;;  %v6322_v13 = vor.u32 %v8200_v5, %v6319_v7  ;;  %v6469_v57 = vld [vmem:[#allocation10 + $0x170] sm:$0xf]  ;;  %v8260_v5 = vld [vmem:[#allocation10 + $0x22c] sm:$0xf]  ;;  %v6559_v7 = vld [vmem:[#allocation10 + $0x234] sm:$0xf0] }
 0x137   : > { %v9263_v11 = vsel %vm9216_vm0, %v977_v8, %v8727_v9  ;;  %996 = vst [vmem:[%s9174_s8 + $0x10] sm:$0xff] %v977_v8  ;;  %v8236_v8 = vld [vmem:[#allocation10 + $0x16c] sm:$0xf]  ;;  %v6470_v61 = vor.u32 %v8238_v58, %v6469_v57  ;;  %v8215_v58 = vld [vmem:[#allocation10 + $0xc4] sm:$0xf] }
 0x138   : > { %v1010_v12 = vpack.c.bf16 %v9263_v11, %v9263_v11  ;;  %v6466_v15 = vor.u32 %v8236_v8, %v6463_v14  ;;  %v6415_v14 = vld [vmem:[#allocation10 + $0x114] sm:$0xf0]  ;;  %v6421_v0 = vld [vmem:[#allocation10 + $0x110] sm:$0xf] }
 0x139   : > { %2180 = vmatpush.bf16.msrb.mxu1 %v6322_v13  ;;  %v8224_v13 = vld [vmem:[#allocation10 + $0x10c] sm:$0xf] }
 0x13a   : > { %1525 = vmatmul.bf16.vlgmr.msra.gmra.mxu3 %v1010_v12  ;;  %1564 = vmatmul.bf16.vlgmr.msrb.gmra.mxu2 %v1010_v12 }
 0x13b   : > { %1603 = vmatmul.bf16.vlgmr.msra.gmra.mxu1 %v1010_v12  ;;  %2144 = vmatpush.bf16.msra.mxu2 %v6282_v4  ;;  %v8252_v4 = vld [vmem:[#allocation10 + $0x1e8] sm:$0xf0] }
 0x13d   : > { %2181 = vmatpush.bf16.msrb.mxu1 %v6310_v24  ;;  %v8221_v24 = vld [vmem:[#allocation10 + $0xf4] sm:$0xf] }
 0x13f   : > { %2189 = vmatpush.bf16.msrb.mxu2 %v6466_v15  ;;  %v6418_v15 = vor.u32 %v8224_v13, %v6415_v14  ;;  %v6373_v13 = vld [vmem:[#allocation10 + $0xb0] sm:$0xf] }
 0x141   : > { %2182 = vmatpush.bf16.msrb.mxu1 %v6298_v39  ;;  %v6535_v39 = vld [vmem:[#allocation10 + $0x204] sm:$0xf0] }
 0x143   : > { %2190 = vmatpush.bf16.msrb.mxu2 %v6454_v26 }
 0x145   : > { %2183 = vmatpush.bf16.msrb.mxu1 %v6286_v56  ;;  %v8251_v56 = vld [vmem:[#allocation10 + $0x1e4] sm:$0xf] }
 0x149   : > { %2228 = vmatpush.bf16.msra.mxu1 %v6470_v61 }
 0x14a   : > { %1577 = vmatmul.bf16.vlgmr.msrb.gmra.mxu3 %v9232_v33  ;;  %v6461_v33 = vld [vmem:[#allocation10 + $0x168] sm:$0xf] }
 0x14b   : > { %v6462_v30 = vor.u32 %v8237_v28, %v6461_v33  ;;  %v6401_v33 = vld [vmem:[#allocation10 + $0xf0] sm:$0xf]  ;;  %v8222_v28 = vld [vmem:[#allocation10 + $0xf8] sm:$0xf0] }
 0x14c   : > { %v6402_v31 = vor.u32 %v8222_v28, %v6401_v33  ;;  %v6406_v33 = vor.u32 %v8221_v24, %v6403_v25  ;;  %v6445_v28 = vld [vmem:[#allocation10 + $0x140] sm:$0xf] }
 0x14d   : > { %2150 = vmatpush.bf16.msra.mxu3 %v6462_v30  ;;  %v6545_v30 = vld [vmem:[#allocation10 + $0x210] sm:$0xf]  ;;  %2229 = vmatpush.bf16.msra.mxu1 %v6458_v18  ;;  %v8223_v18 = vld [vmem:[#allocation10 + $0x100] sm:$0xf0]  ;;  %v6397_v25 = vld [vmem:[#allocation10 + $0xe0] sm:$0xf] }
 0x14e   : > { %v6546_v34 = vor.u32 %v8258_v32, %v6545_v30  ;;  %v8232_v30 = vld [vmem:[#allocation10 + $0x148] sm:$0xf0]  ;;  %v6497_v32 = vld [vmem:[#allocation10 + $0x1b0] sm:$0xf] }
 0x150   : > { %2164 = vmatpush.bf16.msrb.mxu0 %v6546_v34  ;;  %v8246_v34 = vld [vmem:[#allocation10 + $0x1b8] sm:$0xf0] }
 0x151   : > { %2151 = vmatpush.bf16.msra.mxu3 %v6450_v43  ;;  %v6442_v43 = vor.u32 %v8230_v37, %v6439_v42  ;;  %v6498_v36 = vor.u32 %v8246_v34, %v6497_v32  ;;  %v8254_v37 = vld [vmem:[#allocation10 + $0x1fc] sm:$0xf]  ;;  %v6349_v32 = vld [vmem:[#allocation10 + $0x80] sm:$0xf] }
 0x153   : > { %2191 = vmatpush.bf16.msrb.mxu2 %v6442_v43  ;;  %v6538_v43 = vor.u32 %v8254_v37, %v6535_v39  ;;  %v6385_v37 = vld [vmem:[#allocation10 + $0xc8] sm:$0xf]  ;;  %v8217_v39 = vld [vmem:[#allocation10 + $0xd0] sm:$0xf0] }
 0x154   : > { %2165 = vmatpush.bf16.msrb.mxu0 %v6534_v51 }
 0x155   : > { %2152 = vmatpush.bf16.msra.mxu3 %v6438_v54  ;;  %v8227_v54 = vld [vmem:[#allocation10 + $0x124] sm:$0xf] }
 0x156   : > { %v6430_v59 = vor.u32 %v8227_v54, %v6427_v55  ;;  %v6486_v54 = vor.u32 %v8243_v41, %v6485_v52  ;;  %v6523_v55 = vld [vmem:[#allocation10 + $0x1ec] sm:$0xf0] }
 0x157   : > { %v6526_v57 = vor.u32 %v8251_v56, %v6523_v55  ;;  %v8202_v56 = vld [vmem:[#allocation10 + $0x58] sm:$0xf0]  ;;  %v5982_v55 = vld [vmem:[%s9160_s9 + $0x18] sm:$0xff] }
 0x158   : > { %2192 = vmatpush.bf16.msrb.mxu2 %v6430_v59  ;;  %v6379_v59 = vld [vmem:[#allocation10 + $0xcc] sm:$0xf0] }
 0x159   : > { %2153 = vmatpush.bf16.msra.mxu3 %v6426_v2  ;;  %v6382_v62 = vor.u32 %v8215_v58, %v6379_v59  ;;  %v5983_v58 = vld [vmem:[%s9160_s9 + $0x20] sm:$0xff] }
 0x15c   : > { %2193 = vmatpush.bf16.msrb.mxu2 %v6418_v15  ;;  %v8214_v15 = vld [vmem:[#allocation10 + $0xb8] sm:$0xf0] }
 0x15d   : > { %2154 = vmatpush.bf16.msra.mxu3 %v6414_v17  ;;  %v6509_v17 = vld [vmem:[#allocation10 + $0x1c8] sm:$0xf]  ;;  %v6374_v10 = vor.u32 %v8214_v15, %v6373_v13  ;;  %v6301_v15 = vld [vmem:[#allocation10 + $0x20] sm:$0xf] }
 0x15e   : > { %v6510_v20 = vor.u32 %v8249_v63, %v6509_v17  ;;  %v6410_v17 = vor.u32 %v8223_v18, %v6409_v16  ;;  %v8245_v63 = vld [vmem:[#allocation10 + $0x1b4] sm:$0xf]  ;;  %v6565_v18 = vld [vmem:[#allocation10 + $0x230] sm:$0xf] }
 0x160   : > { %2194 = vmatpush.bf16.msrb.mxu2 %v6406_v33  ;;  %v8220_v33 = vld [vmem:[#allocation10 + $0xe8] sm:$0xf0] }
 0x161   : > { %2155 = vmatpush.bf16.msra.mxu3 %v6402_v31  ;;  %v6446_v31 = vor.u32 %v8232_v30, %v6445_v28  ;;  %v6398_v28 = vor.u32 %v8220_v33, %v6397_v25  ;;  %v8242_v30 = vld [vmem:[#allocation10 + $0x19c] sm:$0xf]  ;;  %v8193_v25 = vld [vmem:[#allocation10 + $0x10] sm:$0xf0] }
 0x163   : > { %2230 = vmatpush.bf16.msra.mxu1 %v6446_v31  ;;  %v6487_v31 = vld [vmem:[#allocation10 + $0x1a4] sm:$0xf0] }
 0x164   : > { %2195 = vmatpush.bf16.msrb.mxu2 %v6394_v46  ;;  %v6490_v34 = vor.u32 %v8242_v30, %v6487_v31  ;;  %v6337_v46 = vld [vmem:[#allocation10 + $0x68] sm:$0xf]  ;;  %v8259_v30 = vld [vmem:[#allocation10 + $0x220] sm:$0xf0] }
 0x165   : > { %2156 = vmatpush.bf16.msra.mxu3 %v6390_v47  ;;  %v6433_v47 = vld [vmem:[#allocation10 + $0x128] sm:$0xf] }
 0x166   : > { %v6434_v51 = vor.u32 %v8229_v48, %v6433_v47  ;;  %v6478_v47 = vor.u32 %v8239_v40, %v6475_v45  ;;  %v8205_v48 = vld [vmem:[#allocation10 + $0x70] sm:$0xf0]  ;;  %v8282_v45 = vld [vmem:[#allocation10 + $0x98] sm:$0xf0] }
 0x168   : > { %2231 = vmatpush.bf16.msra.mxu1 %v6434_v51  ;;  %2196 = vmatpush.bf16.msrb.mxu2 %v6382_v62  ;;  %v6338_v51 = vor.u32 %v8205_v48, %v6337_v46  ;;  %v5984_v46 = vld [vmem:[%s9160_s9 + $0x28] sm:$0xff] }
 0x169   : > { %2157 = vmatpush.bf16.msra.mxu3 %v6378_v3 }
 0x180   : > { %v9269_v49 = vpop.f32.mrf.mxu1  ;;  %v9271_v50 = vpop.f32.mrf.mxu0 }
 0x188   : > { %v1502_v9 = vpop.f32.mrf.mxu1  ;;  %v1541_v12 = vpop.f32.mrf.mxu0 }
 0x189   : > { %v6522_v9 = vor.u32 %v8252_v4, %v6521_v1  ;;  %v6562_v12 = vor.u32 %v8260_v5, %v6559_v7  ;;  %v8226_v1 = vld [vmem:[#allocation10 + $0x118] sm:$0xf0]  ;;  %v6473_v4 = vld [vmem:[#allocation10 + $0x180] sm:$0xf]  ;;  %v8240_v5 = vld [vmem:[#allocation10 + $0x188] sm:$0xf0] }
 0x18a   : > { %v6422_v3 = vor.u32 %v8226_v1, %v6421_v0  ;;  %v6474_v7 = vor.u32 %v8240_v5, %v6473_v4  ;;  %v9294_v0 = vstv %s1624_s12  ;;  %v1611_v4 = vmul.f32 %v9222_v19, %v9205_v38  ;;  %v8199_v5 = vld [vmem:[#allocation10 + $0x40] sm:$0xf0]  ;;  %s4227_s12 = sadd.s32 6, %s9202_s27 }
 0x18b   : > { %2166 = vmatpush.bf16.msrb.mxu0 %v6522_v9  ;;  %2202 = vmatpush.bf16.msrb.mxu3 %v6562_v12  ;;  %v8248_v9 = vld [vmem:[#allocation10 + $0x1cc] sm:$0xf]  ;;  %v6511_v12 = vld [vmem:[#allocation10 + $0x1d4] sm:$0xf0]  ;;  %vm1626_vm1 = vcmp.eq.s32.totalorder %v9294_v0, 1  ;;  %p9649_p13 = scmp.lt.s32.totalorder %s4227_s12, 12 }
 0x18c   : > { %2232 = vmatpush.bf16.msra.mxu1 %v6422_v3  ;;  %v6514_v14 = vor.u32 %v8248_v9, %v6511_v12  ;;  %v6481_v0 = vld [vmem:[#allocation10 + $0x188] sm:$0xf] }
 0x18d   : > { %s4854_s16 = scalar_select %p9649_p13, 1, 0 }
 0x18f   : > { %2167 = vmatpush.bf16.msrb.mxu0 %v6510_v20  ;;  %2203 = vmatpush.bf16.msrb.mxu3 %v6550_v23  ;;  %v6499_v20 = vld [vmem:[#allocation10 + $0x1bc] sm:$0xf0]  ;;  %v8211_v23 = vld [vmem:[#allocation10 + $0xa0] sm:$0xf0] }
 0x190   : > { %2233 = vmatpush.bf16.msra.mxu1 %v6410_v17  ;;  %v6502_v22 = vor.u32 %v8245_v63, %v6499_v20  ;;  %v6362_v24 = vor.u32 %v8211_v23, %v6361_v21  ;;  %v8262_v17 = vld [vmem:[#allocation10 + $0x238] sm:$0xf0]  ;;  %v8196_v63 = vld [vmem:[#allocation10 + $0x28] sm:$0xf0] }
 0x191   : > { %v6566_v23 = vor.u32 %v8262_v17, %v6565_v18  ;;  %v8284_v18 = vld [vmem:[#allocation10 + $0xac] sm:$0xf]  ;;  %v6661_v17 = vld [vmem:[#allocation10 + $0xb4] sm:$0xf0] }
 0x193   : > { %2168 = vmatpush.bf16.msrb.mxu0 %v6498_v36  ;;  %2204 = vmatpush.bf16.msrb.mxu3 %v6538_v43 }
 0x194   : > { %2234 = vmatpush.bf16.msra.mxu1 %v6398_v28 }
 0x197   : > { %2169 = vmatpush.bf16.msrb.mxu0 %v6486_v54  ;;  %2205 = vmatpush.bf16.msrb.mxu3 %v6526_v57  ;;  %v6325_v54 = vld [vmem:[#allocation10 + $0x50] sm:$0xf] }
 0x199   : > { %v9273_v2 = vpop.f32.mrf.mxu1 }
 0x19a   : > { %v9275_v8 = vpop.f32.mrf.mxu0  ;;  %v1553_v52 = vadd.f32 %v9273_v2, %v9271_v50 }
 0x19b   : > { %2170 = vmatpush.bf16.msrb.mxu0 %v6474_v7  ;;  %2206 = vmatpush.bf16.msrb.mxu3 %v6514_v14 }
 0x19f   : > { %v9277_v26 = vpop.f32.mrf.mxu2  ;;  %2215 = vmatpush.bf16.msra.mxu0 %v6374_v10  ;;  %2207 = vmatpush.bf16.msrb.mxu3 %v6502_v22  ;;  %v6302_v22 = vor.u32 %v8196_v63, %v6301_v15  ;;  %v8244_v15 = vld [vmem:[#allocation10 + $0x1a8] sm:$0xf0] }
 0x1a0   : > { %v1514_v41 = vadd.f32 %v9277_v26, %v9269_v49  ;;  %v1612_v49 = vmul.f32 %v9243_v27, %v9236_v53  ;;  %v6313_v26 = vld [vmem:[#allocation10 + $0x38] sm:$0xf] }
 0x1a1   : > { %v1554_v35 = vpop.f32.mrf.mxu1  ;;  %v6314_v7 = vor.u32 %v8199_v5, %v6313_v26  ;;  %v8247_v26 = vld [vmem:[#allocation10 + $0x1c0] sm:$0xf0] }
 0x1a2   : > { %v1593_v42 = vpop.f32.mrf.mxu0  ;;  %v8208_v35 = vld [vmem:[#allocation10 + $0x88] sm:$0xf0] }
 0x1a3   : > { %2216 = vmatpush.bf16.msra.mxu0 %v6362_v24  ;;  %v6350_v36 = vor.u32 %v8208_v35, %v6349_v32  ;;  %2208 = vmatpush.bf16.msrb.mxu3 %v6490_v34  ;;  %v6386_v42 = vor.u32 %v8217_v39, %v6385_v37  ;;  %v6289_v24 = vld [vmem:[#allocation10 + $0x8] sm:$0xf]  ;;  %v6541_v32 = vld [vmem:[#allocation10 + $0x200] sm:$0xf]  ;;  %v8256_v34 = vld [vmem:[#allocation10 + $0x208] sm:$0xf0] }
 0x1a4   : > { %v6290_v31 = vor.u32 %v8193_v25, %v6289_v24  ;;  %v8285_v37 = vld [vmem:[#allocation10 + $0xb0] sm:$0xf0]  ;;  %v6647_v39 = vld [vmem:[#allocation10 + $0x90] sm:$0xf]  ;;  %v6542_v48 = vor.u32 %v8256_v34, %v6541_v32  ;;  %v6755_v24 = vld [vmem:[#allocation10 + $0x168] sm:$0xf] }
 0x1a5   : > { %2235 = vmatpush.bf16.msra.mxu1 %v6386_v42  ;;  %v8309_v25 = vld [vmem:[#allocation10 + $0x170] sm:$0xf0]  ;;  %v6637_v32 = vld [vmem:[#allocation10 + $0x84] sm:$0xf0] }
 0x1a7   : > { %v1515_v61 = vpop.f32.mrf.mxu2  ;;  %2217 = vmatpush.bf16.msra.mxu0 %v6350_v36  ;;  %2209 = vmatpush.bf16.msrb.mxu3 %v6478_v47  ;;  %v6659_v36 = vld [vmem:[#allocation10 + $0xa8] sm:$0xf] }
 0x1a8   : > { %v6326_v61 = vor.u32 %v8202_v56, %v6325_v54  ;;  %v6660_v40 = vor.u32 %v8285_v37, %v6659_v36  ;;  %v6635_v54 = vld [vmem:[#allocation10 + $0x78] sm:$0xf]  ;;  %v8279_v56 = vld [vmem:[#allocation10 + $0x80] sm:$0xf0]  ;;  %v8306_v36 = vld [vmem:[#allocation10 + $0x158] sm:$0xf0] }
 0x1ab   : > { %2218 = vmatpush.bf16.msra.mxu0 %v6338_v51  ;;  %v6529_v51 = vld [vmem:[#allocation10 + $0x1e8] sm:$0xf] }
 0x1af   : > { %2219 = vmatpush.bf16.msra.mxu0 %v6326_v61 }
 0x1b3   : > { %2220 = vmatpush.bf16.msra.mxu0 %v6314_v7 }
 0x1b7   : > { %2221 = vmatpush.bf16.msra.mxu0 %v6302_v22  ;;  %v6649_v22 = vld [vmem:[#allocation10 + $0x9c] sm:$0xf0] }
 0x1b8   : > { %v9284_v43 = vpop.f32.mrf.mxu1 }
 0x1bb   : > { %2222 = vmatpush.bf16.msra.mxu0 %v6290_v31 }
 0x1bd   : > { %v1526_v57 = vpop.f32.mrf.mxu3  ;;  %v1565_v59 = vpop.f32.mrf.mxu2 }
 0x1be   : > { %v1527_v62 = vadd.f32 %v1526_v57, %v1514_v41  ;;  %v1566_v1 = vadd.f32 %v1565_v59, %v1553_v52  ;;  %v6648_v52 = vor.u32 %v8282_v45, %v6647_v39  ;;  %v8253_v41 = vld [vmem:[#allocation10 + $0x1f0] sm:$0xf0]  ;;  %v1613_v57 = vmul.f32 %v9259_v6, %v9253_v60  ;;  %v8267_v39 = vld [vmem:[#allocation10 + $0x20] sm:$0xf0]  ;;  %v6625_v45 = vld [vmem:[#allocation10 + $0x6c] sm:$0xf0] }
 0x1bf   : > { %v6636_v59 = vor.u32 %v8279_v56, %v6635_v54  ;;  %v8272_v56 = vld [vmem:[#allocation10 + $0x4c] sm:$0xf] }
 0x1c0   : > { %v1608_v3 = vadd.f32 %v5982_v55, %v1527_v62  ;;  %v1609_v50 = vadd.f32 %v5983_v58, %v1566_v1  ;;  %v1606_v2 = vpop.f32.mrf.mxu1  ;;  %v8250_v62 = vld [vmem:[#allocation10 + $0x1d8] sm:$0xf0] }
 0x1c1   : > { %v6505_v2 = vld [vmem:[#allocation10 + $0x1b8] sm:$0xf] }
 0x1c2   : > { %v1614_v9 = vadd.f32 %v1611_v4, %v1608_v3  ;;  %v1615_v12 = vadd.f32 %v1612_v49, %v1609_v50  ;;  %v6623_v4 = vld [vmem:[#allocation10 + $0x60] sm:$0xf]  ;;  %v8276_v50 = vld [vmem:[#allocation10 + $0x68] sm:$0xf0] }
 0x1c3   : > { %v6624_v7 = vor.u32 %v8276_v50, %v6623_v4  ;;  %v8333_v4 = vld [vmem:[#allocation10 + $0x230] sm:$0xf0] }
 0x1c4   : > { %v1617_v13 = vmul.f32 0.01, %v1614_v9  ;;  %v9304_v14 = vsel %vm1626_vm1, %v1614_v9, %v9222_v19  ;;  %v1618_v38 = vmul.f32 0.01, %v1615_v12  ;;  %v9309_v53 = vsel %vm1626_vm1, %v1615_v12, %v9243_v27  ;;  %v8269_v50 = vld [vmem:[#allocation10 + $0x34] sm:$0xf] }
 0x1c5   : > { %v1528_v10 = vpop.f32.mrf.mxu3  ;;  %v1567_v16 = vpop.f32.mrf.mxu2 }
 0x1c6   : > { %v1620_v20 = vmax.f32 %v1614_v9, %v1617_v13  ;;  %v1621_v21 = vmax.f32 %v1615_v12, %v1618_v38  ;;  %v6611_v9 = vld [vmem:[#allocation10 + $0x48] sm:$0xf]  ;;  %v8273_v12 = vld [vmem:[#allocation10 + $0x50] sm:$0xf0]  ;;  %v6506_v13 = vor.u32 %v8247_v26, %v6505_v2  ;;  %v6493_v38 = vld [vmem:[#allocation10 + $0x1a0] sm:$0xf] }
 0x1c7   : > { %v6612_v10 = vor.u32 %v8273_v12, %v6611_v9  ;;  %v8241_v16 = vld [vmem:[#allocation10 + $0x190] sm:$0xf0]  ;;  %v6745_v26 = vld [vmem:[#allocation10 + $0x15c] sm:$0xf0]  ;;  %v6707_v9 = vld [vmem:[#allocation10 + $0x108] sm:$0xf] }
 0x1c8   : > { %v9314_v19 = vsel %vm1626_vm1, %v1620_v20, %v9227_v29  ;;  %6273 = vst [vmem:[%s9174_s8 + $0x18] sm:$0xff] %v1620_v20  ;;  %v9320_v27 = vsel %vm1626_vm1, %v1621_v21, %v9248_v44  ;;  %v6553_v29 = vld [vmem:[#allocation10 + $0x218] sm:$0xf]  ;;  %v6482_v63 = vor.u32 %v8241_v16, %v6481_v0  ;;  %v6664_v20 = vor.u32 %v8284_v18, %v6661_v17  ;;  %v8305_v2 = vld [vmem:[#allocation10 + $0x154] sm:$0xf] }
 0x1c9   : > { %6274 = vst [vmem:[%s9174_s8 + $0x20] sm:$0xff] %v1621_v21  ;;  %v9325_v33 = vpack.c.bf16 %v9314_v19, %v9314_v19  ;;  %v1655_v28 = vpack.c.bf16 %v9320_v27, %v9320_v27  ;;  %v6554_v44 = vor.u32 %v8259_v30, %v6553_v29  ;;  %v8281_v21 = vld [vmem:[#allocation10 + $0x94] sm:$0xf]  ;;  %v6599_v29 = vld [vmem:[#allocation10 + $0x30] sm:$0xf] }
 0x1ca   : > { %v8270_v30 = vld [vmem:[#allocation10 + $0x38] sm:$0xf0]  ;;  %v8297_v12 = vld [vmem:[#allocation10 + $0x110] sm:$0xf0]  ;;  %v6589_v0 = vld [vmem:[#allocation10 + $0x24] sm:$0xf0] }
 0x1cb   : > { %2145 = vmatmul.bf16.vlgmr.msra.gmra.mxu2 %v9325_v33  ;;  %2158 = vmatmul.bf16.vlgmr.msra.gmra.mxu3 %v1655_v28  ;;  %v6600_v31 = vor.u32 %v8270_v30, %v6599_v29  ;;  %v8302_v16 = vld [vmem:[#allocation10 + $0x13c] sm:$0xf]  ;;  %v6733_v18 = vld [vmem:[#allocation10 + $0x144] sm:$0xf0]  ;;  %v6577_v29 = vld [vmem:[#allocation10 + $0xc] sm:$0xf0] }
 0x1cc   : > { %2184 = vmatmul.bf16.vlgmr.msrb.gmra.mxu1 %v9325_v33  ;;  %2241 = vmatpush.bf16.msra.mxu2 %v6566_v23  ;;  %v6652_v23 = vor.u32 %v8281_v21, %v6649_v22  ;;  %v8294_v21 = vld [vmem:[#allocation10 + $0xf8] sm:$0xf0]  ;;  %v8299_v30 = vld [vmem:[#allocation10 + $0x124] sm:$0xf] }
 0x1cd   : > { %v1578_v35 = vpop.f32.mrf.mxu3  ;;  %2783 = vmatpush.bf16.msra.mxu3 %v6660_v40  ;;  %v8275_v40 = vld [vmem:[#allocation10 + $0x64] sm:$0xf] }
 0x1ce   : > { %v1592_v42 = vadd.f32 %v9275_v8, %v1578_v35  ;;  %v6530_v8 = vor.u32 %v8253_v41, %v6529_v51  ;;  %v6743_v35 = vld [vmem:[#allocation10 + $0x150] sm:$0xf]  ;;  %v8264_v41 = vld [vmem:[#allocation10 + $0x8] sm:$0xf0] }
 0x1cf   : > { %v6744_v37 = vor.u32 %v8306_v36, %v6743_v35  ;;  %v8310_v35 = vld [vmem:[#allocation10 + $0x178] sm:$0xf0]  ;;  %v6683_v36 = vld [vmem:[#allocation10 + $0xd8] sm:$0xf] }
 0x1d0   : > { %v1605_v47 = vadd.f32 %v9284_v43, %v1592_v42  ;;  %2242 = vmatpush.bf16.msra.mxu2 %v6554_v44  ;;  %v6517_v43 = vld [vmem:[#allocation10 + $0x1d0] sm:$0xf]  ;;  %v8278_v44 = vld [vmem:[#allocation10 + $0x7c] sm:$0xf] }
 0x1d1   : > { %2784 = vmatpush.bf16.msra.mxu3 %v6648_v52  ;;  %v6518_v60 = vor.u32 %v8250_v62, %v6517_v43  ;;  %v6640_v34 = vor.u32 %v8278_v44, %v6637_v32  ;;  %v6575_v52 = vld [vmem:[#allocation10] sm:$0xf]  ;;  %v8300_v43 = vld [vmem:[#allocation10 + $0x128] sm:$0xf0] }
 0x1d2   : > { %v1610_v55 = vadd.f32 %v5984_v46, %v1605_v47  ;;  %v6628_v46 = vor.u32 %v8275_v40, %v6625_v45  ;;  %v6731_v47 = vld [vmem:[#allocation10 + $0x138] sm:$0xf]  ;;  %v6576_v54 = vor.u32 %v8264_v41, %v6575_v52  ;;  %v8324_v40 = vld [vmem:[#allocation10 + $0x1e8] sm:$0xf0] }
 0x1d3   : > { %v8296_v45 = vld [vmem:[#allocation10 + $0x10c] sm:$0xf] }
 0x1d4   : > { %v1616_v58 = vadd.f32 %v1613_v57, %v1610_v55  ;;  %2243 = vmatpush.bf16.msra.mxu2 %v6542_v48  ;;  %v8303_v48 = vld [vmem:[#allocation10 + $0x140] sm:$0xf0]  ;;  %v6613_v55 = vld [vmem:[#allocation10 + $0x54] sm:$0xf0]  ;;  %v8308_v57 = vld [vmem:[#allocation10 + $0x16c] sm:$0xf] }
 0x1d5   : > { %v1580_v61 = vpop.f32.mrf.mxu3  ;;  %2785 = vmatpush.bf16.msra.mxu3 %v6636_v59  ;;  %v6732_v51 = vor.u32 %v8303_v48, %v6731_v47  ;;  %v6709_v47 = vld [vmem:[#allocation10 + $0x114] sm:$0xf0] }
 0x1d6   : > { %v1619_v1 = vmul.f32 0.01, %v1616_v58  ;;  %v9339_v3 = vsel %vm1626_vm1, %v1616_v58, %v9259_v6  ;;  %v6719_v61 = vld [vmem:[#allocation10 + $0x120] sm:$0xf]  ;;  %v6751_v48 = vld [vmem:[#allocation10 + $0x158] sm:$0xf]  ;;  %v6712_v52 = vor.u32 %v8296_v45, %v6709_v47 }
 0x1d7   : > { %v6720_v62 = vor.u32 %v8300_v43, %v6719_v61  ;;  %v8321_v61 = vld [vmem:[#allocation10 + $0x1d0] sm:$0xf0]  ;;  %v6805_v47 = vld [vmem:[#allocation10 + $0x1d4] sm:$0xf0] }
 0x1d8   : > { %v1622_v49 = vmax.f32 %v1616_v58, %v1619_v1  ;;  %2244 = vmatpush.bf16.msra.mxu2 %v6530_v8  ;;  %v6616_v58 = vor.u32 %v8272_v56, %v6613_v55  ;;  %v6757_v8 = vld [vmem:[#allocation10 + $0x174] sm:$0xf0]  ;;  %v6851_v1 = vld [vmem:[#allocation10 + $0x228] sm:$0xf]  ;;  %v8288_v56 = vld [vmem:[#allocation10 + $0xc8] sm:$0xf0] }
 0x1d9   : > { %2786 = vmatpush.bf16.msra.mxu3 %v6624_v7  ;;  %v6760_v59 = vor.u32 %v8308_v57, %v6757_v8  ;;  %v8332_v57 = vld [vmem:[#allocation10 + $0x22c] sm:$0xf]  ;;  %v8293_v43 = vld [vmem:[#allocation10 + $0xf4] sm:$0xf] }
 0x1da   : > { %v9344_v5 = vsel %vm1626_vm1, %v1622_v49, %v9263_v11  ;;  %6275 = vst [vmem:[%s9174_s8 + $0x28] sm:$0xff] %v1622_v49  ;;  %v6494_v11 = vor.u32 %v8244_v15, %v6493_v38  ;;  %v6852_v49 = vor.u32 %v8333_v4, %v6851_v1  ;;  %v6839_v38 = vld [vmem:[#allocation10 + $0x210] sm:$0xf]  ;;  %v8330_v15 = vld [vmem:[#allocation10 + $0x218] sm:$0xf0] }
 0x1db   : > { %2197 = vmatmul.bf16.vlgmr.msrb.gmra.mxu2 %v1655_v28  ;;  %v1656_v6 = vpack.c.bf16 %v9344_v5, %v9344_v5  ;;  %v6697_v1 = vld [vmem:[#allocation10 + $0xfc] sm:$0xf0] }
 0x1dc   : > { %2236 = vmatmul.bf16.vlgmr.msra.gmra.mxu1 %v1655_v28  ;;  %2245 = vmatpush.bf16.msra.mxu2 %v6518_v60  ;;  %v6756_v28 = vor.u32 %v8309_v25, %v6755_v24  ;;  %v6601_v60 = vld [vmem:[#allocation10 + $0x3c] sm:$0xf0]  ;;  %v8327_v24 = vld [vmem:[#allocation10 + $0x200] sm:$0xf0] }
 0x1dd   : > { %2171 = vmatmul.bf16.vlgmr.msrb.gmra.mxu0 %v1656_v6  ;;  %2210 = vmatmul.bf16.vlgmr.msrb.gmra.mxu3 %v1656_v6  ;;  %v6604_v7 = vor.u32 %v8269_v50, %v6601_v60  ;;  %v8263_v25 = vld [vmem:[#allocation10 + $0x4] sm:$0xf]  ;;  %v6739_v4 = vld [vmem:[#allocation10 + $0x140] sm:$0xf]  ;;  %v8304_v50 = vld [vmem:[#allocation10 + $0x148] sm:$0xf0] }
 0x1de   : > { %2787 = vmatpush.bf16.msra.mxu3 %v6612_v10  ;;  %2796 = vmatpush.bf16.msrb.mxu0 %v6756_v28  ;;  %v8266_v10 = vld [vmem:[#allocation10 + $0x1c] sm:$0xf]  ;;  %v6580_v44 = vor.u32 %v8263_v25, %v6577_v29  ;;  %v6740_v60 = vor.u32 %v8304_v50, %v6739_v4  ;;  %v6679_v4 = vld [vmem:[#allocation10 + $0xc8] sm:$0xf] }
 0x1df   : > { %2809 = vmatpush.bf16.msrb.mxu1 %v6852_v49  ;;  %v6592_v17 = vor.u32 %v8266_v10, %v6589_v0  ;;  %v6700_v49 = vor.u32 %v8293_v43, %v6697_v1  ;;  %v8298_v25 = vld [vmem:[#allocation10 + $0x118] sm:$0xf0]  ;;  %v8280_v1 = vld [vmem:[#allocation10 + $0x88] sm:$0xf0] }
 0x1e0   : > { %2246 = vmatpush.bf16.msra.mxu2 %v6506_v13  ;;  %v6708_v13 = vor.u32 %v8297_v12, %v6707_v9  ;;  %v8318_v9 = vld [vmem:[#allocation10 + $0x1b8] sm:$0xf0] }
 0x1e1   : > { %v8290_v12 = vld [vmem:[#allocation10 + $0xdc] sm:$0xf] }
 0x1e2   : > { %2788 = vmatpush.bf16.msra.mxu3 %v6600_v31  ;;  %2797 = vmatpush.bf16.msrb.mxu0 %v6744_v37  ;;  %v6721_v31 = vld [vmem:[#allocation10 + $0x12c] sm:$0xf0] }
 0x1e3   : > { %v6724_v32 = vor.u32 %v8299_v30, %v6721_v31  ;;  %v8323_v31 = vld [vmem:[#allocation10 + $0x1e4] sm:$0xf] }
 0x1e4   : > { %2247 = vmatpush.bf16.msra.mxu2 %v6494_v11  ;;  %v6840_v11 = vor.u32 %v8330_v15, %v6839_v38  ;;  %v6685_v38 = vld [vmem:[#allocation10 + $0xe4] sm:$0xf0] }
 0x1e5   : > { %v6727_v15 = vld [vmem:[#allocation10 + $0x128] sm:$0xf]  ;;  %v6688_v10 = vor.u32 %v8290_v12, %v6685_v38 }
 0x1e6   : > { %2798 = vmatpush.bf16.msrb.mxu0 %v6732_v51  ;;  %2810 = vmatpush.bf16.msrb.mxu1 %v6840_v11  ;;  %v8307_v51 = vld [vmem:[#allocation10 + $0x160] sm:$0xf0]  ;;  %v8301_v11 = vld [vmem:[#allocation10 + $0x130] sm:$0xf0]  ;;  %v6631_v12 = vld [vmem:[#allocation10 + $0x68] sm:$0xf] }
 0x1e7   : > { %v6752_v41 = vor.u32 %v8307_v51, %v6751_v48  ;;  %v6728_v0 = vor.u32 %v8301_v11, %v6727_v15  ;;  %v8311_v11 = vld [vmem:[#allocation10 + $0x184] sm:$0xf] }
 0x1e8   : > { %2248 = vmatpush.bf16.msra.mxu2 %v6482_v63  ;;  %v6736_v63 = vor.u32 %v8302_v16, %v6733_v18  ;;  %v8326_v16 = vld [vmem:[#allocation10 + $0x1fc] sm:$0xf]  ;;  %v6829_v18 = vld [vmem:[#allocation10 + $0x204] sm:$0xf0] }
 0x1ea   : > { %2799 = vmatpush.bf16.msrb.mxu0 %v6720_v62 }
 0x1eb   : > { %2249 = vmatmul.bf16.vlgmr.msra.gmra.mxu2 %v1656_v6  ;;  %v6748_v6 = vor.u32 %v8305_v2, %v6745_v26  ;;  %v8329_v2 = vld [vmem:[#allocation10 + $0x214] sm:$0xf]  ;;  %v6841_v26 = vld [vmem:[#allocation10 + $0x21c] sm:$0xf0] }
 0x1ec   : > { %2822 = vmatpush.bf16.msrb.mxu2 %v6664_v20  ;;  %v6695_v20 = vld [vmem:[#allocation10 + $0xf0] sm:$0xf] }
 0x1ed   : > { %2223 = vmatmul.bf16.vlgmr.msra.gmra.mxu0 %v9325_v33  ;;  %v6587_v33 = vld [vmem:[#allocation10 + $0x18] sm:$0xf]  ;;  %v6696_v22 = vor.u32 %v8294_v21, %v6695_v20  ;;  %v8315_v20 = vld [vmem:[#allocation10 + $0x1a0] sm:$0xf0] }
 0x1ee   : > { %v6588_v42 = vor.u32 %v8267_v39, %v6587_v33  ;;  %2800 = vmatpush.bf16.msrb.mxu0 %v6708_v13  ;;  %v8291_v33 = vld [vmem:[#allocation10 + $0xe0] sm:$0xf0] }
 0x1ef   : > { %v6684_v39 = vor.u32 %v8291_v33, %v6683_v36  ;;  %v8287_v21 = vld [vmem:[#allocation10 + $0xc4] sm:$0xf]  ;;  %v8286_v33 = vld [vmem:[#allocation10 + $0xb8] sm:$0xf0] }
 0x1f0   : > { %2823 = vmatpush.bf16.msrb.mxu2 %v6652_v23  ;;  %2789 = vmatpush.bf16.msra.mxu3 %v6588_v42  ;;  %v6827_v23 = vld [vmem:[#allocation10 + $0x1f8] sm:$0xf]  ;;  %v6815_v42 = vld [vmem:[#allocation10 + $0x1e0] sm:$0xf] }
 0x1f1   : > { %v6828_v28 = vor.u32 %v8327_v24, %v6827_v23  ;;  %v6673_v23 = vld [vmem:[#allocation10 + $0xcc] sm:$0xf0] }
 0x1f2   : > { %2801 = vmatpush.bf16.msrb.mxu0 %v6696_v22  ;;  %v6715_v24 = vld [vmem:[#allocation10 + $0x110] sm:$0xf] }
 0x1f3   : > { %2811 = vmatpush.bf16.msrb.mxu1 %v6828_v28  ;;  %v6676_v28 = vor.u32 %v8287_v21, %v6673_v23  ;;  %v6716_v29 = vor.u32 %v8298_v25, %v6715_v24  ;;  %v6619_v21 = vld [vmem:[#allocation10 + $0x50] sm:$0xf]  ;;  %v9364_v25 = vld [vmem:[#allocation12] sm:$0xff] }
 0x1f4   : > { %2824 = vmatpush.bf16.msrb.mxu2 %v6640_v34  ;;  %2790 = vmatpush.bf16.msra.mxu3 %v6576_v54  ;;  %v6763_v34 = vld [vmem:[#allocation10 + $0x170] sm:$0xf]  ;;  %v6671_v54 = vld [vmem:[#allocation10 + $0xc0] sm:$0xf] }
 0x1f5   : > { %v6764_v37 = vor.u32 %v8310_v35, %v6763_v34  ;;  %v6672_v55 = vor.u32 %v8288_v56, %v6671_v54  ;;  %v6767_v34 = vld [vmem:[#allocation10 + $0x180] sm:$0xf]  ;;  %v8312_v35 = vld [vmem:[#allocation10 + $0x188] sm:$0xf0]  ;;  %v8283_v54 = vld [vmem:[#allocation10 + $0xa0] sm:$0xf0] }
 0x1f6   : > { %2802 = vmatpush.bf16.msrb.mxu0 %v6684_v39  ;;  %v6768_v36 = vor.u32 %v8312_v35, %v6767_v34  ;;  %v6691_v56 = vld [vmem:[#allocation10 + $0xe0] sm:$0xf] }
 0x1f8   : > { %2825 = vmatpush.bf16.msrb.mxu2 %v6628_v46  ;;  %2835 = vmatpush.bf16.msrb.mxu3 %v6760_v59  ;;  %v6816_v46 = vor.u32 %v8324_v40, %v6815_v42  ;;  %v6803_v59 = vld [vmem:[#allocation10 + $0x1c8] sm:$0xf]  ;;  %v6703_v42 = vld [vmem:[#allocation10 + $0xf8] sm:$0xf]  ;;  %v8295_v40 = vld [vmem:[#allocation10 + $0x100] sm:$0xf0] }
 0x1f9   : > { %v6804_v62 = vor.u32 %v8321_v61, %v6803_v59  ;;  %v6704_v45 = vor.u32 %v8295_v40, %v6703_v42  ;;  %v8317_v59 = vld [vmem:[#allocation10 + $0x1b4] sm:$0xf]  ;;  %v6793_v61 = vld [vmem:[#allocation10 + $0x1bc] sm:$0xf0] }
 0x1fa   : > { %2812 = vmatpush.bf16.msrb.mxu1 %v6816_v46  ;;  %2803 = vmatpush.bf16.msrb.mxu0 %v6672_v55  ;;  %v8320_v46 = vld [vmem:[#allocation10 + $0x1cc] sm:$0xf]  ;;  %v6796_v43 = vor.u32 %v8317_v59, %v6793_v61  ;;  %v6847_v59 = vld [vmem:[#allocation10 + $0x218] sm:$0xf]  ;;  %v8331_v61 = vld [vmem:[#allocation10 + $0x220] sm:$0xf0] }
 0x1fc   : > { %2826 = vmatpush.bf16.msrb.mxu2 %v6616_v58  ;;  %2836 = vmatpush.bf16.msrb.mxu3 %v6748_v6  ;;  %v6853_v58 = vld [vmem:[#allocation10 + $0x234] sm:$0xf0]  ;;  %v6791_v6 = vld [vmem:[#allocation10 + $0x1b0] sm:$0xf] }
 0x1fd   : > { %v6856_v8 = vor.u32 %v8332_v57, %v6853_v58  ;;  %v6792_v13 = vor.u32 %v8318_v9, %v6791_v6  ;;  %v8292_v57 = vld [vmem:[#allocation10 + $0xe8] sm:$0xf0] }
 0x1fe   : > { %2813 = vmatpush.bf16.msrb.mxu1 %v6804_v62  ;;  %v6643_v62 = vld [vmem:[#allocation10 + $0x80] sm:$0xf] }
 0x1ff   : > { %2848 = vmatpush.bf16.msra.mxu0 %v6856_v8  ;;  %v6692_v8 = vor.u32 %v8292_v57, %v6691_v56  ;;  %v6644_v50 = vor.u32 %v8280_v1, %v6643_v62  ;;  %v8265_v1 = vld [vmem:[#allocation10 + $0x10] sm:$0xf0] }
 0x200   : > { %2827 = vmatpush.bf16.msrb.mxu2 %v6604_v7  ;;  %2837 = vmatpush.bf16.msrb.mxu3 %v6736_v63  ;;  %v6844_v7 = vor.u32 %v8329_v2, %v6841_v26  ;;  %v6779_v63 = vld [vmem:[#allocation10 + $0x198] sm:$0xf]  ;;  %v8314_v2 = vld [vmem:[#allocation10 + $0x19c] sm:$0xf]  ;;  %v6781_v26 = vld [vmem:[#allocation10 + $0x1a4] sm:$0xf0] }
 0x201   : > { %v6780_v22 = vor.u32 %v8315_v20, %v6779_v63  ;;  %v6784_v9 = vor.u32 %v8314_v2, %v6781_v26  ;;  %v9362_v20 = vstv %s2270_s29  ;;  %v6835_v26 = vld [vmem:[#allocation10 + $0x200] sm:$0xf]  ;;  %s4873_s29 = sadd.s32 7, %s9202_s27  ;;  %s8626_s27 = smul.u32 192, %s9062_s25 }
 0x202   : > { %2814 = vmatpush.bf16.msrb.mxu1 %v6792_v13  ;;  %v8277_v13 = vld [vmem:[#allocation10 + $0x70] sm:$0xf0]  ;;  %vm2272_vm2 = vcmp.eq.s32.totalorder %v9362_v20, 1  ;;  %p5499_p0 = scmp.lt.s32.totalorder %s4873_s29, 12 }
 0x203   : > { %2849 = vmatpush.bf16.msra.mxu0 %v6844_v7  ;;  %v6632_v38 = vor.u32 %v8277_v13, %v6631_v12  ;;  %v8357_v12 = vld [vmem:[#allocation10 + $0xb0] sm:$0xf0]  ;;  %v6941_v13 = vld [vmem:[#allocation10 + $0x90] sm:$0xf]  ;;  %s5538_s14 = scalar_lea.hbm %s9803_s5, %s8626_s27 }
 0x204   : > { %2828 = vmatpush.bf16.msrb.mxu2 %v6592_v17  ;;  %2838 = vmatpush.bf16.msrb.mxu3 %v6724_v32  ;;  %v6832_v17 = vor.u32 %v8326_v16, %v6829_v18  ;;  %v6276_v16 = vld [vmem:[%s9160_s9 + $0x30] sm:$0xff]  ;;  %v8313_v20 = vld [vmem:[#allocation10 + $0x190] sm:$0xf0]  ;;  %s5500_s30 = scalar_select %p5499_p0, 1, 0 }
 0x205   : > { %s5541_s12 = sshll.u32 %s5538_s14, 4  ;;  %s5542_s12 = int_to_ptr.hbm [resolvable:$true] %s5541_s12 }
 0x206   : > { %2815 = vmatpush.bf16.msrb.mxu1 %v6780_v22  ;;  %v8274_v22 = vld [vmem:[#allocation10 + $0x58] sm:$0xf0] }
 0x207   : > { %2850 = vmatpush.bf16.msra.mxu0 %v6832_v17  ;;  %v6620_v23 = vor.u32 %v8274_v22, %v6619_v21  ;;  %v6929_v22 = vld [vmem:[#allocation10 + $0x78] sm:$0xf] }
 0x208   : > { %2829 = vmatpush.bf16.msrb.mxu2 %v6580_v44  ;;  %2839 = vmatpush.bf16.msrb.mxu3 %v6712_v52  ;;  %v6817_v44 = vld [vmem:[#allocation10 + $0x1ec] sm:$0xf0]  ;;  %v6808_v52 = vor.u32 %v8320_v46, %v6805_v47  ;;  %v8268_v46 = vld [vmem:[#allocation10 + $0x28] sm:$0xf0] }
 0x209   : > { %v6820_v32 = vor.u32 %v8323_v31, %v6817_v44  ;;  %v6607_v31 = vld [vmem:[#allocation10 + $0x38] sm:$0xf]  ;;  %v8271_v44 = vld [vmem:[#allocation10 + $0x40] sm:$0xf0] }
 0x20a   : > { %2816 = vmatpush.bf16.msrb.mxu1 %v6768_v36  ;;  %v6608_v35 = vor.u32 %v8271_v44, %v6607_v31  ;;  %v6277_v36 = vld [vmem:[%s9160_s9 + $0x38] sm:$0xff]  ;;  %v6811_v44 = vld [vmem:[#allocation10 + $0x1d0] sm:$0xf] }
 0x20b   : > { %2851 = vmatpush.bf16.msra.mxu0 %v6820_v32 }
 0x20c   : > { %2874 = vmatpush.bf16.msra.mxu2 %v6764_v37  ;;  %2840 = vmatpush.bf16.msrb.mxu3 %v6700_v49  ;;  %v6667_v37 = vld [vmem:[#allocation10 + $0xb0] sm:$0xf]  ;;  %v8289_v49 = vld [vmem:[#allocation10 + $0xd0] sm:$0xf0] }
 0x20d   : > { %v6668_v39 = vor.u32 %v8286_v33, %v6667_v37 }
 0x20f   : > { %2861 = vmatpush.bf16.msra.mxu1 %v6668_v39  ;;  %2852 = vmatpush.bf16.msra.mxu0 %v6808_v52 }
 0x210   : > { %2875 = vmatpush.bf16.msra.mxu2 %v6752_v41  ;;  %2841 = vmatpush.bf16.msrb.mxu3 %v6688_v10  ;;  %v6655_v41 = vld [vmem:[#allocation10 + $0x98] sm:$0xf] }
 0x211   : > { %v6656_v55 = vor.u32 %v8283_v54, %v6655_v41  ;;  %v9376_v54 = vld [vmem:[#allocation12 + $0x8] sm:$0xff] }
 0x212   : > { %v2258_v56 = vmul.f32 %v9376_v54, %v9309_v53 }
 0x213   : > { %2862 = vmatpush.bf16.msra.mxu1 %v6656_v55  ;;  %2853 = vmatpush.bf16.msra.mxu0 %v6796_v43 }
 0x214   : > { %2876 = vmatpush.bf16.msra.mxu2 %v6740_v60  ;;  %2842 = vmatpush.bf16.msrb.mxu3 %v6676_v28  ;;  %v6680_v60 = vor.u32 %v8289_v49, %v6679_v4  ;;  %v2257_v28 = vmul.f32 %v9364_v25, %v9304_v14 }
 0x217   : > { %2863 = vmatpush.bf16.msra.mxu1 %v6644_v50  ;;  %2854 = vmatpush.bf16.msra.mxu0 %v6784_v9  ;;  %v6953_v9 = vld [vmem:[#allocation10 + $0xa8] sm:$0xf] }
 0x218   : > { %2877 = vmatpush.bf16.msra.mxu2 %v6728_v0  ;;  %v6769_v0 = vld [vmem:[#allocation10 + $0x18c] sm:$0xf0] }
 0x219   : > { %v6772_v17 = vor.u32 %v8311_v11, %v6769_v0  ;;  %v6954_v11 = vor.u32 %v8357_v12, %v6953_v9  ;;  %v8354_v0 = vld [vmem:[#allocation10 + $0x98] sm:$0xf0]  ;;  %v7037_v12 = vld [vmem:[#allocation10 + $0x150] sm:$0xf] }
 0x21a   : > { %v6942_v21 = vor.u32 %v8354_v0, %v6941_v13  ;;  %v8378_v13 = vld [vmem:[#allocation10 + $0x158] sm:$0xf0] }
 0x21b   : > { %2864 = vmatpush.bf16.msra.mxu1 %v6632_v38  ;;  %2855 = vmatpush.bf16.msra.mxu0 %v6772_v17  ;;  %v6823_v17 = vld [vmem:[#allocation10 + $0x1e8] sm:$0xf] }
 0x21c   : > { %2878 = vmatpush.bf16.msra.mxu2 %v6716_v29 }
 0x21f   : > { %2865 = vmatpush.bf16.msra.mxu1 %v6620_v23  ;;  %v8351_v23 = vld [vmem:[#allocation10 + $0x80] sm:$0xf0] }
 0x220   : > { %2879 = vmatpush.bf16.msra.mxu2 %v6704_v45  ;;  %v6595_v45 = vld [vmem:[#allocation10 + $0x20] sm:$0xf] }
 0x221   : > { %v6596_v52 = vor.u32 %v8268_v46, %v6595_v45  ;;  %v6799_v45 = vld [vmem:[#allocation10 + $0x1b8] sm:$0xf] }
 0x223   : > { %2866 = vmatpush.bf16.msra.mxu1 %v6608_v35  ;;  %v6930_v35 = vor.u32 %v8351_v23, %v6929_v22  ;;  %v6919_v23 = vld [vmem:[#allocation10 + $0x6c] sm:$0xf0] }
 0x224   : > { %2880 = vmatpush.bf16.msra.mxu2 %v6692_v8 }
 0x227   : > { %2867 = vmatpush.bf16.msra.mxu1 %v6596_v52 }
 0x228   : > { %2881 = vmatpush.bf16.msra.mxu2 %v6680_v60  ;;  %v6848_v60 = vor.u32 %v8331_v61, %v6847_v59  ;;  %v6787_v59 = vld [vmem:[#allocation10 + $0x1a0] sm:$0xf]  ;;  %v8316_v61 = vld [vmem:[#allocation10 + $0x1a8] sm:$0xf0] }
 0x249   : > { %v9350_v30 = vpop.f32.mrf.mxu1 }
 0x24e   : > { %v2146_v48 = vpop.f32.mrf.mxu2  ;;  %v2159_v51 = vpop.f32.mrf.mxu3 }
 0x24f   : > { %v2160_v15 = vadd.f32 %v2159_v51, %v2146_v48  ;;  %v6859_v48 = vld [vmem:[#allocation10 + $0x230] sm:$0xf]  ;;  %v8334_v51 = vld [vmem:[#allocation10 + $0x238] sm:$0xf0] }
 0x250   : > { %v6860_v57 = vor.u32 %v8334_v51, %v6859_v48  ;;  %v7049_v48 = vld [vmem:[#allocation10 + $0x168] sm:$0xf]  ;;  %v8381_v51 = vld [vmem:[#allocation10 + $0x170] sm:$0xf0] }
 0x251   : > { %v2187_v58 = vpop.f32.mrf.mxu1 }
 0x256   : > { %v2148_v7 = vpop.f32.mrf.mxu2  ;;  %v2161_v6 = vpop.f32.mrf.mxu3 }
 0x257   : > { %v8328_v7 = vld [vmem:[#allocation10 + $0x208] sm:$0xf0] }
 0x259   : > { %v9359_v10 = vpop.f32.mrf.mxu1 }
 0x25a   : > { %v2172_v18 = vpop.f32.mrf.mxu0 }
 0x25b   : > { %v2173_v63 = vadd.f32 %v2172_v18, %v2160_v15  ;;  %v6836_v15 = vor.u32 %v8328_v7, %v6835_v26  ;;  %v8353_v7 = vld [vmem:[#allocation10 + $0x94] sm:$0xf] }
 0x25d   : > { %v2254_v24 = vadd.f32 %v6276_v16, %v2173_v63  ;;  %v6278_v16 = vld [vmem:[%s9160_s9 + $0x40] sm:$0xff] }
 0x25e   : > { %v2198_v29 = vpop.f32.mrf.mxu2  ;;  %v8325_v63 = vld [vmem:[#allocation10 + $0x1f0] sm:$0xf0] }
 0x25f   : > { %v2260_v32 = vadd.f32 %v2257_v28, %v2254_v24  ;;  %v2199_v34 = vadd.f32 %v2198_v29, %v9350_v30  ;;  %v9407_v28 = vld [vmem:[#allocation12 + $0x10] sm:$0xff]  ;;  %v6824_v29 = vor.u32 %v8325_v63, %v6823_v17  ;;  %v7025_v63 = vld [vmem:[#allocation10 + $0x138] sm:$0xf] }
 0x260   : > { %v2211_v37 = vpop.f32.mrf.mxu3 }
 0x261   : > { %v2263_v33 = vmul.f32 0.01, %v2260_v32  ;;  %v9374_v39 = vsel %vm2272_vm2, %v2260_v32, %v9304_v14  ;;  %v2212_v42 = vadd.f32 %v2211_v37, %v2199_v34  ;;  %v2239_v40 = vpop.f32.mrf.mxu1  ;;  %v8348_v37 = vld [vmem:[#allocation10 + $0x68] sm:$0xf0] }
 0x262   : > { %v2174_v47 = vpop.f32.mrf.mxu0 }
 0x263   : > { %v2266_v30 = vmax.f32 %v2260_v32, %v2263_v33  ;;  %v2255_v41 = vadd.f32 %v6277_v36, %v2212_v42  ;;  %v8322_v32 = vld [vmem:[#allocation10 + $0x1d8] sm:$0xf0]  ;;  %v6917_v36 = vld [vmem:[#allocation10 + $0x60] sm:$0xf]  ;;  %v8319_v47 = vld [vmem:[#allocation10 + $0x1c0] sm:$0xf0] }
 0x264   : > { %v6812_v40 = vor.u32 %v8322_v32, %v6811_v44  ;;  %v8372_v44 = vld [vmem:[#allocation10 + $0x128] sm:$0xf0] }
 0x265   : > { %v9383_v14 = vsel %vm2272_vm2, %v2266_v30, %v9314_v19  ;;  %6567 = vst [vmem:[%s9174_s8 + $0x30] sm:$0xff] %v2266_v30  ;;  %v2261_v55 = vadd.f32 %v2258_v56, %v2255_v41  ;;  %v6583_v19 = vld [vmem:[#allocation10 + $0x8] sm:$0xf]  ;;  %v6918_v30 = vor.u32 %v8348_v37, %v6917_v36  ;;  %v8345_v56 = vld [vmem:[#allocation10 + $0x50] sm:$0xf0] }
 0x266   : > { %v2200_v58 = vpop.f32.mrf.mxu2  ;;  %v9388_v8 = vpack.c.bf16 %v9383_v14, %v9383_v14  ;;  %v6584_v50 = vor.u32 %v8265_v1, %v6583_v19  ;;  %v6905_v41 = vld [vmem:[#allocation10 + $0x48] sm:$0xf]  ;;  %v6893_v19 = vld [vmem:[#allocation10 + $0x30] sm:$0xf]  ;;  %v8342_v1 = vld [vmem:[#allocation10 + $0x38] sm:$0xf0] }
 0x267   : > { %v2264_v43 = vmul.f32 0.01, %v2261_v55  ;;  %v9393_v62 = vsel %vm2272_vm2, %v2261_v55, %v9309_v53  ;;  %v8344_v32 = vld [vmem:[#allocation10 + $0x4c] sm:$0xf]  ;;  %v7051_v37 = vld [vmem:[#allocation10 + $0x174] sm:$0xf0] }
 0x268   : > { %v2213_v4 = vpop.f32.mrf.mxu3  ;;  %2791 = vmatmul.bf16.vlgmr.msra.gmra.mxu3 %v9388_v8  ;;  %2830 = vmatmul.bf16.vlgmr.msrb.gmra.mxu2 %v9388_v8  ;;  %v8380_v36 = vld [vmem:[#allocation10 + $0x16c] sm:$0xf] }
 0x269   : > { %v2267_v49 = vmax.f32 %v2261_v55, %v2264_v43  ;;  %2887 = vmatpush.bf16.msra.mxu3 %v6860_v57  ;;  %2868 = vmatpush.bf16.msra.mxu1 %v6584_v50  ;;  %v6800_v55 = vor.u32 %v8319_v47, %v6799_v45  ;;  %v7050_v57 = vor.u32 %v8381_v51, %v7049_v48  ;;  %v8356_v50 = vld [vmem:[#allocation10 + $0xac] sm:$0xf]  ;;  %v7145_v45 = vld [vmem:[#allocation10 + $0x228] sm:$0xf]  ;;  %v8369_v51 = vld [vmem:[#allocation10 + $0x110] sm:$0xf0] }
 0x26a   : > { %v2224_v2 = vpop.f32.mrf.mxu0  ;;  %v6906_v43 = vor.u32 %v8345_v56, %v6905_v41  ;;  %v6788_v4 = vor.u32 %v8316_v61, %v6787_v59  ;;  %v7001_v48 = vld [vmem:[#allocation10 + $0x108] sm:$0xf]  ;;  %v6895_v41 = vld [vmem:[#allocation10 + $0x3c] sm:$0xf0]  ;;  %v8377_v56 = vld [vmem:[#allocation10 + $0x154] sm:$0xf] }
 0x26b   : > { %v9400_v53 = vsel %vm2272_vm2, %v2267_v49, %v9320_v27  ;;  %6568 = vst [vmem:[%s9174_s8 + $0x38] sm:$0xff] %v2267_v49  ;;  %v2238_v38 = vadd.f32 %v9359_v10, %v2224_v2  ;;  %v2259_v10 = vmul.f32 %v9407_v28, %v9339_v3  ;;  %v6955_v49 = vld [vmem:[#allocation10 + $0xb4] sm:$0xf0]  ;;  %v7133_v59 = vld [vmem:[#allocation10 + $0x210] sm:$0xf] }
 0x26c   : > { %v2301_v6 = vpack.c.bf16 %v9400_v53, %v9400_v53  ;;  %v6958_v26 = vor.u32 %v8356_v50, %v6955_v49  ;;  %v8402_v61 = vld [vmem:[#allocation10 + $0x218] sm:$0xf0]  ;;  %v7027_v49 = vld [vmem:[#allocation10 + $0x144] sm:$0xf0] }
 0x26d   : > { %2888 = vmatpush.bf16.msra.mxu3 %v6848_v60  ;;  %v6894_v60 = vor.u32 %v8342_v1, %v6893_v19  ;;  %v6989_v19 = vld [vmem:[#allocation10 + $0xf0] sm:$0xf]  ;;  %v8366_v1 = vld [vmem:[#allocation10 + $0xf8] sm:$0xf0] }
 0x26e   : > { %v2250_v18 = vpop.f32.mrf.mxu2  ;;  %2804 = vmatmul.bf16.vlgmr.msrb.gmra.mxu0 %v2301_v6  ;;  %v8374_v50 = vld [vmem:[#allocation10 + $0x13c] sm:$0xf] }
 0x26f   : > { %v2251_v27 = vadd.f32 %v2250_v18, %v2238_v38  ;;  %3429 = vmatpush.bf16.msrb.mxu0 %v6954_v11  ;;  %v8350_v38 = vld [vmem:[#allocation10 + $0x7c] sm:$0xf]  ;;  %v6931_v11 = vld [vmem:[#allocation10 + $0x84] sm:$0xf0]  ;;  %v8339_v18 = vld [vmem:[#allocation10 + $0x20] sm:$0xf0] }
 0x270   : > { %v6934_v0 = vor.u32 %v8350_v38, %v6931_v11  ;;  %v8371_v11 = vld [vmem:[#allocation10 + $0x124] sm:$0xf] }
 0x271   : > { %v2256_v24 = vadd.f32 %v6278_v16, %v2251_v27  ;;  %2889 = vmatpush.bf16.msra.mxu3 %v6836_v15  ;;  %v7038_v15 = vor.u32 %v8378_v13, %v7037_v12  ;;  %v6881_v16 = vld [vmem:[#allocation10 + $0x18] sm:$0xf]  ;;  %v8375_v27 = vld [vmem:[#allocation10 + $0x140] sm:$0xf0] }
 0x272   : > { %v2226_v31 = vpop.f32.mrf.mxu0  ;;  %v6882_v17 = vor.u32 %v8339_v18, %v6881_v16  ;;  %v7026_v22 = vor.u32 %v8375_v27, %v7025_v63  ;;  %v8363_v12 = vld [vmem:[#allocation10 + $0xe0] sm:$0xf0]  ;;  %v8382_v63 = vld [vmem:[#allocation10 + $0x178] sm:$0xf0]  ;;  %v7109_v27 = vld [vmem:[#allocation10 + $0x1e0] sm:$0xf] }
 0x273   : > { %v2262_v34 = vadd.f32 %v2259_v10, %v2256_v24  ;;  %3430 = vmatpush.bf16.msrb.mxu0 %v6942_v21  ;;  %v8347_v21 = vld [vmem:[#allocation10 + $0x64] sm:$0xf]  ;;  %v8336_v10 = vld [vmem:[#allocation10 + $0x8] sm:$0xf0]  ;;  %v7013_v31 = vld [vmem:[#allocation10 + $0x120] sm:$0xf] }
 0x274   : > { %v6922_v24 = vor.u32 %v8347_v21, %v6919_v23  ;;  %v8335_v13 = vld [vmem:[#allocation10 + $0x4] sm:$0xf] }
 0x275   : > { %v2265_v33 = vmul.f32 0.01, %v2262_v34  ;;  %v9414_v42 = vsel %vm2272_vm2, %v2262_v34, %v9339_v3  ;;  %2890 = vmatpush.bf16.msra.mxu3 %v6824_v29 }
 0x276   : > { %v2252_v46 = vpop.f32.mrf.mxu2 }
 0x277   : > { %v2268_v52 = vmax.f32 %v2262_v34, %v2265_v33  ;;  %3431 = vmatpush.bf16.msrb.mxu0 %v6930_v35  ;;  %v7014_v34 = vor.u32 %v8372_v44, %v7013_v31  ;;  %v6907_v35 = vld [vmem:[#allocation10 + $0x54] sm:$0xf0]  ;;  %v8405_v46 = vld [vmem:[#allocation10 + $0x230] sm:$0xf0]  ;;  %v8404_v44 = vld [vmem:[#allocation10 + $0x22c] sm:$0xf] }
 0x278   : > { %2843 = vmatmul.bf16.vlgmr.msrb.gmra.mxu3 %v2301_v6  ;;  %2882 = vmatmul.bf16.vlgmr.msra.gmra.mxu2 %v2301_v6  ;;  %v6943_v6 = vld [vmem:[#allocation10 + $0x9c] sm:$0xf0]  ;;  %v6910_v33 = vor.u32 %v8344_v32, %v6907_v35  ;;  %v7146_v47 = vor.u32 %v8405_v46, %v7145_v45  ;;  %v7003_v31 = vld [vmem:[#allocation10 + $0x114] sm:$0xf0]  ;;  %v8393_v45 = vld [vmem:[#allocation10 + $0x1d0] sm:$0xf0] }
 0x279   : > { %v9419_v3 = vsel %vm2272_vm2, %v2268_v52, %v9344_v5  ;;  %6569 = vst [vmem:[%s9174_s8 + $0x40] sm:$0xff] %v2268_v52  ;;  %2891 = vmatpush.bf16.msra.mxu3 %v6812_v40  ;;  %v6775_v5 = vld [vmem:[#allocation10 + $0x188] sm:$0xf]  ;;  %v6946_v9 = vor.u32 %v8353_v7, %v6943_v6  ;;  %v7054_v40 = vor.u32 %v8380_v36, %v7051_v37  ;;  %v8341_v52 = vld [vmem:[#allocation10 + $0x34] sm:$0xf] }
 0x27a   : > { %v2302_v58 = vpack.c.bf16 %v9419_v3, %v9419_v3  ;;  %v6776_v2 = vor.u32 %v8313_v20, %v6775_v5  ;;  %3455 = vmatpush.bf16.msrb.mxu2 %v7146_v47  ;;  %v6990_v5 = vor.u32 %v8366_v1, %v6989_v19  ;;  %v6883_v20 = vld [vmem:[#allocation10 + $0x24] sm:$0xf0]  ;;  %v8399_v7 = vld [vmem:[#allocation10 + $0x200] sm:$0xf0]  ;;  %v7147_v32 = vld [vmem:[#allocation10 + $0x234] sm:$0xf0] }
 0x27b   : > { %3432 = vmatpush.bf16.msrb.mxu0 %v6918_v30  ;;  %v7002_v30 = vor.u32 %v8369_v51, %v7001_v48  ;;  %v7150_v35 = vor.u32 %v8404_v44, %v7147_v32  ;;  %v7045_v36 = vld [vmem:[#allocation10 + $0x158] sm:$0xf]  ;;  %v8379_v37 = vld [vmem:[#allocation10 + $0x160] sm:$0xf0]  ;;  %v8365_v47 = vld [vmem:[#allocation10 + $0xf4] sm:$0xf] }
 0x27c   : > { %2817 = vmatmul.bf16.vlgmr.msrb.gmra.mxu1 %v2302_v58  ;;  %v6991_v48 = vld [vmem:[#allocation10 + $0xfc] sm:$0xf0]  ;;  %v6979_v19 = vld [vmem:[#allocation10 + $0xe4] sm:$0xf0]  ;;  %v8367_v44 = vld [vmem:[#allocation10 + $0x100] sm:$0xf0] }
 0x27d   : > { %2892 = vmatpush.bf16.msra.mxu3 %v6800_v55  ;;  %3442 = vmatpush.bf16.msrb.mxu1 %v7050_v57  ;;  %v7039_v55 = vld [vmem:[#allocation10 + $0x15c] sm:$0xf0]  ;;  %v6898_v57 = vor.u32 %v8341_v52, %v6895_v41  ;;  %v6994_v51 = vor.u32 %v8365_v47, %v6991_v48  ;;  %v8401_v52 = vld [vmem:[#allocation10 + $0x214] sm:$0xf]  ;;  %v8364_v47 = vld [vmem:[#allocation10 + $0xe8] sm:$0xf0] }
 0x27e   : > { %2856 = vmatmul.bf16.vlgmr.msra.gmra.mxu0 %v2302_v58  ;;  %v7033_v41 = vld [vmem:[#allocation10 + $0x140] sm:$0xf] }
 0x27f   : > { %3433 = vmatpush.bf16.msrb.mxu0 %v6906_v43  ;;  %v7134_v43 = vor.u32 %v8402_v61, %v7133_v59 }
 0x281   : > { %2893 = vmatpush.bf16.msra.mxu3 %v6788_v4  ;;  %3443 = vmatpush.bf16.msrb.mxu1 %v7038_v15  ;;  %v8338_v4 = vld [vmem:[#allocation10 + $0x1c] sm:$0xf]  ;;  %v6871_v15 = vld [vmem:[#allocation10 + $0xc] sm:$0xf0] }
 0x282   : > { %3456 = vmatpush.bf16.msrb.mxu2 %v7134_v43  ;;  %v6874_v16 = vor.u32 %v8335_v13, %v6871_v15  ;;  %v8362_v43 = vld [vmem:[#allocation10 + $0xdc] sm:$0xf]  ;;  %v8395_v13 = vld [vmem:[#allocation10 + $0x1e4] sm:$0xf]  ;;  %v7009_v15 = vld [vmem:[#allocation10 + $0x110] sm:$0xf] }
 0x283   : > { %3434 = vmatpush.bf16.msrb.mxu0 %v6894_v60  ;;  %v6886_v60 = vor.u32 %v8338_v4, %v6883_v20  ;;  %v6982_v1 = vor.u32 %v8362_v43, %v6979_v19  ;;  %v8398_v4 = vld [vmem:[#allocation10 + $0x1fc] sm:$0xf]  ;;  %v7021_v20 = vld [vmem:[#allocation10 + $0x128] sm:$0xf] }
 0x285   : > { %2894 = vmatpush.bf16.msra.mxu3 %v6776_v2  ;;  %3444 = vmatpush.bf16.msrb.mxu1 %v7026_v22  ;;  %v7030_v2 = vor.u32 %v8374_v50, %v7027_v49  ;;  %v8396_v22 = vld [vmem:[#allocation10 + $0x1e8] sm:$0xf0]  ;;  %v8373_v49 = vld [vmem:[#allocation10 + $0x130] sm:$0xf0] }
 0x286   : > { %v7110_v23 = vor.u32 %v8396_v22, %v7109_v27 }
 0x287   : > { %3435 = vmatpush.bf16.msrb.mxu0 %v6882_v17  ;;  %v7057_v17 = vld [vmem:[#allocation10 + $0x170] sm:$0xf] }
 0x288   : > { %2895 = vmatmul.bf16.vlgmr.msra.gmra.mxu3 %v2302_v58  ;;  %v7042_v58 = vor.u32 %v8377_v56, %v7039_v55  ;;  %v7058_v21 = vor.u32 %v8382_v63, %v7057_v17  ;;  %v8376_v55 = vld [vmem:[#allocation10 + $0x148] sm:$0xf0]  ;;  %v6961_v63 = vld [vmem:[#allocation10 + $0xb0] sm:$0xf] }
 0x289   : > { %3468 = vmatpush.bf16.msrb.mxu3 %v6958_v26  ;;  %3445 = vmatpush.bf16.msrb.mxu1 %v7014_v34  ;;  %v7121_v26 = vld [vmem:[#allocation10 + $0x1f8] sm:$0xf]  ;;  %v7034_v59 = vor.u32 %v8376_v55, %v7033_v41  ;;  %v8384_v17 = vld [vmem:[#allocation10 + $0x188] sm:$0xf0]  ;;  %v8386_v41 = vld [vmem:[#allocation10 + $0x19c] sm:$0xf] }
 0x28a   : > { %v7122_v6 = vor.u32 %v8399_v7, %v7121_v26  ;;  %v7022_v26 = vor.u32 %v8373_v49, %v7021_v20  ;;  %v6973_v55 = vld [vmem:[#allocation10 + $0xc8] sm:$0xf]  ;;  %v8383_v20 = vld [vmem:[#allocation10 + $0x184] sm:$0xf] }
 0x28c   : > { %2869 = vmatmul.bf16.vlgmr.msra.gmra.mxu1 %v9388_v8  ;;  %v6869_v8 = vld [vmem:[#allocation10] sm:$0xf]  ;;  %3457 = vmatpush.bf16.msrb.mxu2 %v7122_v6  ;;  %v8359_v6 = vld [vmem:[#allocation10 + $0xc4] sm:$0xf] }
 0x28d   : > { %3469 = vmatpush.bf16.msrb.mxu3 %v6946_v9  ;;  %v6870_v29 = vor.u32 %v8336_v10, %v6869_v8  ;;  %3446 = vmatpush.bf16.msrb.mxu1 %v7002_v30  ;;  %v6977_v9 = vld [vmem:[#allocation10 + $0xd8] sm:$0xf]  ;;  %v8360_v8 = vld [vmem:[#allocation10 + $0xc8] sm:$0xf0]  ;;  %v7135_v30 = vld [vmem:[#allocation10 + $0x21c] sm:$0xf0] }
 0x28e   : > { %v6978_v38 = vor.u32 %v8363_v12, %v6977_v9  ;;  %v8368_v10 = vld [vmem:[#allocation10 + $0x10c] sm:$0xf]  ;;  %v7138_v56 = vor.u32 %v8401_v52, %v7135_v30  ;;  %v6967_v9 = vld [vmem:[#allocation10 + $0xcc] sm:$0xf0] }
 0x28f   : > { %3436 = vmatpush.bf16.msrb.mxu0 %v6870_v29  ;;  %v7006_v34 = vor.u32 %v8368_v10, %v7003_v31  ;;  %v6970_v12 = vor.u32 %v8359_v6, %v6967_v9  ;;  %v6997_v31 = vld [vmem:[#allocation10 + $0xf8] sm:$0xf]  ;;  %v8352_v52 = vld [vmem:[#allocation10 + $0x88] sm:$0xf0] }
 0x290   : > { %3458 = vmatpush.bf16.msrb.mxu2 %v7110_v23  ;;  %v8392_v23 = vld [vmem:[#allocation10 + $0x1cc] sm:$0xf] }
 0x291   : > { %3470 = vmatpush.bf16.msrb.mxu3 %v6934_v0  ;;  %3447 = vmatpush.bf16.msrb.mxu1 %v6990_v5  ;;  %v7015_v0 = vld [vmem:[#allocation10 + $0x12c] sm:$0xf0]  ;;  %v7123_v5 = vld [vmem:[#allocation10 + $0x204] sm:$0xf0] }
 0x292   : > { %v7018_v18 = vor.u32 %v8371_v11, %v7015_v0  ;;  %v7126_v50 = vor.u32 %v8398_v4, %v7123_v5  ;;  %v8370_v0 = vld [vmem:[#allocation10 + $0x118] sm:$0xf0]  ;;  %v8349_v4 = vld [vmem:[#allocation10 + $0x70] sm:$0xf0] }
 0x293   : > { %3481 = vmatpush.bf16.msra.mxu0 %v7054_v40  ;;  %v7046_v40 = vor.u32 %v8379_v37, %v7045_v36  ;;  %v8355_v36 = vld [vmem:[#allocation10 + $0xa0] sm:$0xf0] }
 0x295   : > { %3471 = vmatpush.bf16.msrb.mxu3 %v6922_v24  ;;  %3448 = vmatpush.bf16.msrb.mxu1 %v6978_v38  ;;  %v6965_v24 = vld [vmem:[#allocation10 + $0xc0] sm:$0xf]  ;;  %v7111_v38 = vld [vmem:[#allocation10 + $0x1ec] sm:$0xf0] }
 0x296   : > { %v6966_v29 = vor.u32 %v8360_v8, %v6965_v24  ;;  %v7114_v11 = vor.u32 %v8395_v13, %v7111_v38  ;;  %v7099_v24 = vld [vmem:[#allocation10 + $0x1d4] sm:$0xf0]  ;;  %v9433_v13 = vstv %s2916_s19 }
 0x297   : > { %3482 = vmatpush.bf16.msra.mxu0 %v7042_v58  ;;  %v8390_v58 = vld [vmem:[#allocation10 + $0x1b8] sm:$0xf0]  ;;  %vm2918_vm3 = vcmp.eq.s32.totalorder %v9433_v13, 1 }
 0x299   : > { %3472 = vmatpush.bf16.msrb.mxu3 %v6910_v33  ;;  %v7097_v33 = vld [vmem:[#allocation10 + $0x1c8] sm:$0xf]  ;;  %3449 = vmatpush.bf16.msrb.mxu1 %v6966_v29  ;;  %v7102_v29 = vor.u32 %v8392_v23, %v7099_v24 }
 0x29a   : > { %v7098_v46 = vor.u32 %v8393_v45, %v7097_v33  ;;  %v8389_v33 = vld [vmem:[#allocation10 + $0x1b4] sm:$0xf]  ;;  %v6985_v45 = vld [vmem:[#allocation10 + $0xe0] sm:$0xf] }
 0x29b   : > { %3483 = vmatpush.bf16.msra.mxu0 %v7030_v2  ;;  %v8387_v2 = vld [vmem:[#allocation10 + $0x1a0] sm:$0xf0]  ;;  %v6986_v48 = vor.u32 %v8364_v47, %v6985_v45 }
 0x29c   : > { %3459 = vmatpush.bf16.msrb.mxu2 %v7098_v46 }
 0x29d   : > { %3473 = vmatpush.bf16.msrb.mxu3 %v6898_v57  ;;  %3494 = vmatpush.bf16.msra.mxu1 %v7150_v35  ;;  %v7085_v57 = vld [vmem:[#allocation10 + $0x1b0] sm:$0xf]  ;;  %v6949_v35 = vld [vmem:[#allocation10 + $0x98] sm:$0xf] }
 0x29e   : > { %v7086_v61 = vor.u32 %v8390_v58, %v7085_v57  ;;  %v6950_v37 = vor.u32 %v8355_v36, %v6949_v35 }
 0x29f   : > { %3484 = vmatpush.bf16.msra.mxu0 %v7018_v18  ;;  %v7061_v18 = vld [vmem:[#allocation10 + $0x180] sm:$0xf] }
 0x2a0   : > { %3460 = vmatpush.bf16.msrb.mxu2 %v7086_v61  ;;  %v7062_v27 = vor.u32 %v8384_v17, %v7061_v18  ;;  %v8361_v61 = vld [vmem:[#allocation10 + $0xd0] sm:$0xf0]  ;;  %v6901_v17 = vld [vmem:[#allocation10 + $0x38] sm:$0xf] }
 0x2a1   : > { %3474 = vmatpush.bf16.msrb.mxu3 %v6886_v60  ;;  %3495 = vmatpush.bf16.msra.mxu1 %v7138_v56  ;;  %v7073_v60 = vld [vmem:[#allocation10 + $0x198] sm:$0xf]  ;;  %v7075_v56 = vld [vmem:[#allocation10 + $0x1a4] sm:$0xf0]  ;;  %v6974_v19 = vor.u32 %v8361_v61, %v6973_v55 }
 0x2a2   : > { %v7074_v7 = vor.u32 %v8387_v2, %v7073_v60  ;;  %v6913_v2 = vld [vmem:[#allocation10 + $0x50] sm:$0xf] }
 0x2a3   : > { %3485 = vmatpush.bf16.msra.mxu0 %v7006_v34  ;;  %v6998_v34 = vor.u32 %v8367_v44, %v6997_v31  ;;  %v8340_v31 = vld [vmem:[#allocation10 + $0x28] sm:$0xf0] }
 0x2a4   : > { %3461 = vmatpush.bf16.msrb.mxu2 %v7074_v7  ;;  %v6570_v7 = vld [vmem:[%s9160_s9 + $0x48] sm:$0xff] }
 0x2a5   : > { %3475 = vmatpush.bf16.msrb.mxu3 %v6874_v16  ;;  %3496 = vmatpush.bf16.msra.mxu1 %v7126_v50  ;;  %v7010_v16 = vor.u32 %v8370_v0, %v7009_v15  ;;  %v7063_v50 = vld [vmem:[#allocation10 + $0x18c] sm:$0xf0]  ;;  %v2903_v0 = vmul.f32 %v9364_v25, %v9374_v39  ;;  %v2904_v25 = vmul.f32 %v9376_v54, %v9393_v62 }
 0x2a6   : > { %v7066_v49 = vor.u32 %v8383_v20, %v7063_v50  ;;  %v8426_v20 = vld [vmem:[#allocation10 + $0x98] sm:$0xf0]  ;;  %v6572_v50 = vld [vmem:[%s9160_s9 + $0x58] sm:$0xff] }
 0x2a7   : > { %3486 = vmatpush.bf16.msra.mxu0 %v6994_v51  ;;  %v6937_v51 = vld [vmem:[#allocation10 + $0x80] sm:$0xf] }
 0x2a8   : > { %3462 = vmatpush.bf16.msrb.mxu2 %v7062_v27  ;;  %v6938_v30 = vor.u32 %v8352_v52, %v6937_v51  ;;  %v6571_v27 = vld [vmem:[%s9160_s9 + $0x50] sm:$0xff]  ;;  %v7141_v52 = vld [vmem:[#allocation10 + $0x218] sm:$0xf] }
 0x2a9   : > { %3520 = vmatpush.bf16.msra.mxu3 %v7058_v21  ;;  %3497 = vmatpush.bf16.msra.mxu1 %v7114_v11  ;;  %v8358_v21 = vld [vmem:[#allocation10 + $0xb8] sm:$0xf0] }
 0x2aa   : > { %v6962_v22 = vor.u32 %v8358_v21, %v6961_v63  ;;  %v8343_v63 = vld [vmem:[#allocation10 + $0x40] sm:$0xf0] }
 0x2ab   : > { %3487 = vmatpush.bf16.msra.mxu0 %v6982_v1  ;;  %v6925_v1 = vld [vmem:[#allocation10 + $0x68] sm:$0xf]  ;;  %v6902_v21 = vor.u32 %v8343_v63, %v6901_v17  ;;  %v8394_v17 = vld [vmem:[#allocation10 + $0x1d8] sm:$0xf0] }
 0x2ac   : > { %3507 = vmatpush.bf16.msra.mxu2 %v6962_v22  ;;  %v6926_v5 = vor.u32 %v8349_v4, %v6925_v1  ;;  %v7235_v1 = vld [vmem:[#allocation10 + $0x90] sm:$0xf] }
 0x2ad   : > { %3521 = vmatpush.bf16.msra.mxu3 %v7046_v40  ;;  %3498 = vmatpush.bf16.msra.mxu1 %v7102_v29  ;;  %v7087_v40 = vld [vmem:[#allocation10 + $0x1bc] sm:$0xf0] }
 0x2ae   : > { %v7090_v46 = vor.u32 %v8389_v33, %v7087_v40  ;;  %v6889_v29 = vld [vmem:[#allocation10 + $0x20] sm:$0xf] }
 0x2af   : > { %3488 = vmatpush.bf16.msra.mxu0 %v6970_v12  ;;  %v6890_v35 = vor.u32 %v8340_v31, %v6889_v29  ;;  %v7081_v29 = vld [vmem:[#allocation10 + $0x1a0] sm:$0xf]  ;;  %v8388_v31 = vld [vmem:[#allocation10 + $0x1a8] sm:$0xf0] }
 0x2b0   : > { %3508 = vmatpush.bf16.msra.mxu2 %v6950_v37 }
 0x2b1   : > { %3522 = vmatpush.bf16.msra.mxu3 %v7034_v59  ;;  %3499 = vmatpush.bf16.msra.mxu1 %v7090_v46  ;;  %v7078_v59 = vor.u32 %v8386_v41, %v7075_v56 }
 0x2b4   : > { %3509 = vmatpush.bf16.msra.mxu2 %v6938_v30  ;;  %v8403_v30 = vld [vmem:[#allocation10 + $0x220] sm:$0xf0] }
 0x2b5   : > { %3523 = vmatpush.bf16.msra.mxu3 %v7022_v26  ;;  %3500 = vmatpush.bf16.msra.mxu1 %v7078_v59  ;;  %v8346_v26 = vld [vmem:[#allocation10 + $0x58] sm:$0xf0]  ;;  %v7142_v55 = vor.u32 %v8403_v30, %v7141_v52  ;;  %v8417_v52 = vld [vmem:[#allocation10 + $0x50] sm:$0xf0] }
 0x2b6   : > { %v6914_v9 = vor.u32 %v8346_v26, %v6913_v2  ;;  %v7117_v2 = vld [vmem:[#allocation10 + $0x1e8] sm:$0xf]  ;;  %v7236_v26 = vor.u32 %v8426_v20, %v7235_v1 }
 0x2b8   : > { %3510 = vmatpush.bf16.msra.mxu2 %v6926_v5 }
 0x2b9   : > { %3524 = vmatpush.bf16.msra.mxu3 %v7010_v16  ;;  %3501 = vmatpush.bf16.msra.mxu1 %v7066_v49 }
 0x2bc   : > { %3511 = vmatpush.bf16.msra.mxu2 %v6914_v9  ;;  %v8423_v9 = vld [vmem:[#allocation10 + $0x80] sm:$0xf0] }
 0x2bd   : > { %3525 = vmatpush.bf16.msra.mxu3 %v6998_v34  ;;  %v8406_v34 = vld [vmem:[#allocation10 + $0x238] sm:$0xf0] }
 0x2c0   : > { %3512 = vmatpush.bf16.msra.mxu2 %v6902_v21 }
 0x2c1   : > { %3526 = vmatpush.bf16.msra.mxu3 %v6986_v48  ;;  %v6877_v48 = vld [vmem:[#allocation10 + $0x8] sm:$0xf] }
 0x2c4   : > { %3513 = vmatpush.bf16.msra.mxu2 %v6890_v35  ;;  %v8420_v35 = vld [vmem:[#allocation10 + $0x68] sm:$0xf0] }
 0x2c5   : > { %3527 = vmatpush.bf16.msra.mxu3 %v6974_v19  ;;  %v8429_v19 = vld [vmem:[#allocation10 + $0xb0] sm:$0xf0] }
 0x2eb   : > { %v2792_v8 = vpop.f32.mrf.mxu3  ;;  %v2805_v10 = vpop.f32.mrf.mxu0 }
 0x2ec   : > { %v2831_v32 = vpop.f32.mrf.mxu2  ;;  %v2806_v60 = vadd.f32 %v2805_v10, %v2792_v8 }
 0x2f3   : > { %v2794_v57 = vpop.f32.mrf.mxu3  ;;  %v2807_v58 = vpop.f32.mrf.mxu0 }
 0x2f4   : > { %v2833_v43 = vpop.f32.mrf.mxu2  ;;  %v7129_v57 = vld [vmem:[#allocation10 + $0x200] sm:$0xf]  ;;  %v8400_v58 = vld [vmem:[#allocation10 + $0x208] sm:$0xf0] }
 0x2f5   : > { %v7247_v43 = vld [vmem:[#allocation10 + $0xa8] sm:$0xf] }
 0x2f6   : > { %v7248_v5 = vor.u32 %v8429_v19, %v7247_v43  ;;  %v8422_v43 = vld [vmem:[#allocation10 + $0x7c] sm:$0xf]  ;;  %v7225_v19 = vld [vmem:[#allocation10 + $0x84] sm:$0xf0] }
 0x2f7   : > { %v7228_v1 = vor.u32 %v8422_v43, %v7225_v19  ;;  %v7309_v43 = vld [vmem:[#allocation10 + $0x12c] sm:$0xf0] }
 0x2f8   : > { %v7351_v19 = vld [vmem:[#allocation10 + $0x170] sm:$0xf] }
 0x2f9   : > { %v2818_v6 = vpop.f32.mrf.mxu1 }
 0x2fa   : > { %v2819_v12 = vadd.f32 %v2818_v6, %v2806_v60  ;;  %v7130_v60 = vor.u32 %v8400_v58, %v7129_v57  ;;  %v7223_v6 = vld [vmem:[#allocation10 + $0x78] sm:$0xf]  ;;  %v7187_v58 = vld [vmem:[#allocation10 + $0x30] sm:$0xf] }
 0x2fb   : > { %v2844_v38 = vpop.f32.mrf.mxu3  ;;  %v2857_v15 = vpop.f32.mrf.mxu0 }
 0x2fc   : > { %v2900_v11 = vadd.f32 %v6570_v7, %v2819_v12  ;;  %v2845_v16 = vadd.f32 %v2844_v38, %v2831_v32  ;;  %v2883_v18 = vpop.f32.mrf.mxu2  ;;  %v7153_v32 = vld [vmem:[#allocation10 + $0x230] sm:$0xf]  ;;  %v8397_v7 = vld [vmem:[#allocation10 + $0x1f0] sm:$0xf0]  ;;  %v2905_v38 = vmul.f32 %v9407_v28, %v9414_v42  ;;  %v7093_v28 = vld [vmem:[#allocation10 + $0x1b8] sm:$0xf] }
 0x2fd   : > { %v7154_v47 = vor.u32 %v8406_v34, %v7153_v32  ;;  %v7069_v32 = vld [vmem:[#allocation10 + $0x188] sm:$0xf]  ;;  %v8385_v34 = vld [vmem:[#allocation10 + $0x190] sm:$0xf0] }
 0x2fe   : > { %v2906_v22 = vadd.f32 %v2903_v0, %v2900_v11  ;;  %v2858_v23 = vadd.f32 %v2857_v15, %v2845_v16  ;;  %v7118_v11 = vor.u32 %v8397_v7, %v7117_v2  ;;  %v7224_v0 = vor.u32 %v8423_v9, %v7223_v6  ;;  %v7213_v2 = vld [vmem:[#allocation10 + $0x6c] sm:$0xf0]  ;;  %v7307_v7 = vld [vmem:[#allocation10 + $0x120] sm:$0xf]  ;;  %v8444_v6 = vld [vmem:[#allocation10 + $0x128] sm:$0xf0] }
 0x2ff   : > { %v7070_v13 = vor.u32 %v8385_v34, %v7069_v32  ;;  %v7308_v9 = vor.u32 %v8444_v6, %v7307_v7  ;;  %v7333_v32 = vld [vmem:[#allocation10 + $0x15c] sm:$0xf0] }
 0x300   : > { %v2909_v24 = vmul.f32 0.01, %v2906_v22  ;;  %v9442_v8 = vsel %vm2918_vm3, %v2906_v22, %v9374_v39  ;;  %v2901_v10 = vadd.f32 %v6571_v27, %v2858_v23 }
 0x301   : > { %v2820_v44 = vpop.f32.mrf.mxu1 }
 0x302   : > { %v2912_v36 = vmax.f32 %v2906_v22, %v2909_v24  ;;  %v2907_v37 = vadd.f32 %v2904_v25, %v2901_v10  ;;  %v8391_v24 = vld [vmem:[#allocation10 + $0x1c0] sm:$0xf0]  ;;  %v7082_v44 = vor.u32 %v8388_v31, %v7081_v29  ;;  %v7189_v29 = vld [vmem:[#allocation10 + $0x3c] sm:$0xf0]  ;;  %v8449_v31 = vld [vmem:[#allocation10 + $0x154] sm:$0xf] }
 0x303   : > { %v2846_v33 = vpop.f32.mrf.mxu3  ;;  %v2859_v40 = vpop.f32.mrf.mxu0  ;;  %v7336_v34 = vor.u32 %v8449_v31, %v7333_v32  ;;  %v7379_v31 = vld [vmem:[#allocation10 + $0x1b0] sm:$0xf] }
 0x304   : > { %v9449_v39 = vsel %vm2918_vm3, %v2912_v36, %v9383_v14  ;;  %6861 = vst [vmem:[%s9174_s8 + $0x48] sm:$0xff] %v2912_v36  ;;  %v2910_v45 = vmul.f32 0.01, %v2907_v37  ;;  %v9455_v54 = vsel %vm2918_vm3, %v2907_v37, %v9393_v62  ;;  %v2885_v46 = vpop.f32.mrf.mxu2  ;;  %v8337_v14 = vld [vmem:[#allocation10 + $0x10] sm:$0xf0] }
 0x305   : > { %v9459_v51 = vpack.c.bf16 %v9449_v39, %v9449_v39  ;;  %v6878_v56 = vor.u32 %v8337_v14, %v6877_v48  ;;  %v7249_v33 = vld [vmem:[#allocation10 + $0xb4] sm:$0xf0]  ;;  %v8453_v46 = vld [vmem:[#allocation10 + $0x170] sm:$0xf0]  ;;  %v7199_v48 = vld [vmem:[#allocation10 + $0x48] sm:$0xf] }
 0x306   : > { %v2913_v41 = vmax.f32 %v2907_v37, %v2910_v45  ;;  %v8428_v37 = vld [vmem:[#allocation10 + $0xac] sm:$0xf]  ;;  %v7343_v45 = vld [vmem:[#allocation10 + $0x168] sm:$0xf]  ;;  %v7200_v30 = vor.u32 %v8417_v52, %v7199_v48  ;;  %v8425_v14 = vld [vmem:[#allocation10 + $0x94] sm:$0xf] }
 0x307   : > { %3437 = vmatmul.bf16.vlgmr.msrb.gmra.mxu0 %v9459_v51  ;;  %3476 = vmatmul.bf16.vlgmr.msrb.gmra.mxu3 %v9459_v51  ;;  %v7252_v40 = vor.u32 %v8428_v37, %v7249_v33  ;;  %v8474_v37 = vld [vmem:[#allocation10 + $0x218] sm:$0xf0]  ;;  %v7321_v48 = vld [vmem:[#allocation10 + $0x144] sm:$0xf0] }
 0x308   : > { %v9466_v62 = vsel %vm2918_vm3, %v2913_v41, %v9400_v53  ;;  %6862 = vst [vmem:[%s9174_s8 + $0x50] sm:$0xff] %v2913_v41  ;;  %3533 = vmatpush.bf16.msrb.mxu0 %v7154_v47  ;;  %3514 = vmatpush.bf16.msra.mxu2 %v6878_v56  ;;  %v7344_v47 = vor.u32 %v8453_v46, %v7343_v45  ;;  %v7237_v41 = vld [vmem:[#allocation10 + $0x9c] sm:$0xf0]  ;;  %v7177_v45 = vld [vmem:[#allocation10 + $0x24] sm:$0xf0] }
 0x309   : > { %v2870_v59 = vpop.f32.mrf.mxu1  ;;  %v2947_v61 = vpack.c.bf16 %v9466_v62, %v9466_v62  ;;  %v7240_v56 = vor.u32 %v8425_v14, %v7237_v41  ;;  %v8446_v46 = vld [vmem:[#allocation10 + $0x13c] sm:$0xf]  ;;  %v8435_v14 = vld [vmem:[#allocation10 + $0xe0] sm:$0xf0]  ;;  %v7415_v41 = vld [vmem:[#allocation10 + $0x1f8] sm:$0xf] }
 0x30a   : > { %v2884_v4 = vadd.f32 %v2883_v18, %v2870_v59  ;;  %v7105_v18 = vld [vmem:[#allocation10 + $0x1d0] sm:$0xf]  ;;  %v8414_v59 = vld [vmem:[#allocation10 + $0x38] sm:$0xf0]  ;;  %v7324_v52 = vor.u32 %v8446_v46, %v7321_v48  ;;  %v8459_v48 = vld [vmem:[#allocation10 + $0x1a0] sm:$0xf0] }
 0x30b   : > { %v2896_v49 = vpop.f32.mrf.mxu3  ;;  %3450 = vmatmul.bf16.vlgmr.msrb.gmra.mxu1 %v2947_v61  ;;  %v7106_v23 = vor.u32 %v8394_v17, %v7105_v18  ;;  %v7345_v17 = vld [vmem:[#allocation10 + $0x174] sm:$0xf0] }
 0x30c   : > { %v2897_v53 = vadd.f32 %v2896_v49, %v2884_v4  ;;  %3534 = vmatpush.bf16.msrb.mxu0 %v7142_v55  ;;  %4075 = vmatpush.bf16.msrb.mxu1 %v7248_v5  ;;  %v8450_v55 = vld [vmem:[#allocation10 + $0x158] sm:$0xf0]  ;;  %v7319_v4 = vld [vmem:[#allocation10 + $0x138] sm:$0xf]  ;;  %v8447_v5 = vld [vmem:[#allocation10 + $0x140] sm:$0xf0] }
 0x30d   : > { %v7320_v20 = vor.u32 %v8447_v5, %v7319_v4  ;;  %v8411_v49 = vld [vmem:[#allocation10 + $0x20] sm:$0xf0] }
 0x30e   : > { %v2902_v12 = vadd.f32 %v6572_v50, %v2897_v53  ;;  %v7175_v50 = vld [vmem:[#allocation10 + $0x18] sm:$0xf] }
 0x30f   : > { %v7176_v53 = vor.u32 %v8411_v49, %v7175_v50  ;;  %v8432_v50 = vld [vmem:[#allocation10 + $0xc8] sm:$0xf0]  ;;  %v7403_v49 = vld [vmem:[#allocation10 + $0x1e0] sm:$0xf] }
 0x310   : > { %v2908_v15 = vadd.f32 %v2905_v38, %v2902_v12  ;;  %3535 = vmatpush.bf16.msrb.mxu0 %v7130_v60  ;;  %4076 = vmatpush.bf16.msrb.mxu1 %v7236_v26  ;;  %v8419_v60 = vld [vmem:[#allocation10 + $0x64] sm:$0xf]  ;;  %v7163_v12 = vld [vmem:[#allocation10] sm:$0xf]  ;;  %v8408_v38 = vld [vmem:[#allocation10 + $0x8] sm:$0xf0] }
 0x311   : > { %v2872_v16 = vpop.f32.mrf.mxu1  ;;  %v7216_v26 = vor.u32 %v8419_v60, %v7213_v2  ;;  %v8468_v60 = vld [vmem:[#allocation10 + $0x1e8] sm:$0xf0] }
 0x312   : > { %v2911_v63 = vmul.f32 0.01, %v2908_v15  ;;  %v9477_v27 = vsel %vm2918_vm3, %v2908_v15, %v9414_v42  ;;  %v7094_v42 = vor.u32 %v8391_v24, %v7093_v28  ;;  %v8452_v16 = vld [vmem:[#allocation10 + $0x16c] sm:$0xf]  ;;  %v8477_v24 = vld [vmem:[#allocation10 + $0x230] sm:$0xf0]  ;;  %v7404_v7 = vor.u32 %v8468_v60, %v7403_v49 }
 0x313   : > { %v2898_v21 = vpop.f32.mrf.mxu3  ;;  %v8476_v2 = vld [vmem:[#allocation10 + $0x22c] sm:$0xf]  ;;  %v8430_v60 = vld [vmem:[#allocation10 + $0xb8] sm:$0xf0] }
 0x314   : > { %v2914_v22 = vmax.f32 %v2908_v15, %v2911_v63  ;;  %3536 = vmatpush.bf16.msrb.mxu0 %v7118_v11  ;;  %4077 = vmatpush.bf16.msrb.mxu1 %v7224_v0  ;;  %v7164_v15 = vor.u32 %v8408_v38, %v7163_v12  ;;  %v8416_v11 = vld [vmem:[#allocation10 + $0x4c] sm:$0xf]  ;;  %v7201_v0 = vld [vmem:[#allocation10 + $0x54] sm:$0xf0]  ;;  %v7348_v63 = vor.u32 %v8452_v16, %v7345_v17  ;;  %v7295_v21 = vld [vmem:[#allocation10 + $0x108] sm:$0xf] }
 0x315   : > { %v7204_v18 = vor.u32 %v8416_v11, %v7201_v0  ;;  %v7297_v12 = vld [vmem:[#allocation10 + $0x114] sm:$0xf0]  ;;  %v8451_v11 = vld [vmem:[#allocation10 + $0x160] sm:$0xf0]  ;;  %v7391_v16 = vld [vmem:[#allocation10 + $0x1c8] sm:$0xf] }
 0x316   : > { %v9482_v10 = vsel %vm2918_vm3, %v2914_v22, %v9419_v3  ;;  %6863 = vst [vmem:[%s9174_s8 + $0x58] sm:$0xff] %v2914_v22  ;;  %v7211_v3 = vld [vmem:[#allocation10 + $0x60] sm:$0xf]  ;;  %v8441_v22 = vld [vmem:[#allocation10 + $0x110] sm:$0xf0] }
 0x317   : > { %3489 = vmatmul.bf16.vlgmr.msra.gmra.mxu0 %v2947_v61  ;;  %3528 = vmatmul.bf16.vlgmr.msra.gmra.mxu3 %v2947_v61  ;;  %v2948_v25 = vpack.c.bf16 %v9482_v10, %v9482_v10  ;;  %v7212_v36 = vor.u32 %v8420_v35, %v7211_v3  ;;  %v7188_v61 = vor.u32 %v8414_v59, %v7187_v58  ;;  %v8438_v3 = vld [vmem:[#allocation10 + $0xf8] sm:$0xf0]  ;;  %v7427_v35 = vld [vmem:[#allocation10 + $0x210] sm:$0xf]  ;;  %v8443_v59 = vld [vmem:[#allocation10 + $0x124] sm:$0xf] }
 0x318   : > { %3537 = vmatpush.bf16.msrb.mxu0 %v7106_v23  ;;  %v7439_v23 = vld [vmem:[#allocation10 + $0x228] sm:$0xf]  ;;  %v7296_v28 = vor.u32 %v8441_v22, %v7295_v21  ;;  %v7428_v33 = vor.u32 %v8474_v37, %v7427_v35  ;;  %v7165_v58 = vld [vmem:[#allocation10 + $0xc] sm:$0xf0]  ;;  %v7312_v4 = vor.u32 %v8443_v59, %v7309_v43  ;;  %v7429_v21 = vld [vmem:[#allocation10 + $0x21c] sm:$0xf0] }
 0x319   : > { %3463 = vmatmul.bf16.vlgmr.msrb.gmra.mxu2 %v2948_v25  ;;  %4078 = vmatpush.bf16.msrb.mxu1 %v7212_v36  ;;  %v7273_v37 = vld [vmem:[#allocation10 + $0xe4] sm:$0xf0]  ;;  %v8442_v59 = vld [vmem:[#allocation10 + $0x118] sm:$0xf0] }
 0x31a   : > { %4088 = vmatpush.bf16.msrb.mxu2 %v7344_v47 }
 0x31b   : > { %3502 = vmatmul.bf16.vlgmr.msra.gmra.mxu1 %v2948_v25 }
 0x31c   : > { %3538 = vmatpush.bf16.msrb.mxu0 %v7094_v42  ;;  %v8413_v42 = vld [vmem:[#allocation10 + $0x34] sm:$0xf] }
 0x31d   : > { %4079 = vmatpush.bf16.msrb.mxu1 %v7200_v30  ;;  %v7271_v30 = vld [vmem:[#allocation10 + $0xd8] sm:$0xf] }
 0x320   : > { %3539 = vmatpush.bf16.msrb.mxu0 %v7082_v44  ;;  %v7192_v44 = vor.u32 %v8413_v42, %v7189_v29  ;;  %v8448_v42 = vld [vmem:[#allocation10 + $0x148] sm:$0xf0] }
 0x321   : > { %4080 = vmatpush.bf16.msrb.mxu1 %v7188_v61 }
 0x324   : > { %3540 = vmatpush.bf16.msrb.mxu0 %v7070_v13  ;;  %v7283_v13 = vld [vmem:[#allocation10 + $0xf0] sm:$0xf] }
 0x325   : > { %4081 = vmatpush.bf16.msrb.mxu1 %v7176_v53  ;;  %v7284_v36 = vor.u32 %v8438_v3, %v7283_v13  ;;  %v7417_v13 = vld [vmem:[#allocation10 + $0x204] sm:$0xf0] }
 0x327   : > { %3541 = vmatmul.bf16.vlgmr.msrb.gmra.mxu0 %v2948_v25  ;;  %v7440_v25 = vor.u32 %v8477_v24, %v7439_v23  ;;  %v8437_v23 = vld [vmem:[#allocation10 + $0xf4] sm:$0xf] }
 0x328   : > { %4114 = vmatpush.bf16.msra.mxu0 %v7252_v40  ;;  %v8410_v40 = vld [vmem:[#allocation10 + $0x1c] sm:$0xf] }
 0x329   : > { %3515 = vmatmul.bf16.vlgmr.msra.gmra.mxu2 %v9459_v51  ;;  %v7331_v51 = vld [vmem:[#allocation10 + $0x150] sm:$0xf]  ;;  %4082 = vmatpush.bf16.msrb.mxu1 %v7164_v15  ;;  %v7180_v47 = vor.u32 %v8410_v40, %v7177_v45  ;;  %v7339_v15 = vld [vmem:[#allocation10 + $0x158] sm:$0xf]  ;;  %v7315_v40 = vld [vmem:[#allocation10 + $0x128] sm:$0xf] }
 0x32a   : > { %v7332_v57 = vor.u32 %v8450_v55, %v7331_v51  ;;  %4101 = vmatpush.bf16.msrb.mxu3 %v7440_v25  ;;  %v8471_v51 = vld [vmem:[#allocation10 + $0x200] sm:$0xf0]  ;;  %v7340_v0 = vor.u32 %v8451_v11, %v7339_v15  ;;  %v7327_v25 = vld [vmem:[#allocation10 + $0x140] sm:$0xf]  ;;  %v8445_v45 = vld [vmem:[#allocation10 + $0x130] sm:$0xf0] }
 0x32b   : > { %v7416_v55 = vor.u32 %v8471_v51, %v7415_v41  ;;  %v7328_v29 = vor.u32 %v8448_v42, %v7327_v25  ;;  %v7316_v46 = vor.u32 %v8445_v45, %v7315_v40  ;;  %v8431_v51 = vld [vmem:[#allocation10 + $0xc4] sm:$0xf]  ;;  %v8424_v42 = vld [vmem:[#allocation10 + $0x88] sm:$0xf0]  ;;  %v8421_v45 = vld [vmem:[#allocation10 + $0x70] sm:$0xf0] }
 0x32c   : > { %4115 = vmatpush.bf16.msra.mxu0 %v7240_v56  ;;  %4089 = vmatpush.bf16.msrb.mxu2 %v7332_v57  ;;  %v7272_v56 = vor.u32 %v8435_v14, %v7271_v30  ;;  %v8407_v57 = vld [vmem:[#allocation10 + $0x4] sm:$0xf]  ;;  %v7405_v14 = vld [vmem:[#allocation10 + $0x1ec] sm:$0xf0] }
 0x32d   : > { %4127 = vmatpush.bf16.msra.mxu1 %v7348_v63  ;;  %v7168_v61 = vor.u32 %v8407_v57, %v7165_v58  ;;  %v8473_v63 = vld [vmem:[#allocation10 + $0x214] sm:$0xf]  ;;  %v8467_v30 = vld [vmem:[#allocation10 + $0x1e4] sm:$0xf]  ;;  %v7303_v58 = vld [vmem:[#allocation10 + $0x110] sm:$0xf] }
 0x32e   : > { %4102 = vmatpush.bf16.msrb.mxu3 %v7428_v33  ;;  %v7432_v22 = vor.u32 %v8473_v63, %v7429_v21  ;;  %v7304_v43 = vor.u32 %v8442_v59, %v7303_v58  ;;  %v6864_v58 = vld [vmem:[%s9160_s9 + $0x60] sm:$0xff] }
 0x330   : > { %4116 = vmatpush.bf16.msra.mxu0 %v7228_v1  ;;  %4090 = vmatpush.bf16.msrb.mxu2 %v7320_v20  ;;  %v8454_v1 = vld [vmem:[#allocation10 + $0x178] sm:$0xf0]  ;;  %v7259_v20 = vld [vmem:[#allocation10 + $0xc0] sm:$0xf] }
 0x331   : > { %4128 = vmatpush.bf16.msra.mxu1 %v7336_v34  ;;  %v7352_v5 = vor.u32 %v8454_v1, %v7351_v19  ;;  %v7260_v53 = vor.u32 %v8432_v50, %v7259_v20  ;;  %v8470_v34 = vld [vmem:[#allocation10 + $0x1fc] sm:$0xf]  ;;  %v7355_v19 = vld [vmem:[#allocation10 + $0x180] sm:$0xf]  ;;  %v8456_v1 = vld [vmem:[#allocation10 + $0x188] sm:$0xf0] }
 0x332   : > { %4103 = vmatpush.bf16.msrb.mxu3 %v7416_v55  ;;  %v7420_v35 = vor.u32 %v8470_v34, %v7417_v13  ;;  %v7261_v55 = vld [vmem:[#allocation10 + $0xcc] sm:$0xf0]  ;;  %v7393_v20 = vld [vmem:[#allocation10 + $0x1d4] sm:$0xf0]  ;;  %v8455_v13 = vld [vmem:[#allocation10 + $0x184] sm:$0xf] }
 0x333   : > { %v7264_v57 = vor.u32 %v8431_v51, %v7261_v55  ;;  %v7255_v50 = vld [vmem:[#allocation10 + $0xb0] sm:$0xf] }
 0x334   : > { %4117 = vmatpush.bf16.msra.mxu0 %v7216_v26  ;;  %4091 = vmatpush.bf16.msrb.mxu2 %v7308_v9  ;;  %v7441_v26 = vld [vmem:[#allocation10 + $0x234] sm:$0xf0]  ;;  %v8440_v9 = vld [vmem:[#allocation10 + $0x10c] sm:$0xf]  ;;  %v7207_v55 = vld [vmem:[#allocation10 + $0x50] sm:$0xf] }
 0x335   : > { %4129 = vmatpush.bf16.msra.mxu1 %v7324_v52  ;;  %v7444_v6 = vor.u32 %v8476_v2, %v7441_v26  ;;  %v7300_v38 = vor.u32 %v8440_v9, %v7297_v12  ;;  %v7256_v2 = vor.u32 %v8430_v60, %v7255_v50  ;;  %v7291_v26 = vld [vmem:[#allocation10 + $0xf8] sm:$0xf]  ;;  %v8461_v9 = vld [vmem:[#allocation10 + $0x1b4] sm:$0xf]  ;;  %v7381_v12 = vld [vmem:[#allocation10 + $0x1bc] sm:$0xf0] }
 0x336   : > { %4104 = vmatpush.bf16.msrb.mxu3 %v7404_v7  ;;  %v8439_v7 = vld [vmem:[#allocation10 + $0x100] sm:$0xf0]  ;;  %v7384_v11 = vor.u32 %v8461_v9, %v7381_v12  ;;  %v7195_v50 = vld [vmem:[#allocation10 + $0x38] sm:$0xf]  ;;  %v7183_v12 = vld [vmem:[#allocation10 + $0x20] sm:$0xf] }
 0x338   : > { %4118 = vmatpush.bf16.msra.mxu0 %v7204_v18  ;;  %4092 = vmatpush.bf16.msrb.mxu2 %v7296_v28  ;;  %v8465_v18 = vld [vmem:[#allocation10 + $0x1d0] sm:$0xf0]  ;;  %v7285_v28 = vld [vmem:[#allocation10 + $0xfc] sm:$0xf0] }
 0x339   : > { %4130 = vmatpush.bf16.msra.mxu1 %v7312_v4  ;;  %v7392_v17 = vor.u32 %v8465_v18, %v7391_v16  ;;  %v7288_v24 = vor.u32 %v8437_v23, %v7285_v28  ;;  %v7356_v4 = vor.u32 %v8456_v1, %v7355_v19  ;;  %v7279_v18 = vld [vmem:[#allocation10 + $0xe0] sm:$0xf]  ;;  %v7369_v23 = vld [vmem:[#allocation10 + $0x1a4] sm:$0xf0] }
 0x33a   : > { %v7231_v28 = vld [vmem:[#allocation10 + $0x80] sm:$0xf] }
 0x33b   : > { %4105 = vmatpush.bf16.msrb.mxu3 %v7392_v17  ;;  %v8436_v17 = vld [vmem:[#allocation10 + $0xe8] sm:$0xf0] }
 0x33c   : > { %4119 = vmatpush.bf16.msra.mxu0 %v7192_v44  ;;  %4093 = vmatpush.bf16.msrb.mxu2 %v7284_v36  ;;  %v8462_v44 = vld [vmem:[#allocation10 + $0x1b8] sm:$0xf0]  ;;  %v7280_v21 = vor.u32 %v8436_v17, %v7279_v18 }
 0x33d   : > { %4131 = vmatpush.bf16.msra.mxu1 %v7300_v38  ;;  %v7380_v32 = vor.u32 %v8462_v44, %v7379_v31  ;;  %v8434_v36 = vld [vmem:[#allocation10 + $0xdc] sm:$0xf]  ;;  %v7243_v38 = vld [vmem:[#allocation10 + $0x98] sm:$0xf]  ;;  %v7267_v31 = vld [vmem:[#allocation10 + $0xc8] sm:$0xf] }
 0x33e   : > { %v7276_v33 = vor.u32 %v8434_v36, %v7273_v37  ;;  %v8433_v44 = vld [vmem:[#allocation10 + $0xd0] sm:$0xf0]  ;;  %v7219_v36 = vld [vmem:[#allocation10 + $0x68] sm:$0xf]  ;;  %v6865_v37 = vld [vmem:[%s9160_s9 + $0x68] sm:$0xff] }
 0x33f   : > { %4106 = vmatpush.bf16.msrb.mxu3 %v7380_v32  ;;  %v7268_v32 = vor.u32 %v8433_v44, %v7267_v31 }
 0x340   : > { %4120 = vmatpush.bf16.msra.mxu0 %v7180_v47  ;;  %4094 = vmatpush.bf16.msrb.mxu2 %v7272_v56  ;;  %v7367_v47 = vld [vmem:[#allocation10 + $0x198] sm:$0xf]  ;;  %v7408_v56 = vor.u32 %v8467_v30, %v7405_v14 }
 0x341   : > { %4132 = vmatpush.bf16.msra.mxu1 %v7288_v24  ;;  %v7368_v52 = vor.u32 %v8459_v48, %v7367_v47  ;;  %v9500_v47 = vstv %s3562_s7  ;;  %v7220_v48 = vor.u32 %v8421_v45, %v7219_v36  ;;  %s5554_s7 = sshll.u32 %s9003_s2, 4  ;;  %s5555_s7 = int_to_ptr.vmem [resolvable:$true] %s5554_s7 }
 0x342   : > { %vm3564_vm4 = vcmp.eq.s32.totalorder %v9500_v47, 1  ;;  %v8457_v47 = vld [vmem:[#allocation10 + $0x190] sm:$0xf0] }
 0x343   : > { %4107 = vmatpush.bf16.msrb.mxu3 %v7368_v52 }
 0x344   : > { %4121 = vmatpush.bf16.msra.mxu0 %v7168_v61  ;;  %4095 = vmatpush.bf16.msrb.mxu2 %v7260_v53 }
 0x345   : > { %4133 = vmatpush.bf16.msra.mxu1 %v7276_v33 }
 0x347   : > { %4108 = vmatpush.bf16.msrb.mxu3 %v7356_v4 }
 0x348   : > { %4166 = vmatpush.bf16.msrb.mxu0 %v7352_v5  ;;  %4140 = vmatpush.bf16.msra.mxu2 %v7444_v6  ;;  %v8464_v5 = vld [vmem:[#allocation10 + $0x1cc] sm:$0xf]  ;;  %v7292_v6 = vor.u32 %v8439_v7, %v7291_v26 }
 0x349   : > { %4134 = vmatpush.bf16.msra.mxu1 %v7264_v57  ;;  %v7396_v53 = vor.u32 %v8464_v5, %v7393_v20  ;;  %v8418_v57 = vld [vmem:[#allocation10 + $0x58] sm:$0xf0]  ;;  %v9517_v5 = vld [vmem:[#allocation12] sm:$0xff] }
 0x34a   : > { %v3549_v20 = vmul.f32 %v9517_v5, %v9442_v8 }
 0x34b   : > { %4153 = vmatpush.bf16.msra.mxu3 %v7256_v2 }
 0x34c   : > { %4167 = vmatpush.bf16.msrb.mxu0 %v7340_v0  ;;  %4141 = vmatpush.bf16.msra.mxu2 %v7432_v22  ;;  %v8427_v0 = vld [vmem:[#allocation10 + $0xa0] sm:$0xf0]  ;;  %v8458_v22 = vld [vmem:[#allocation10 + $0x19c] sm:$0xf] }
 0x34d   : > { %v7244_v16 = vor.u32 %v8427_v0, %v7243_v38  ;;  %v7372_v25 = vor.u32 %v8458_v22, %v7369_v23  ;;  %v7447_v0 = vld [vmem:[#allocation10 + $0x230] sm:$0xf]  ;;  %v8409_v22 = vld [vmem:[#allocation10 + $0x10] sm:$0xf0] }
 0x34f   : > { %4154 = vmatpush.bf16.msra.mxu3 %v7244_v16  ;;  %v8478_v16 = vld [vmem:[#allocation10 + $0x238] sm:$0xf0] }
 0x350   : > { %4168 = vmatpush.bf16.msrb.mxu0 %v7328_v29  ;;  %4142 = vmatpush.bf16.msra.mxu2 %v7420_v35  ;;  %v7232_v29 = vor.u32 %v8424_v42, %v7231_v28  ;;  %v7357_v35 = vld [vmem:[#allocation10 + $0x18c] sm:$0xf0]  ;;  %v7435_v28 = vld [vmem:[#allocation10 + $0x218] sm:$0xf]  ;;  %v7423_v42 = vld [vmem:[#allocation10 + $0x200] sm:$0xf] }
 0x351   : > { %v7360_v40 = vor.u32 %v8455_v13, %v7357_v35  ;;  %v7529_v13 = vld [vmem:[#allocation10 + $0x90] sm:$0xf] }
 0x353   : > { %4155 = vmatpush.bf16.msra.mxu3 %v7232_v29  ;;  %v8472_v29 = vld [vmem:[#allocation10 + $0x208] sm:$0xf0] }
 0x354   : > { %4169 = vmatpush.bf16.msrb.mxu0 %v7316_v46  ;;  %4143 = vmatpush.bf16.msra.mxu2 %v7408_v56  ;;  %v9506_v56 = vld [vmem:[#allocation12 + $0x8] sm:$0xff]  ;;  %v7424_v45 = vor.u32 %v8472_v29, %v7423_v42  ;;  %v8522_v42 = vld [vmem:[#allocation10 + $0x158] sm:$0xf0] }
 0x355   : > { %v3550_v51 = vmul.f32 %v9506_v56, %v9455_v54 }
 0x357   : > { %4156 = vmatpush.bf16.msra.mxu3 %v7220_v48 }
 0x358   : > { %4170 = vmatpush.bf16.msrb.mxu0 %v7304_v43  ;;  %4144 = vmatpush.bf16.msra.mxu2 %v7396_v53  ;;  %v7208_v43 = vor.u32 %v8418_v57, %v7207_v55  ;;  %v9551_v57 = vld [vmem:[#allocation12 + $0x10] sm:$0xff] }
 0x35b   : > { %4157 = vmatpush.bf16.msra.mxu3 %v7208_v43 }
 0x35c   : > { %4171 = vmatpush.bf16.msrb.mxu0 %v7292_v6  ;;  %4145 = vmatpush.bf16.msra.mxu2 %v7384_v11 }
 0x360   : > { %4172 = vmatpush.bf16.msrb.mxu0 %v7280_v21  ;;  %4146 = vmatpush.bf16.msra.mxu2 %v7372_v25  ;;  %v7171_v21 = vld [vmem:[#allocation10 + $0x8] sm:$0xf] }
 0x361   : > { %v7172_v25 = vor.u32 %v8409_v22, %v7171_v21  ;;  %v7493_v21 = vld [vmem:[#allocation10 + $0x48] sm:$0xf]  ;;  %v8489_v22 = vld [vmem:[#allocation10 + $0x50] sm:$0xf0] }
 0x364   : > { %4173 = vmatpush.bf16.msrb.mxu0 %v7268_v32  ;;  %4147 = vmatpush.bf16.msra.mxu2 %v7360_v40  ;;  %v7541_v32 = vld [vmem:[#allocation10 + $0xa8] sm:$0xf] }
 0x384   : > { %v9488_v3 = vpop.f32.mrf.mxu0 }
 0x388   : > { %v9490_v41 = vpop.f32.mrf.mxu1 }
 0x389   : > { %v3452_v30 = vadd.f32 %v9490_v41, %v9488_v3 }
 0x38a   : > { %v3477_v61 = vpop.f32.mrf.mxu3 }
 0x38c   : > { %v3440_v49 = vpop.f32.mrf.mxu0 }
 0x38d   : > { %v8415_v49 = vld [vmem:[#allocation10 + $0x40] sm:$0xf0] }
 0x38e   : > { %v7196_v60 = vor.u32 %v8415_v49, %v7195_v50  ;;  %v7387_v49 = vld [vmem:[#allocation10 + $0x1b8] sm:$0xf] }
 0x390   : > { %v3453_v15 = vpop.f32.mrf.mxu1  ;;  %4158 = vmatpush.bf16.msra.mxu3 %v7196_v60 }
 0x392   : > { %v3479_v63 = vpop.f32.mrf.mxu3 }
 0x393   : > { %v7448_v63 = vor.u32 %v8478_v16, %v7447_v0  ;;  %v8500_v0 = vld [vmem:[#allocation10 + $0xac] sm:$0xf]  ;;  %v7543_v16 = vld [vmem:[#allocation10 + $0xb4] sm:$0xf0] }
 0x394   : > { %v3490_v24 = vpop.f32.mrf.mxu0 }
 0x395   : > { %v3491_v34 = vadd.f32 %v3490_v24, %v3477_v61  ;;  %v8475_v24 = vld [vmem:[#allocation10 + $0x220] sm:$0xf0] }
 0x398   : > { %v3503_v33 = vpop.f32.mrf.mxu1 }
 0x399   : > { %v3504_v46 = vadd.f32 %v3503_v33, %v3491_v34  ;;  %v8501_v34 = vld [vmem:[#allocation10 + $0xb0] sm:$0xf0]  ;;  %v6866_v33 = vld [vmem:[%s9160_s9 + $0x70] sm:$0xff] }
 0x39a   : > { %v9502_v52 = vpop.f32.mrf.mxu3  ;;  %v7542_v36 = vor.u32 %v8501_v34, %v7541_v32  ;;  %v8494_v34 = vld [vmem:[#allocation10 + $0x7c] sm:$0xf] }
 0x39b   : > { %v3547_v14 = vadd.f32 %v6865_v37, %v3504_v46  ;;  %v8498_v37 = vld [vmem:[#allocation10 + $0x98] sm:$0xf0]  ;;  %v7411_v46 = vld [vmem:[#allocation10 + $0x1e8] sm:$0xf] }
 0x39c   : > { %v3464_v59 = vpop.f32.mrf.mxu2  ;;  %v3492_v61 = vpop.f32.mrf.mxu0  ;;  %v7530_v48 = vor.u32 %v8498_v37, %v7529_v13  ;;  %v7519_v13 = vld [vmem:[#allocation10 + $0x84] sm:$0xf0]  ;;  %v8519_v37 = vld [vmem:[#allocation10 + $0x140] sm:$0xf0] }
 0x39d   : > { %v3553_v19 = vadd.f32 %v3550_v51, %v3547_v14  ;;  %v3465_v1 = vadd.f32 %v3464_v59, %v3452_v30  ;;  %v8469_v30 = vld [vmem:[#allocation10 + $0x1f0] sm:$0xf0]  ;;  %v7517_v14 = vld [vmem:[#allocation10 + $0x78] sm:$0xf]  ;;  %v8495_v51 = vld [vmem:[#allocation10 + $0x80] sm:$0xf0] }
 0x39e   : > { %v7518_v61 = vor.u32 %v8495_v51, %v7517_v14  ;;  %v7601_v51 = vld [vmem:[#allocation10 + $0x120] sm:$0xf] }
 0x39f   : > { %v3556_v4 = vmul.f32 0.01, %v3553_v19  ;;  %v9515_v3 = vsel %vm3564_vm4, %v3553_v19, %v9455_v54  ;;  %v3546_v41 = vadd.f32 %v6864_v58, %v3465_v1  ;;  %v3551_v58 = vmul.f32 %v9551_v57, %v9477_v27  ;;  %v8466_v1 = vld [vmem:[#allocation10 + $0x1d8] sm:$0xf0] }
 0x3a0   : > { %v3505_v53 = vpop.f32.mrf.mxu1 }
 0x3a1   : > { %v3559_v2 = vmax.f32 %v3553_v19, %v3556_v4  ;;  %v3552_v26 = vadd.f32 %v3549_v20, %v3546_v41  ;;  %v7399_v19 = vld [vmem:[#allocation10 + $0x1d0] sm:$0xf]  ;;  %v8463_v53 = vld [vmem:[#allocation10 + $0x1c0] sm:$0xf0] }
 0x3a2   : > { %v3531_v7 = vpop.f32.mrf.mxu3  ;;  %v7400_v50 = vor.u32 %v8466_v1, %v7399_v19  ;;  %v7495_v19 = vld [vmem:[#allocation10 + $0x54] sm:$0xf0]  ;;  %v8524_v1 = vld [vmem:[#allocation10 + $0x16c] sm:$0xf] }
 0x3a3   : > { %v9524_v6 = vsel %vm3564_vm4, %v3559_v2, %v9466_v62  ;;  %7156 = vst [vmem:[%s9174_s8 + $0x68] sm:$0xff] %v3559_v2  ;;  %v3555_v54 = vmul.f32 0.01, %v3552_v26  ;;  %v9530_v9 = vsel %vm3564_vm4, %v3552_v26, %v9442_v8  ;;  %v8412_v62 = vld [vmem:[#allocation10 + $0x28] sm:$0xf0]  ;;  %v7388_v2 = vor.u32 %v8463_v53, %v7387_v49 }
 0x3a4   : > { %v3466_v38 = vpop.f32.mrf.mxu2  ;;  %v3542_v15 = vpop.f32.mrf.mxu0  ;;  %v9534_v11 = vpack.c.bf16 %v9524_v6, %v9524_v6  ;;  %v7184_v17 = vor.u32 %v8412_v62, %v7183_v12  ;;  %v8460_v7 = vld [vmem:[#allocation10 + $0x1a8] sm:$0xf0]  ;;  %v7363_v12 = vld [vmem:[#allocation10 + $0x188] sm:$0xf]  ;;  %v7546_v62 = vor.u32 %v8500_v0, %v7543_v16  ;;  %v8513_v53 = vld [vmem:[#allocation10 + $0x110] sm:$0xf0] }
 0x3a5   : > { %v3558_v18 = vmax.f32 %v3552_v26, %v3555_v54  ;;  %v7375_v26 = vld [vmem:[#allocation10 + $0x1a0] sm:$0xf]  ;;  %v7589_v49 = vld [vmem:[#allocation10 + $0x108] sm:$0xf]  ;;  %v8510_v0 = vld [vmem:[#allocation10 + $0xf8] sm:$0xf0] }
 0x3a6   : > { %4096 = vmatmul.bf16.vlgmr.msrb.gmra.mxu2 %v9534_v11  ;;  %4159 = vmatpush.bf16.msra.mxu3 %v7184_v17  ;;  %v7376_v54 = vor.u32 %v8460_v7, %v7375_v26  ;;  %v7505_v38 = vld [vmem:[#allocation10 + $0x60] sm:$0xf]  ;;  %v8525_v17 = vld [vmem:[#allocation10 + $0x170] sm:$0xf0]  ;;  %v7721_v16 = vld [vmem:[#allocation10 + $0x210] sm:$0xf] }
 0x3a7   : > { %v9540_v8 = vsel %vm3564_vm4, %v3558_v18, %v9449_v39  ;;  %7155 = vst [vmem:[%s9174_s8 + $0x60] sm:$0xff] %v3558_v18  ;;  %v7436_v39 = vor.u32 %v8475_v24, %v7435_v28  ;;  %4721 = vmatpush.bf16.msrb.mxu2 %v7542_v36  ;;  %v7637_v18 = vld [vmem:[#allocation10 + $0x168] sm:$0xf]  ;;  %v7494_v28 = vor.u32 %v8489_v22, %v7493_v21  ;;  %v8497_v24 = vld [vmem:[#allocation10 + $0x94] sm:$0xf] }
 0x3a8   : > { %v9545_v23 = vpack.c.bf16 %v9540_v8, %v9540_v8  ;;  %v7613_v36 = vld [vmem:[#allocation10 + $0x138] sm:$0xf]  ;;  %v8549_v26 = vld [vmem:[#allocation10 + $0x230] sm:$0xf0]  ;;  %v7471_v21 = vld [vmem:[#allocation10 + $0x24] sm:$0xf0] }
 0x3a9   : > { %v8518_v22 = vld [vmem:[#allocation10 + $0x13c] sm:$0xf] }
 0x3aa   : > { %4083 = vmatmul.bf16.vlgmr.msrb.gmra.mxu1 %v9545_v23  ;;  %4122 = vmatmul.bf16.vlgmr.msra.gmra.mxu0 %v9545_v23 }
 0x3ab   : > { %4179 = vmatpush.bf16.msrb.mxu1 %v7448_v63  ;;  %4160 = vmatpush.bf16.msra.mxu3 %v7172_v25  ;;  %v7638_v63 = vor.u32 %v8525_v17, %v7637_v18  ;;  %v7531_v25 = vld [vmem:[#allocation10 + $0x9c] sm:$0xf0]  ;;  %v8546_v18 = vld [vmem:[#allocation10 + $0x218] sm:$0xf0] }
 0x3ac   : > { %v3516_v31 = vpop.f32.mrf.mxu2  ;;  %v3544_v44 = vpop.f32.mrf.mxu0  ;;  %4722 = vmatpush.bf16.msrb.mxu2 %v7530_v48  ;;  %v8491_v48 = vld [vmem:[#allocation10 + $0x64] sm:$0xf]  ;;  %v7722_v17 = vor.u32 %v8546_v18, %v7721_v16  ;;  %v8542_v16 = vld [vmem:[#allocation10 + $0x1fc] sm:$0xf] }
 0x3ad   : > { %v3530_v35 = vadd.f32 %v9502_v52, %v3516_v31  ;;  %v7412_v52 = vor.u32 %v8469_v30, %v7411_v46  ;;  %v7481_v31 = vld [vmem:[#allocation10 + $0x30] sm:$0xf]  ;;  %v8486_v44 = vld [vmem:[#allocation10 + $0x38] sm:$0xf0] }
 0x3ae   : > { %v7482_v32 = vor.u32 %v8486_v44, %v7481_v31  ;;  %v7507_v30 = vld [vmem:[#allocation10 + $0x6c] sm:$0xf0]  ;;  %v8543_v31 = vld [vmem:[#allocation10 + $0x200] sm:$0xf0] }
 0x3af   : > { %v3543_v40 = vadd.f32 %v3542_v15, %v3530_v35  ;;  %4180 = vmatpush.bf16.msrb.mxu1 %v7436_v39  ;;  %v8492_v15 = vld [vmem:[#allocation10 + $0x68] sm:$0xf0]  ;;  %v7534_v39 = vor.u32 %v8497_v24, %v7531_v25  ;;  %v7522_v35 = vor.u32 %v8494_v34, %v7519_v13  ;;  %v7510_v14 = vor.u32 %v8491_v48, %v7507_v30  ;;  %v7615_v24 = vld [vmem:[#allocation10 + $0x144] sm:$0xf0]  ;;  %v7459_v34 = vld [vmem:[#allocation10 + $0xc] sm:$0xf0] }
 0x3b0   : > { %4723 = vmatpush.bf16.msrb.mxu2 %v7518_v61  ;;  %v7618_v25 = vor.u32 %v8518_v22, %v7615_v24  ;;  %v8515_v13 = vld [vmem:[#allocation10 + $0x124] sm:$0xf]  ;;  %v8504_v48 = vld [vmem:[#allocation10 + $0xc8] sm:$0xf0]  ;;  %v7697_v30 = vld [vmem:[#allocation10 + $0x1e0] sm:$0xf] }
 0x3b1   : > { %v3548_v55 = vadd.f32 %v6866_v33, %v3543_v40  ;;  %v7614_v33 = vor.u32 %v8519_v37, %v7613_v36  ;;  %v7469_v40 = vld [vmem:[#allocation10 + $0x18] sm:$0xf]  ;;  %v7603_v36 = vld [vmem:[#allocation10 + $0x12c] sm:$0xf0]  ;;  %v7567_v22 = vld [vmem:[#allocation10 + $0xe4] sm:$0xf0] }
 0x3b2   : > { %v7645_v37 = vld [vmem:[#allocation10 + $0x170] sm:$0xf]  ;;  %v7609_v24 = vld [vmem:[#allocation10 + $0x128] sm:$0xf] }
 0x3b3   : > { %v3554_v59 = vadd.f32 %v3551_v58, %v3548_v55  ;;  %4181 = vmatpush.bf16.msrb.mxu1 %v7424_v45  ;;  %v8483_v45 = vld [vmem:[#allocation10 + $0x20] sm:$0xf0]  ;;  %v8516_v55 = vld [vmem:[#allocation10 + $0x128] sm:$0xf0] }
 0x3b4   : > { %v3518_v43 = vpop.f32.mrf.mxu2  ;;  %v7470_v46 = vor.u32 %v8483_v45, %v7469_v40  ;;  %v7602_v58 = vor.u32 %v8516_v55, %v7601_v51  ;;  %v7606_v40 = vor.u32 %v8515_v13, %v7603_v36  ;;  %v8540_v51 = vld [vmem:[#allocation10 + $0x1e8] sm:$0xf0]  ;;  %v8503_v13 = vld [vmem:[#allocation10 + $0xc4] sm:$0xf] }
 0x3b5   : > { %v3557_v4 = vmul.f32 0.01, %v3554_v59  ;;  %v9558_v41 = vsel %vm3564_vm4, %v3554_v59, %v9477_v27  ;;  %v8488_v43 = vld [vmem:[#allocation10 + $0x4c] sm:$0xf] }
 0x3b6   : > { %v8548_v55 = vld [vmem:[#allocation10 + $0x22c] sm:$0xf] }
 0x3b7   : > { %v3560_v20 = vmax.f32 %v3554_v59, %v3557_v4  ;;  %4182 = vmatpush.bf16.msrb.mxu1 %v7412_v52  ;;  %v7457_v59 = vld [vmem:[#allocation10] sm:$0xf]  ;;  %v8480_v52 = vld [vmem:[#allocation10 + $0x8] sm:$0xf0]  ;;  %v7498_v4 = vor.u32 %v8488_v43, %v7495_v19  ;;  %v7591_v43 = vld [vmem:[#allocation10 + $0x114] sm:$0xf0] }
 0x3b8   : > { %v7458_v61 = vor.u32 %v8480_v52, %v7457_v59  ;;  %v7698_v59 = vor.u32 %v8540_v51, %v7697_v30  ;;  %v8536_v30 = vld [vmem:[#allocation10 + $0x1cc] sm:$0xf]  ;;  %v7549_v51 = vld [vmem:[#allocation10 + $0xb0] sm:$0xf] }
 0x3b9   : > { %v9563_v60 = vsel %vm3564_vm4, %v3560_v20, %v9482_v10  ;;  %7157 = vst [vmem:[%s9174_s8 + $0x70] sm:$0xff] %v3560_v20  ;;  %v7364_v10 = vor.u32 %v8457_v47, %v7363_v12  ;;  %v7639_v20 = vld [vmem:[#allocation10 + $0x174] sm:$0xf0]  ;;  %v7483_v12 = vld [vmem:[#allocation10 + $0x3c] sm:$0xf0] }
 0x3ba   : > { %4135 = vmatmul.bf16.vlgmr.msra.gmra.mxu1 %v9534_v11  ;;  %4174 = vmatmul.bf16.vlgmr.msrb.gmra.mxu0 %v9534_v11  ;;  %v3594_v27 = vpack.c.bf16 %v9563_v60, %v9563_v60  ;;  %v7506_v11 = vor.u32 %v8492_v15, %v7505_v38  ;;  %v8521_v47 = vld [vmem:[#allocation10 + $0x154] sm:$0xf]  ;;  %v7627_v38 = vld [vmem:[#allocation10 + $0x15c] sm:$0xf0] }
 0x3bb   : > { %4183 = vmatpush.bf16.msrb.mxu1 %v7400_v50  ;;  %v7642_v50 = vor.u32 %v8524_v1, %v7639_v20  ;;  %v7630_v15 = vor.u32 %v8521_v47, %v7627_v38  ;;  %v7633_v1 = vld [vmem:[#allocation10 + $0x158] sm:$0xf]  ;;  %v7621_v47 = vld [vmem:[#allocation10 + $0x140] sm:$0xf] }
 0x3bc   : > { %4109 = vmatmul.bf16.vlgmr.msrb.gmra.mxu3 %v3594_v27  ;;  %4148 = vmatmul.bf16.vlgmr.msra.gmra.mxu2 %v3594_v27 }
 0x3bd   : > { %4724 = vmatpush.bf16.msrb.mxu2 %v7506_v11  ;;  %4734 = vmatpush.bf16.msrb.mxu3 %v7638_v63  ;;  %v7577_v11 = vld [vmem:[#allocation10 + $0xf0] sm:$0xf]  ;;  %v8482_v63 = vld [vmem:[#allocation10 + $0x1c] sm:$0xf] }
 0x3bf   : > { %4184 = vmatpush.bf16.msrb.mxu1 %v7388_v2  ;;  %v7590_v2 = vor.u32 %v8513_v53, %v7589_v49  ;;  %v8537_v49 = vld [vmem:[#allocation10 + $0x1d0] sm:$0xf0] }
 0x3c1   : > { %4725 = vmatpush.bf16.msrb.mxu2 %v7494_v28  ;;  %v7474_v28 = vor.u32 %v8482_v63, %v7471_v21  ;;  %v8506_v21 = vld [vmem:[#allocation10 + $0xdc] sm:$0xf] }
 0x3c3   : > { %4185 = vmatpush.bf16.msrb.mxu1 %v7376_v54  ;;  %v8485_v54 = vld [vmem:[#allocation10 + $0x34] sm:$0xf] }
 0x3c5   : > { %4726 = vmatpush.bf16.msrb.mxu2 %v7482_v32  ;;  %v8479_v32 = vld [vmem:[#allocation10 + $0x4] sm:$0xf] }
 0x3c7   : > { %4186 = vmatpush.bf16.msrb.mxu1 %v7364_v10  ;;  %v7486_v10 = vor.u32 %v8485_v54, %v7483_v12  ;;  %v7579_v54 = vld [vmem:[#allocation10 + $0xfc] sm:$0xf0] }
 0x3c9   : > { %4727 = vmatpush.bf16.msrb.mxu2 %v7470_v46  ;;  %v7553_v46 = vld [vmem:[#allocation10 + $0xc0] sm:$0xf] }
 0x3ca   : > { %4187 = vmatmul.bf16.vlgmr.msrb.gmra.mxu1 %v3594_v27  ;;  %v7733_v27 = vld [vmem:[#allocation10 + $0x228] sm:$0xf] }
 0x3cb   : > { %4760 = vmatpush.bf16.msra.mxu1 %v7546_v62  ;;  %v7734_v7 = vor.u32 %v8549_v26, %v7733_v27  ;;  %v7578_v62 = vor.u32 %v8510_v0, %v7577_v11  ;;  %v8545_v27 = vld [vmem:[#allocation10 + $0x214] sm:$0xf]  ;;  %v8534_v11 = vld [vmem:[#allocation10 + $0x1b8] sm:$0xf0] }
 0x3cc   : > { %4161 = vmatmul.bf16.vlgmr.msra.gmra.mxu3 %v9545_v23  ;;  %v7625_v23 = vld [vmem:[#allocation10 + $0x150] sm:$0xf] }
 0x3cd   : > { %v7626_v29 = vor.u32 %v8522_v42, %v7625_v23  ;;  %4728 = vmatpush.bf16.msrb.mxu2 %v7458_v61  ;;  %4747 = vmatpush.bf16.msra.mxu0 %v7734_v7  ;;  %v8507_v23 = vld [vmem:[#allocation10 + $0xe0] sm:$0xf0]  ;;  %v7709_v42 = vld [vmem:[#allocation10 + $0x1f8] sm:$0xf]  ;;  %v8512_v61 = vld [vmem:[#allocation10 + $0x10c] sm:$0xf] }
 0x3ce   : > { %v7710_v44 = vor.u32 %v8543_v31, %v7709_v42  ;;  %v7594_v19 = vor.u32 %v8512_v61, %v7591_v43  ;;  %v8509_v7 = vld [vmem:[#allocation10 + $0xf4] sm:$0xf]  ;;  %v7661_v42 = vld [vmem:[#allocation10 + $0x198] sm:$0xf] }
 0x3cf   : > { %4761 = vmatpush.bf16.msra.mxu1 %v7534_v39  ;;  %4735 = vmatpush.bf16.msrb.mxu3 %v7626_v29  ;;  %v7565_v39 = vld [vmem:[#allocation10 + $0xd8] sm:$0xf]  ;;  %v7582_v12 = vor.u32 %v8509_v7, %v7579_v54  ;;  %v8508_v7 = vld [vmem:[#allocation10 + $0xe8] sm:$0xf0] }
 0x3d0   : > { %v7566_v29 = vor.u32 %v8507_v23, %v7565_v39  ;;  %v7585_v43 = vld [vmem:[#allocation10 + $0xf8] sm:$0xf] }
 0x3d1   : > { %4773 = vmatpush.bf16.msra.mxu2 %v7642_v50  ;;  %4748 = vmatpush.bf16.msra.mxu0 %v7722_v17  ;;  %v7685_v50 = vld [vmem:[#allocation10 + $0x1c8] sm:$0xf] }
 0x3d2   : > { %v7686_v53 = vor.u32 %v8537_v49, %v7685_v50  ;;  %v7675_v50 = vld [vmem:[#allocation10 + $0x1bc] sm:$0xf0]  ;;  %v7537_v49 = vld [vmem:[#allocation10 + $0x98] sm:$0xf] }
 0x3d3   : > { %4762 = vmatpush.bf16.msra.mxu1 %v7522_v35  ;;  %4736 = vmatpush.bf16.msrb.mxu3 %v7614_v33  ;;  %v7462_v35 = vor.u32 %v8479_v32, %v7459_v34  ;;  %v8526_v33 = vld [vmem:[#allocation10 + $0x178] sm:$0xf0]  ;;  %v7699_v32 = vld [vmem:[#allocation10 + $0x1ec] sm:$0xf0] }
 0x3d4   : > { %v7646_v45 = vor.u32 %v8526_v33, %v7645_v37  ;;  %v7597_v37 = vld [vmem:[#allocation10 + $0x110] sm:$0xf]  ;;  %v8514_v33 = vld [vmem:[#allocation10 + $0x118] sm:$0xf0] }
 0x3d5   : > { %4774 = vmatpush.bf16.msra.mxu2 %v7630_v15  ;;  %4749 = vmatpush.bf16.msra.mxu0 %v7710_v44  ;;  %v7673_v15 = vld [vmem:[#allocation10 + $0x1b0] sm:$0xf]  ;;  %v8539_v44 = vld [vmem:[#allocation10 + $0x1e4] sm:$0xf] }
 0x3d6   : > { %v7674_v0 = vor.u32 %v8534_v11, %v7673_v15  ;;  %v7702_v34 = vor.u32 %v8539_v44, %v7699_v32  ;;  %v8490_v44 = vld [vmem:[#allocation10 + $0x58] sm:$0xf0] }
 0x3d7   : > { %4763 = vmatpush.bf16.msra.mxu1 %v7510_v14  ;;  %4737 = vmatpush.bf16.msrb.mxu3 %v7602_v58  ;;  %v7554_v14 = vor.u32 %v8504_v48, %v7553_v46  ;;  %v7735_v58 = vld [vmem:[#allocation10 + $0x234] sm:$0xf0]  ;;  %v8528_v46 = vld [vmem:[#allocation10 + $0x188] sm:$0xf0] }
 0x3d8   : > { %v7738_v52 = vor.u32 %v8548_v55, %v7735_v58 }
 0x3d9   : > { %4775 = vmatpush.bf16.msra.mxu2 %v7618_v25  ;;  %4750 = vmatpush.bf16.msra.mxu0 %v7698_v59  ;;  %v8517_v25 = vld [vmem:[#allocation10 + $0x130] sm:$0xf0] }
 0x3da   : > { %v7610_v23 = vor.u32 %v8517_v25, %v7609_v24  ;;  %v7513_v24 = vld [vmem:[#allocation10 + $0x68] sm:$0xf] }
 0x3db   : > { %4764 = vmatpush.bf16.msra.mxu1 %v7498_v4  ;;  %4738 = vmatpush.bf16.msrb.mxu3 %v7590_v2  ;;  %v8523_v4 = vld [vmem:[#allocation10 + $0x160] sm:$0xf0]  ;;  %v7723_v2 = vld [vmem:[#allocation10 + $0x21c] sm:$0xf0] }
 0x3dc   : > { %v7634_v20 = vor.u32 %v8523_v4, %v7633_v1  ;;  %v7726_v26 = vor.u32 %v8545_v27, %v7723_v2  ;;  %v8499_v27 = vld [vmem:[#allocation10 + $0xa0] sm:$0xf0] }
 0x3dd   : > { %4776 = vmatpush.bf16.msra.mxu2 %v7606_v40  ;;  %4751 = vmatpush.bf16.msra.mxu0 %v7686_v53  ;;  %v7598_v40 = vor.u32 %v8514_v33, %v7597_v37  ;;  %v7538_v2 = vor.u32 %v8499_v27, %v7537_v49  ;;  %v9590_v33 = vstv %s4208_s11  ;;  %s5556_s11 = sshll.u32 %s9804_s6, 4  ;;  %s5557_s11 = int_to_ptr.hbm [resolvable:$true] %s5556_s11 }
 0x3de   : > { %vm4210_vm5 = vcmp.eq.s32.totalorder %v9590_v33, 1  ;;  %v7657_v33 = vld [vmem:[#allocation10 + $0x188] sm:$0xf] }
 0x3df   : > { %4765 = vmatpush.bf16.msra.mxu1 %v7486_v10  ;;  %4739 = vmatpush.bf16.msrb.mxu3 %v7578_v62  ;;  %v8520_v10 = vld [vmem:[#allocation10 + $0x148] sm:$0xf0]  ;;  %v7711_v62 = vld [vmem:[#allocation10 + $0x204] sm:$0xf0] }
 0x3e0   : > { %v7622_v38 = vor.u32 %v8520_v10, %v7621_v47  ;;  %v7714_v63 = vor.u32 %v8542_v16, %v7711_v62  ;;  %v7663_v47 = vld [vmem:[#allocation10 + $0x1a4] sm:$0xf0]  ;;  %v7525_v10 = vld [vmem:[#allocation10 + $0x80] sm:$0xf] }
 0x3e1   : > { %4777 = vmatpush.bf16.msra.mxu2 %v7594_v19  ;;  %4752 = vmatpush.bf16.msra.mxu0 %v7674_v0  ;;  %v8511_v19 = vld [vmem:[#allocation10 + $0x100] sm:$0xf0]  ;;  %v8496_v0 = vld [vmem:[#allocation10 + $0x88] sm:$0xf0]  ;;  %v7561_v62 = vld [vmem:[#allocation10 + $0xc8] sm:$0xf] }
 0x3e2   : > { %v7586_v4 = vor.u32 %v8511_v19, %v7585_v43  ;;  %v7526_v16 = vor.u32 %v8496_v0, %v7525_v10  ;;  %v8484_v43 = vld [vmem:[#allocation10 + $0x28] sm:$0xf0]  ;;  %v8547_v10 = vld [vmem:[#allocation10 + $0x220] sm:$0xf0] }
 0x3e3   : > { %4766 = vmatpush.bf16.msra.mxu1 %v7474_v28  ;;  %4740 = vmatpush.bf16.msrb.mxu3 %v7566_v29  ;;  %v7570_v28 = vor.u32 %v8506_v21, %v7567_v22  ;;  %v8531_v29 = vld [vmem:[#allocation10 + $0x1a0] sm:$0xf0]  ;;  %v8544_v0 = vld [vmem:[#allocation10 + $0x208] sm:$0xf0] }
 0x3e4   : > { %v7662_v31 = vor.u32 %v8531_v29, %v7661_v42  ;;  %v8527_v22 = vld [vmem:[#allocation10 + $0x184] sm:$0xf] }
 0x3e5   : > { %4778 = vmatpush.bf16.msra.mxu2 %v7582_v12  ;;  %v8530_v12 = vld [vmem:[#allocation10 + $0x19c] sm:$0xf] }
 0x3e6   : > { %4753 = vmatpush.bf16.msra.mxu0 %v7662_v31  ;;  %v7666_v11 = vor.u32 %v8530_v12, %v7663_v47  ;;  %v7501_v31 = vld [vmem:[#allocation10 + $0x50] sm:$0xf]  ;;  %v7729_v47 = vld [vmem:[#allocation10 + $0x218] sm:$0xf] }
 0x3e7   : > { %4767 = vmatpush.bf16.msra.mxu1 %v7462_v35  ;;  %4741 = vmatpush.bf16.msrb.mxu3 %v7554_v14  ;;  %v7555_v35 = vld [vmem:[#allocation10 + $0xcc] sm:$0xf0]  ;;  %v7687_v14 = vld [vmem:[#allocation10 + $0x1d4] sm:$0xf0] }
 0x3e8   : > { %v7558_v36 = vor.u32 %v8503_v13, %v7555_v35  ;;  %v7690_v59 = vor.u32 %v8536_v30, %v7687_v14  ;;  %v8487_v14 = vld [vmem:[#allocation10 + $0x40] sm:$0xf0] }
 0x3e9   : > { %4779 = vmatpush.bf16.msra.mxu2 %v7570_v28  ;;  %v7651_v28 = vld [vmem:[#allocation10 + $0x18c] sm:$0xf0] }
 0x3ea   : > { %v7654_v25 = vor.u32 %v8527_v22, %v7651_v28  ;;  %v7823_v22 = vld [vmem:[#allocation10 + $0x90] sm:$0xf] }
 0x3eb   : > { %4812 = vmatpush.bf16.msrb.mxu1 %v7646_v45  ;;  %4786 = vmatpush.bf16.msra.mxu3 %v7738_v52  ;;  %v7649_v45 = vld [vmem:[#allocation10 + $0x180] sm:$0xf]  ;;  %v8502_v52 = vld [vmem:[#allocation10 + $0xb8] sm:$0xf0] }
 0x3ec   : > { %v7650_v48 = vor.u32 %v8528_v46, %v7649_v45  ;;  %v7550_v61 = vor.u32 %v8502_v52, %v7549_v51  ;;  %v4196_v51 = vmul.f32 %v9506_v56, %v9515_v3 }
 0x3ed   : > { %4780 = vmatpush.bf16.msra.mxu2 %v7558_v36  ;;  %v7502_v36 = vor.u32 %v8490_v44, %v7501_v31  ;;  %v7705_v31 = vld [vmem:[#allocation10 + $0x1e8] sm:$0xf] }
 0x3ee   : > { %4754 = vmatpush.bf16.msra.mxu0 %v7650_v48 }
 0x3ef   : > { %4813 = vmatpush.bf16.msrb.mxu1 %v7634_v20  ;;  %4787 = vmatpush.bf16.msra.mxu3 %v7726_v26  ;;  %v8533_v20 = vld [vmem:[#allocation10 + $0x1b4] sm:$0xf]  ;;  %v7573_v26 = vld [vmem:[#allocation10 + $0xe0] sm:$0xf] }
 0x3f0   : > { %v7678_v53 = vor.u32 %v8533_v20, %v7675_v50  ;;  %v7574_v54 = vor.u32 %v8508_v7, %v7573_v26  ;;  %v7741_v20 = vld [vmem:[#allocation10 + $0x230] sm:$0xf]  ;;  %v8550_v50 = vld [vmem:[#allocation10 + $0x238] sm:$0xf0]  ;;  %v7465_v7 = vld [vmem:[#allocation10 + $0x8] sm:$0xf] }
 0x3f1   : > { %v7742_v26 = vor.u32 %v8550_v50, %v7741_v20  ;;  %v8572_v50 = vld [vmem:[#allocation10 + $0xac] sm:$0xf] }
 0x3f2   : > { %4799 = vmatpush.bf16.msrb.mxu0 %v7550_v61 }
 0x3f3   : > { %4814 = vmatpush.bf16.msrb.mxu1 %v7622_v38  ;;  %4788 = vmatpush.bf16.msra.mxu3 %v7714_v63  ;;  %v8505_v63 = vld [vmem:[#allocation10 + $0xd0] sm:$0xf0] }
 0x3f4   : > { %v7562_v21 = vor.u32 %v8505_v63, %v7561_v62  ;;  %v7835_v63 = vld [vmem:[#allocation10 + $0xa8] sm:$0xf] }
 0x3f6   : > { %4800 = vmatpush.bf16.msrb.mxu0 %v7538_v2 }
 0x3f7   : > { %4815 = vmatpush.bf16.msrb.mxu1 %v7610_v23  ;;  %4789 = vmatpush.bf16.msra.mxu3 %v7702_v34  ;;  %v8493_v23 = vld [vmem:[#allocation10 + $0x70] sm:$0xf0]  ;;  %v7158_v34 = vld [vmem:[%s9160_s9 + $0x78] sm:$0xff] }
 0x3f8   : > { %v7514_v42 = vor.u32 %v8493_v23, %v7513_v24  ;;  %v7160_v23 = vld [vmem:[%s9160_s9 + $0x88] sm:$0xff] }
 0x3fa   : > { %4801 = vmatpush.bf16.msrb.mxu0 %v7526_v16 }
 0x3fb   : > { %4816 = vmatpush.bf16.msrb.mxu1 %v7598_v40  ;;  %4790 = vmatpush.bf16.msra.mxu3 %v7690_v59  ;;  %v7159_v40 = vld [vmem:[%s9160_s9 + $0x80] sm:$0xff] }
 0x3fe   : > { %4802 = vmatpush.bf16.msrb.mxu0 %v7514_v42 }
 0x3ff   : > { %4817 = vmatpush.bf16.msrb.mxu1 %v7586_v4  ;;  %4791 = vmatpush.bf16.msra.mxu3 %v7678_v53 }
 0x402   : > { %4803 = vmatpush.bf16.msrb.mxu0 %v7502_v36  ;;  %v4197_v36 = vmul.f32 %v9551_v57, %v9558_v41 }
 0x403   : > { %4818 = vmatpush.bf16.msrb.mxu1 %v7574_v54  ;;  %4792 = vmatpush.bf16.msra.mxu3 %v7666_v11  ;;  %v7717_v11 = vld [vmem:[#allocation10 + $0x200] sm:$0xf] }
 0x407   : > { %4819 = vmatpush.bf16.msrb.mxu1 %v7562_v21  ;;  %4793 = vmatpush.bf16.msra.mxu3 %v7654_v25  ;;  %v8573_v21 = vld [vmem:[#allocation10 + $0xb0] sm:$0xf0]  ;;  %v8570_v25 = vld [vmem:[#allocation10 + $0x98] sm:$0xf0] }
 0x408   : > { %v7836_v24 = vor.u32 %v8573_v21, %v7835_v63  ;;  %v7824_v44 = vor.u32 %v8570_v25, %v7823_v22  ;;  %v8594_v63 = vld [vmem:[#allocation10 + $0x158] sm:$0xf0]  ;;  %v8555_v22 = vld [vmem:[#allocation10 + $0x20] sm:$0xf0]  ;;  %v7801_v25 = vld [vmem:[#allocation10 + $0x6c] sm:$0xf0] }
 0x427   : > { %v9571_v18 = vpop.f32.mrf.mxu1  ;;  %v9573_v17 = vpop.f32.mrf.mxu0 }
 0x429   : > { %v9575_v39 = vpop.f32.mrf.mxu2 }
 0x42a   : > { %v4098_v29 = vadd.f32 %v9575_v39, %v9571_v18  ;;  %v4195_v18 = vmul.f32 %v9517_v5, %v9530_v9  ;;  %v7489_v39 = vld [vmem:[#allocation10 + $0x38] sm:$0xf]  ;;  %v7477_v5 = vld [vmem:[#allocation10 + $0x20] sm:$0xf] }
 0x42b   : > { %v7478_v49 = vor.u32 %v8484_v43, %v7477_v5 }
 0x42f   : > { %v4086_v55 = vpop.f32.mrf.mxu1  ;;  %v4125_v58 = vpop.f32.mrf.mxu0 }
 0x430   : > { %v7490_v55 = vor.u32 %v8487_v14, %v7489_v39 }
 0x431   : > { %v4099_v1 = vpop.f32.mrf.mxu2 }
 0x432   : > { %4804 = vmatpush.bf16.msrb.mxu0 %v7490_v55 }
 0x436   : > { %4805 = vmatpush.bf16.msrb.mxu0 %v7478_v49  ;;  %v7837_v49 = vld [vmem:[#allocation10 + $0xb4] sm:$0xf0] }
 0x437   : > { %v4136_v38 = vpop.f32.mrf.mxu1  ;;  %v9578_v15 = vpop.f32.mrf.mxu0 }
 0x438   : > { %v4137_v32 = vadd.f32 %v4136_v38, %v9573_v17 }
 0x43f   : > { %v4110_v13 = vpop.f32.mrf.mxu3  ;;  %v4138_v35 = vpop.f32.mrf.mxu1 }
 0x440   : > { %v4111_v37 = vadd.f32 %v4110_v13, %v4098_v29  ;;  %v4149_v45 = vpop.f32.mrf.mxu2  ;;  %v4177_v46 = vpop.f32.mrf.mxu0  ;;  %v7718_v29 = vor.u32 %v8544_v0, %v7717_v11  ;;  %v8567_v13 = vld [vmem:[#allocation10 + $0x80] sm:$0xf0]  ;;  %v8566_v11 = vld [vmem:[#allocation10 + $0x7c] sm:$0xf]  ;;  %v7813_v0 = vld [vmem:[#allocation10 + $0x84] sm:$0xf0] }
 0x441   : > { %v4150_v48 = vadd.f32 %v4149_v45, %v4137_v32  ;;  %v8541_v32 = vld [vmem:[#allocation10 + $0x1f0] sm:$0xf0] }
 0x442   : > { %v4192_v30 = vadd.f32 %v7158_v34, %v4111_v37  ;;  %v7811_v34 = vld [vmem:[#allocation10 + $0x78] sm:$0xf] }
 0x443   : > { %v4193_v17 = vadd.f32 %v7159_v40, %v4150_v48  ;;  %v7706_v40 = vor.u32 %v8541_v32, %v7705_v31  ;;  %v7812_v45 = vor.u32 %v8567_v13, %v7811_v34  ;;  %v8538_v48 = vld [vmem:[#allocation10 + $0x1d8] sm:$0xf0]  ;;  %v8552_v32 = vld [vmem:[#allocation10 + $0x8] sm:$0xf0] }
 0x444   : > { %v4198_v58 = vadd.f32 %v4195_v18, %v4192_v30  ;;  %v7799_v30 = vld [vmem:[#allocation10 + $0x60] sm:$0xf]  ;;  %v8564_v18 = vld [vmem:[#allocation10 + $0x68] sm:$0xf0] }
 0x445   : > { %v4199_v59 = vadd.f32 %v4196_v51, %v4193_v17  ;;  %v7681_v51 = vld [vmem:[#allocation10 + $0x1b8] sm:$0xf]  ;;  %v7800_v55 = vor.u32 %v8564_v18, %v7799_v30  ;;  %v8560_v13 = vld [vmem:[#allocation10 + $0x4c] sm:$0xf]  ;;  %v8027_v30 = vld [vmem:[#allocation10 + $0x228] sm:$0xf] }
 0x446   : > { %v4201_v52 = vmul.f32 0.01, %v4198_v58  ;;  %v9601_v61 = vsel %vm4210_vm5, %v4198_v58, %v9530_v9  ;;  %v8621_v18 = vld [vmem:[#allocation10 + $0x230] sm:$0xf0] }
 0x447   : > { %v4202_v19 = vmul.f32 0.01, %v4199_v59  ;;  %v9606_v1 = vsel %vm4210_vm5, %v4199_v59, %v9515_v3  ;;  %v4112_v56 = vpop.f32.mrf.mxu3  ;;  %v4188_v4 = vpop.f32.mrf.mxu1  ;;  %v8481_v3 = vld [vmem:[#allocation10 + $0x10] sm:$0xf0] }
 0x448   : > { %v4204_v53 = vmax.f32 %v4198_v58, %v4201_v52  ;;  %v4151_v27 = vpop.f32.mrf.mxu2  ;;  %v7466_v38 = vor.u32 %v8481_v3, %v7465_v7  ;;  %v8535_v58 = vld [vmem:[#allocation10 + $0x1c0] sm:$0xf0]  ;;  %v8561_v52 = vld [vmem:[#allocation10 + $0x50] sm:$0xf0]  ;;  %v7669_v56 = vld [vmem:[#allocation10 + $0x1a0] sm:$0xf] }
 0x449   : > { %v4205_v2 = vmax.f32 %v4199_v59, %v4202_v19  ;;  %v7787_v59 = vld [vmem:[#allocation10 + $0x48] sm:$0xf]  ;;  %v7682_v43 = vor.u32 %v8535_v58, %v7681_v51  ;;  %v7840_v27 = vor.u32 %v8572_v50, %v7837_v49  ;;  %v8593_v51 = vld [vmem:[#allocation10 + $0x154] sm:$0xf] }
 0x44a   : > { %v9611_v9 = vsel %vm4210_vm5, %v4204_v53, %v9540_v8  ;;  %7449 = vst [vmem:[%s9174_s8 + $0x78] sm:$0xff] %v4204_v53  ;;  %4806 = vmatpush.bf16.msrb.mxu0 %v7466_v38  ;;  %v7788_v19 = vor.u32 %v8561_v52, %v7787_v59  ;;  %v7931_v3 = vld [vmem:[#allocation10 + $0x168] sm:$0xf]  ;;  %v7775_v38 = vld [vmem:[#allocation10 + $0x30] sm:$0xf] }
 0x44b   : > { %v9617_v54 = vsel %vm4210_vm5, %v4205_v2, %v9524_v6  ;;  %7450 = vst [vmem:[%s9174_s8 + $0x80] sm:$0xff] %v4205_v2  ;;  %v9622_v12 = vpack.c.bf16 %v9611_v9, %v9611_v9  ;;  %v7730_v6 = vor.u32 %v8547_v10, %v7729_v47  ;;  %v8569_v2 = vld [vmem:[#allocation10 + $0x94] sm:$0xf]  ;;  %v7883_v52 = vld [vmem:[#allocation10 + $0x108] sm:$0xf] }
 0x44c   : > { %v4239_v8 = vpack.c.bf16 %v9617_v54, %v9617_v54  ;;  %v8597_v47 = vld [vmem:[#allocation10 + $0x170] sm:$0xf0]  ;;  %v7909_v50 = vld [vmem:[#allocation10 + $0x144] sm:$0xf0] }
 0x44d   : > { %4729 = vmatmul.bf16.vlgmr.msrb.gmra.mxu2 %v9622_v12  ;;  %4768 = vmatmul.bf16.vlgmr.msra.gmra.mxu1 %v9622_v12  ;;  %v7932_v10 = vor.u32 %v8597_v47, %v7931_v3  ;;  %v8615_v3 = vld [vmem:[#allocation10 + $0x200] sm:$0xf0] }
 0x44e   : > { %4742 = vmatmul.bf16.vlgmr.msrb.gmra.mxu3 %v4239_v8  ;;  %4825 = vmatpush.bf16.msrb.mxu2 %v7742_v26  ;;  %v7825_v26 = vld [vmem:[#allocation10 + $0x9c] sm:$0xf0]  ;;  %v8551_v47 = vld [vmem:[#allocation10 + $0x4] sm:$0xf] }
 0x44f   : > { %v4162_v16 = vpop.f32.mrf.mxu3  ;;  %v4190_v62 = vpop.f32.mrf.mxu1  ;;  %5367 = vmatpush.bf16.msrb.mxu3 %v7836_v24  ;;  %v7828_v7 = vor.u32 %v8569_v2, %v7825_v26  ;;  %v8563_v24 = vld [vmem:[#allocation10 + $0x64] sm:$0xf]  ;;  %v8582_v2 = vld [vmem:[#allocation10 + $0xf8] sm:$0xf0] }
 0x450   : > { %v4176_v28 = vadd.f32 %v9578_v15, %v4162_v16  ;;  %v7693_v15 = vld [vmem:[#allocation10 + $0x1d0] sm:$0xf]  ;;  %v7816_v16 = vor.u32 %v8566_v11, %v7813_v0 }
 0x451   : > { %v7694_v57 = vor.u32 %v8538_v48, %v7693_v15  ;;  %v7919_v62 = vld [vmem:[#allocation10 + $0x150] sm:$0xf] }
 0x452   : > { %v4189_v42 = vadd.f32 %v4188_v4, %v4176_v28  ;;  %4826 = vmatpush.bf16.msrb.mxu2 %v7730_v6  ;;  %v8532_v4 = vld [vmem:[#allocation10 + $0x1a8] sm:$0xf0]  ;;  %v7920_v21 = vor.u32 %v8594_v63, %v7919_v62  ;;  %v8598_v62 = vld [vmem:[#allocation10 + $0x178] sm:$0xf0] }
 0x453   : > { %5368 = vmatpush.bf16.msrb.mxu3 %v7824_v44  ;;  %v7670_v20 = vor.u32 %v8532_v4, %v7669_v56  ;;  %v7751_v44 = vld [vmem:[#allocation10] sm:$0xf]  ;;  %v8618_v56 = vld [vmem:[#allocation10 + $0x218] sm:$0xf0] }
 0x454   : > { %v4194_v35 = vadd.f32 %v7160_v23, %v4189_v42  ;;  %v7804_v23 = vor.u32 %v8563_v24, %v7801_v25  ;;  %v7907_v42 = vld [vmem:[#allocation10 + $0x138] sm:$0xf]  ;;  %v7752_v34 = vor.u32 %v8552_v32, %v7751_v44  ;;  %v8554_v4 = vld [vmem:[#allocation10 + $0x1c] sm:$0xf]  ;;  %v8612_v24 = vld [vmem:[#allocation10 + $0x1e8] sm:$0xf0] }
 0x455   : > { %v8584_v25 = vld [vmem:[#allocation10 + $0x10c] sm:$0xf] }
 0x456   : > { %v4200_v37 = vadd.f32 %v4197_v36, %v4194_v35  ;;  %4827 = vmatpush.bf16.msrb.mxu2 %v7718_v29  ;;  %v8591_v29 = vld [vmem:[#allocation10 + $0x140] sm:$0xf0]  ;;  %v7789_v35 = vld [vmem:[#allocation10 + $0x54] sm:$0xf0]  ;;  %v8596_v36 = vld [vmem:[#allocation10 + $0x16c] sm:$0xf] }
 0x457   : > { %v4164_v46 = vpop.f32.mrf.mxu3  ;;  %5369 = vmatpush.bf16.msrb.mxu3 %v7812_v45  ;;  %v7908_v31 = vor.u32 %v8591_v29, %v7907_v42  ;;  %v7895_v45 = vld [vmem:[#allocation10 + $0x120] sm:$0xf]  ;;  %v7885_v42 = vld [vmem:[#allocation10 + $0x114] sm:$0xf0] }
 0x458   : > { %v4203_v39 = vmul.f32 0.01, %v4200_v37  ;;  %v9635_v14 = vsel %vm4210_vm5, %v4200_v37, %v9558_v41  ;;  %v8588_v46 = vld [vmem:[#allocation10 + $0x128] sm:$0xf0]  ;;  %v7927_v29 = vld [vmem:[#allocation10 + $0x158] sm:$0xf]  ;;  %v7888_v44 = vor.u32 %v8584_v25, %v7885_v42 }
 0x459   : > { %v7896_v48 = vor.u32 %v8588_v46, %v7895_v45  ;;  %v8609_v45 = vld [vmem:[#allocation10 + $0x1d0] sm:$0xf0]  ;;  %v7981_v42 = vld [vmem:[#allocation10 + $0x1d4] sm:$0xf0] }
 0x45a   : > { %v4206_v17 = vmax.f32 %v4200_v37, %v4203_v39  ;;  %4828 = vmatpush.bf16.msrb.mxu2 %v7706_v40  ;;  %v7792_v37 = vor.u32 %v8560_v13, %v7789_v35  ;;  %v7933_v40 = vld [vmem:[#allocation10 + $0x174] sm:$0xf0]  ;;  %v8557_v39 = vld [vmem:[#allocation10 + $0x34] sm:$0xf]  ;;  %v8576_v13 = vld [vmem:[#allocation10 + $0xc8] sm:$0xf0] }
 0x45b   : > { %5370 = vmatpush.bf16.msrb.mxu3 %v7800_v55  ;;  %v7936_v15 = vor.u32 %v8596_v36, %v7933_v40  ;;  %v7921_v55 = vld [vmem:[#allocation10 + $0x15c] sm:$0xf0]  ;;  %v8620_v36 = vld [vmem:[#allocation10 + $0x22c] sm:$0xf]  ;;  %v8581_v46 = vld [vmem:[#allocation10 + $0xf4] sm:$0xf] }
 0x45c   : > { %v9640_v5 = vsel %vm4210_vm5, %v4206_v17, %v9563_v60  ;;  %7451 = vst [vmem:[%s9174_s8 + $0x88] sm:$0xff] %v4206_v17  ;;  %v8529_v60 = vld [vmem:[#allocation10 + $0x190] sm:$0xf0]  ;;  %v8028_v17 = vor.u32 %v8621_v18, %v8027_v30  ;;  %v7924_v59 = vor.u32 %v8593_v51, %v7921_v55  ;;  %v7873_v30 = vld [vmem:[#allocation10 + $0xfc] sm:$0xf0] }
 0x45d   : > { %4781 = vmatmul.bf16.vlgmr.msra.gmra.mxu2 %v4239_v8  ;;  %4820 = vmatmul.bf16.vlgmr.msrb.gmra.mxu1 %v4239_v8  ;;  %v4240_v41 = vpack.c.bf16 %v9640_v5, %v9640_v5  ;;  %v7658_v53 = vor.u32 %v8529_v60, %v7657_v33  ;;  %v8558_v8 = vld [vmem:[#allocation10 + $0x38] sm:$0xf0]  ;;  %v7765_v33 = vld [vmem:[#allocation10 + $0x24] sm:$0xf0]  ;;  %v7915_v18 = vld [vmem:[#allocation10 + $0x140] sm:$0xf] }
 0x45e   : > { %4829 = vmatpush.bf16.msrb.mxu2 %v7694_v57  ;;  %v7776_v6 = vor.u32 %v8558_v8, %v7775_v38  ;;  %v7777_v57 = vld [vmem:[#allocation10 + $0x3c] sm:$0xf0]  ;;  %5393 = vmatpush.bf16.msra.mxu1 %v8028_v17  ;;  %v8590_v60 = vld [vmem:[#allocation10 + $0x13c] sm:$0xf]  ;;  %v7768_v49 = vor.u32 %v8554_v4, %v7765_v33  ;;  %v7753_v38 = vld [vmem:[#allocation10 + $0xc] sm:$0xf0]  ;;  %v7876_v17 = vor.u32 %v8581_v46, %v7873_v30 }
 0x45f   : > { %4755 = vmatmul.bf16.vlgmr.msra.gmra.mxu0 %v4240_v41  ;;  %4794 = vmatmul.bf16.vlgmr.msra.gmra.mxu3 %v4240_v41  ;;  %v7780_v58 = vor.u32 %v8557_v39, %v7777_v57  ;;  %v8587_v8 = vld [vmem:[#allocation10 + $0x124] sm:$0xf]  ;;  %v7756_v11 = vor.u32 %v8551_v47, %v7753_v38  ;;  %v8592_v39 = vld [vmem:[#allocation10 + $0x148] sm:$0xf0]  ;;  %v8617_v51 = vld [vmem:[#allocation10 + $0x214] sm:$0xf] }
 0x460   : > { %5371 = vmatpush.bf16.msrb.mxu3 %v7788_v19  ;;  %5380 = vmatpush.bf16.msra.mxu0 %v7932_v10  ;;  %v8015_v19 = vld [vmem:[#allocation10 + $0x210] sm:$0xf]  ;;  %v7916_v57 = vor.u32 %v8592_v39, %v7915_v18  ;;  %v8017_v55 = vld [vmem:[#allocation10 + $0x21c] sm:$0xf0]  ;;  %v8586_v47 = vld [vmem:[#allocation10 + $0x118] sm:$0xf0] }
 0x461   : > { %v8568_v30 = vld [vmem:[#allocation10 + $0x88] sm:$0xf0]  ;;  %v7855_v18 = vld [vmem:[#allocation10 + $0xc8] sm:$0xf] }
 0x462   : > { %4830 = vmatpush.bf16.msrb.mxu2 %v7682_v43 }
 0x464   : > { %5372 = vmatpush.bf16.msrb.mxu3 %v7776_v6  ;;  %5381 = vmatpush.bf16.msra.mxu0 %v7920_v21  ;;  %v7897_v6 = vld [vmem:[#allocation10 + $0x12c] sm:$0xf0]  ;;  %v7859_v21 = vld [vmem:[#allocation10 + $0xd8] sm:$0xf] }
 0x465   : > { %v7900_v0 = vor.u32 %v8587_v8, %v7897_v6  ;;  %v8611_v6 = vld [vmem:[#allocation10 + $0x1e4] sm:$0xf] }
 0x466   : > { %4831 = vmatpush.bf16.msrb.mxu2 %v7670_v20  ;;  %v8016_v20 = vor.u32 %v8618_v56, %v8015_v19  ;;  %v7861_v19 = vld [vmem:[#allocation10 + $0xe4] sm:$0xf0] }
 0x467   : > { %v7903_v56 = vld [vmem:[#allocation10 + $0x128] sm:$0xf] }
 0x468   : > { %5382 = vmatpush.bf16.msra.mxu0 %v7908_v31  ;;  %5394 = vmatpush.bf16.msra.mxu1 %v8016_v20  ;;  %v8595_v31 = vld [vmem:[#allocation10 + $0x160] sm:$0xf0]  ;;  %v8589_v20 = vld [vmem:[#allocation10 + $0x130] sm:$0xf0] }
 0x469   : > { %v7928_v32 = vor.u32 %v8595_v31, %v7927_v29  ;;  %v7904_v33 = vor.u32 %v8589_v20, %v7903_v56  ;;  %v8599_v20 = vld [vmem:[#allocation10 + $0x184] sm:$0xf] }
 0x46a   : > { %4832 = vmatpush.bf16.msrb.mxu2 %v7658_v53  ;;  %v7912_v53 = vor.u32 %v8590_v60, %v7909_v50  ;;  %v8614_v60 = vld [vmem:[#allocation10 + $0x1fc] sm:$0xf]  ;;  %v8005_v50 = vld [vmem:[#allocation10 + $0x204] sm:$0xf0] }
 0x46c   : > { %5383 = vmatpush.bf16.msra.mxu0 %v7896_v48 }
 0x46d   : > { %4833 = vmatmul.bf16.vlgmr.msrb.gmra.mxu2 %v4240_v41  ;;  %v8585_v41 = vld [vmem:[#allocation10 + $0x110] sm:$0xf0] }
 0x46e   : > { %5406 = vmatpush.bf16.msra.mxu2 %v7840_v27  ;;  %v7884_v43 = vor.u32 %v8585_v41, %v7883_v52  ;;  %v7871_v27 = vld [vmem:[#allocation10 + $0xf0] sm:$0xf]  ;;  %v8606_v52 = vld [vmem:[#allocation10 + $0x1b8] sm:$0xf0] }
 0x46f   : > { %4807 = vmatmul.bf16.vlgmr.msrb.gmra.mxu0 %v9622_v12  ;;  %v7763_v12 = vld [vmem:[#allocation10 + $0x18] sm:$0xf]  ;;  %v7872_v26 = vor.u32 %v8582_v2, %v7871_v27  ;;  %v8578_v41 = vld [vmem:[#allocation10 + $0xdc] sm:$0xf]  ;;  %v8603_v27 = vld [vmem:[#allocation10 + $0x1a0] sm:$0xf0] }
 0x470   : > { %v7764_v28 = vor.u32 %v8555_v22, %v7763_v12  ;;  %5384 = vmatpush.bf16.msra.mxu0 %v7884_v43  ;;  %v8579_v12 = vld [vmem:[#allocation10 + $0xe0] sm:$0xf0]  ;;  %v7864_v4 = vor.u32 %v8578_v41, %v7861_v19  ;;  %v7807_v41 = vld [vmem:[#allocation10 + $0x68] sm:$0xf] }
 0x471   : > { %v7860_v22 = vor.u32 %v8579_v12, %v7859_v21  ;;  %v8575_v2 = vld [vmem:[#allocation10 + $0xc4] sm:$0xf]  ;;  %v7843_v21 = vld [vmem:[#allocation10 + $0xb0] sm:$0xf]  ;;  %v8574_v12 = vld [vmem:[#allocation10 + $0xb8] sm:$0xf0] }
 0x472   : > { %5407 = vmatpush.bf16.msra.mxu2 %v7828_v7  ;;  %5373 = vmatpush.bf16.msrb.mxu3 %v7764_v28  ;;  %v8003_v7 = vld [vmem:[#allocation10 + $0x1f8] sm:$0xf]  ;;  %v7991_v28 = vld [vmem:[#allocation10 + $0x1e0] sm:$0xf] }
 0x473   : > { %v8004_v10 = vor.u32 %v8615_v3, %v8003_v7  ;;  %v7849_v7 = vld [vmem:[#allocation10 + $0xcc] sm:$0xf0] }
 0x474   : > { %5385 = vmatpush.bf16.msra.mxu0 %v7872_v26  ;;  %v7891_v3 = vld [vmem:[#allocation10 + $0x110] sm:$0xf]  ;;  %v7852_v38 = vor.u32 %v8575_v2, %v7849_v7 }
 0x475   : > { %5395 = vmatpush.bf16.msra.mxu1 %v8004_v10  ;;  %v7892_v8 = vor.u32 %v8586_v47, %v7891_v3  ;;  %v7795_v2 = vld [vmem:[#allocation10 + $0x50] sm:$0xf]  ;;  %v9660_v47 = vld [vmem:[#allocation12] sm:$0xff] }
 0x476   : > { %5408 = vmatpush.bf16.msra.mxu2 %v7816_v16  ;;  %5374 = vmatpush.bf16.msrb.mxu3 %v7752_v34  ;;  %v7939_v16 = vld [vmem:[#allocation10 + $0x170] sm:$0xf]  ;;  %v7847_v34 = vld [vmem:[#allocation10 + $0xc0] sm:$0xf] }
 0x477   : > { %v7940_v63 = vor.u32 %v8598_v62, %v7939_v16  ;;  %v7848_v35 = vor.u32 %v8576_v13, %v7847_v34  ;;  %v7943_v16 = vld [vmem:[#allocation10 + $0x180] sm:$0xf]  ;;  %v8600_v62 = vld [vmem:[#allocation10 + $0x188] sm:$0xf0]  ;;  %v8571_v34 = vld [vmem:[#allocation10 + $0xa0] sm:$0xf0] }
 0x478   : > { %5386 = vmatpush.bf16.msra.mxu0 %v7860_v22  ;;  %v7844_v22 = vor.u32 %v8574_v12, %v7843_v21  ;;  %v7867_v13 = vld [vmem:[#allocation10 + $0xe0] sm:$0xf] }
 0x47a   : > { %5409 = vmatpush.bf16.msra.mxu2 %v7804_v23  ;;  %5419 = vmatpush.bf16.msra.mxu3 %v7936_v15  ;;  %v7992_v23 = vor.u32 %v8612_v24, %v7991_v28  ;;  %v7979_v15 = vld [vmem:[#allocation10 + $0x1c8] sm:$0xf]  ;;  %v7879_v28 = vld [vmem:[#allocation10 + $0xf8] sm:$0xf]  ;;  %v8583_v24 = vld [vmem:[#allocation10 + $0x100] sm:$0xf0] }
 0x47b   : > { %v7980_v48 = vor.u32 %v8609_v45, %v7979_v15  ;;  %v7880_v25 = vor.u32 %v8583_v24, %v7879_v28  ;;  %v8605_v15 = vld [vmem:[#allocation10 + $0x1b4] sm:$0xf]  ;;  %v7969_v45 = vld [vmem:[#allocation10 + $0x1bc] sm:$0xf0] }
 0x47c   : > { %5396 = vmatpush.bf16.msra.mxu1 %v7992_v23  ;;  %5387 = vmatpush.bf16.msra.mxu0 %v7848_v35  ;;  %v8608_v23 = vld [vmem:[#allocation10 + $0x1cc] sm:$0xf]  ;;  %v7972_v46 = vor.u32 %v8605_v15, %v7969_v45  ;;  %v8023_v15 = vld [vmem:[#allocation10 + $0x218] sm:$0xf]  ;;  %v8619_v45 = vld [vmem:[#allocation10 + $0x220] sm:$0xf0] }
 0x47d   : > { %v7984_v31 = vor.u32 %v8608_v23, %v7981_v42  ;;  %v8556_v23 = vld [vmem:[#allocation10 + $0x28] sm:$0xf0] }
 0x47e   : > { %5410 = vmatpush.bf16.msra.mxu2 %v7792_v37  ;;  %5420 = vmatpush.bf16.msra.mxu3 %v7924_v59  ;;  %v8029_v37 = vld [vmem:[#allocation10 + $0x234] sm:$0xf0]  ;;  %v7967_v59 = vld [vmem:[#allocation10 + $0x1b0] sm:$0xf] }
 0x47f   : > { %v8032_v40 = vor.u32 %v8620_v36, %v8029_v37  ;;  %v7968_v43 = vor.u32 %v8606_v52, %v7967_v59  ;;  %v8580_v37 = vld [vmem:[#allocation10 + $0xe8] sm:$0xf0] }
 0x480   : > { %5397 = vmatpush.bf16.msra.mxu1 %v7980_v48  ;;  %v7819_v48 = vld [vmem:[#allocation10 + $0x80] sm:$0xf] }
 0x481   : > { %5432 = vmatpush.bf16.msrb.mxu0 %v8032_v40  ;;  %v7868_v40 = vor.u32 %v8580_v37, %v7867_v13  ;;  %v7820_v39 = vor.u32 %v8568_v30, %v7819_v48  ;;  %v8553_v30 = vld [vmem:[#allocation10 + $0x10] sm:$0xf0] }
 0x482   : > { %5411 = vmatpush.bf16.msra.mxu2 %v7780_v58  ;;  %5421 = vmatpush.bf16.msra.mxu3 %v7912_v53  ;;  %v8020_v58 = vor.u32 %v8617_v51, %v8017_v55  ;;  %v7955_v53 = vld [vmem:[#allocation10 + $0x198] sm:$0xf]  ;;  %v8602_v51 = vld [vmem:[#allocation10 + $0x19c] sm:$0xf]  ;;  %v7957_v55 = vld [vmem:[#allocation10 + $0x1a4] sm:$0xf0] }
 0x483   : > { %v7956_v26 = vor.u32 %v8603_v27, %v7955_v53  ;;  %v7960_v59 = vor.u32 %v8602_v51, %v7957_v55  ;;  %v9658_v27 = vstv %s4854_s16  ;;  %v8011_v55 = vld [vmem:[#allocation10 + $0x200] sm:$0xf]  ;;  %s8929_s16 = sshra.s32 %s5542_s12, 4  ;;  %s8930_s16 = int_to_ptr.hbm [resolvable:$true] %s8929_s16 }
 0x484   : > { %5398 = vmatpush.bf16.msra.mxu1 %v7968_v43  ;;  %v8565_v43 = vld [vmem:[#allocation10 + $0x70] sm:$0xf0]  ;;  %vm4856_vm6 = vcmp.eq.s32.totalorder %v9658_v27, 1  ;;  %s8931_s29 = scalar_lea.hbm %s8930_s16, 192  ;;  %p8936_p1 = scmp.lt.s32.totalorder %s8930_s16, %s9803_s5 }
 0x485   : > { %5433 = vmatpush.bf16.msrb.mxu0 %v8020_v58  ;;  %v7808_v56 = vor.u32 %v8565_v43, %v7807_v41  ;;  %v7454_v43 = vld [vmem:[%s9160_s9 + $0xa0] sm:$0xff]  ;;  %p8932_p7 = scmp.ne.s32.totalorder %s8930_s16, %s8931_s29  ;;  %p8937_p4 = scmp.lt.s32.totalorder %s8935_s20, %s8931_s29 }
 0x486   : > { %5412 = vmatpush.bf16.msra.mxu2 %v7768_v49  ;;  %5422 = vmatpush.bf16.msra.mxu3 %v7900_v0  ;;  %v8008_v49 = vor.u32 %v8614_v60, %v8005_v50  ;;  %v7452_v60 = vld [vmem:[%s9160_s9 + $0x90] sm:$0xff] }
 0x487   : > { %p8933_p11 = pnand %p8932_p7, %p9126_p5  ;;  %p8938_p8 = por %p8937_p4, %p8936_p1 }
 0x488   : > { %5399 = vmatpush.bf16.msra.mxu1 %v7956_v26  ;;  %v8562_v26 = vld [vmem:[#allocation10 + $0x58] sm:$0xf0] }
 0x489   : > { %5434 = vmatpush.bf16.msrb.mxu0 %v8008_v49  ;;  %v7796_v7 = vor.u32 %v8562_v26, %v7795_v2  ;;  %v7987_v2 = vld [vmem:[#allocation10 + $0x1d0] sm:$0xf]  ;;  %p8934_p2 = pneg %p8933_p11 }
 0x48a   : > { %5413 = vmatpush.bf16.msra.mxu2 %v7756_v11  ;;  %5423 = vmatpush.bf16.msra.mxu3 %v7888_v44  ;;  %v7993_v11 = vld [vmem:[#allocation10 + $0x1ec] sm:$0xf0] }
 0x48b   : > { %v7996_v0 = vor.u32 %v8611_v6, %v7993_v11  ;;  %v7783_v6 = vld [vmem:[#allocation10 + $0x38] sm:$0xf]  ;;  %v8559_v11 = vld [vmem:[#allocation10 + $0x40] sm:$0xf0]  ;;  %p8939_p9 = pnand %p8938_p8, %p8934_p2 }
 0x48d   : > { %5435 = vmatpush.bf16.msrb.mxu0 %v7996_v0 }
 0x48e   : > { %5458 = vmatpush.bf16.msrb.mxu2 %v7940_v63  ;;  %5424 = vmatpush.bf16.msra.mxu3 %v7876_v17  ;;  %v7944_v63 = vor.u32 %v8600_v62, %v7943_v16  ;;  %v8577_v17 = vld [vmem:[#allocation10 + $0xd0] sm:$0xf0]  ;;  %v7784_v62 = vor.u32 %v8559_v11, %v7783_v6  ;;  %v7975_v6 = vld [vmem:[#allocation10 + $0x1b8] sm:$0xf]  ;;  %v8607_v11 = vld [vmem:[#allocation10 + $0x1c0] sm:$0xf0] }
 0x490   : > { %5400 = vmatpush.bf16.msra.mxu1 %v7944_v63  ;;  %v7453_v63 = vld [vmem:[%s9160_s9 + $0x98] sm:$0xff] }
 0x491   : > { %5436 = vmatpush.bf16.msrb.mxu0 %v7984_v31  ;;  %v8622_v31 = vld [vmem:[#allocation10 + $0x238] sm:$0xf0] }
 0x492   : > { %5459 = vmatpush.bf16.msrb.mxu2 %v7928_v32  ;;  %5425 = vmatpush.bf16.msra.mxu3 %v7864_v4  ;;  %v7831_v32 = vld [vmem:[#allocation10 + $0x98] sm:$0xf] }
 0x493   : > { %v7832_v36 = vor.u32 %v8571_v34, %v7831_v32  ;;  %v9672_v34 = vld [vmem:[#allocation12 + $0x8] sm:$0xff] }
 0x494   : > { %5445 = vmatpush.bf16.msrb.mxu1 %v7844_v22  ;;  %v4842_v13 = vmul.f32 %v9672_v34, %v9606_v1 }
 0x495   : > { %5437 = vmatpush.bf16.msrb.mxu0 %v7972_v46 }
 0x496   : > { %5460 = vmatpush.bf16.msrb.mxu2 %v7916_v57  ;;  %5426 = vmatpush.bf16.msra.mxu3 %v7852_v38  ;;  %v7856_v57 = vor.u32 %v8577_v17, %v7855_v18  ;;  %v4841_v38 = vmul.f32 %v9660_v47, %v9601_v61 }
 0x498   : > { %5446 = vmatpush.bf16.msrb.mxu1 %v7832_v36 }
 0x499   : > { %5438 = vmatpush.bf16.msrb.mxu0 %v7960_v59 }
 0x49a   : > { %5461 = vmatpush.bf16.msrb.mxu2 %v7904_v33  ;;  %v7945_v33 = vld [vmem:[#allocation10 + $0x18c] sm:$0xf0] }
 0x49b   : > { %v7948_v49 = vor.u32 %v8599_v20, %v7945_v33  ;;  %v8613_v20 = vld [vmem:[#allocation10 + $0x1f0] sm:$0xf0] }
 0x49c   : > { %5447 = vmatpush.bf16.msrb.mxu1 %v7820_v39 }
 0x49d   : > { %5439 = vmatpush.bf16.msrb.mxu0 %v7948_v49 }
 0x49e   : > { %5462 = vmatpush.bf16.msrb.mxu2 %v7892_v8 }
 0x4a0   : > { %5448 = vmatpush.bf16.msrb.mxu1 %v7808_v56 }
 0x4a2   : > { %5463 = vmatpush.bf16.msrb.mxu2 %v7880_v25  ;;  %v7771_v25 = vld [vmem:[#allocation10 + $0x20] sm:$0xf] }
 0x4a4   : > { %5449 = vmatpush.bf16.msrb.mxu1 %v7796_v7 }
 0x4a6   : > { %5464 = vmatpush.bf16.msrb.mxu2 %v7868_v40 }
 0x4a8   : > { %5450 = vmatpush.bf16.msrb.mxu1 %v7784_v62  ;;  %v7976_v62 = vor.u32 %v8607_v11, %v7975_v6 }
 0x4aa   : > { %5465 = vmatpush.bf16.msrb.mxu2 %v7856_v57  ;;  %v8024_v57 = vor.u32 %v8619_v45, %v8023_v15 }
 0x4ca   : > { %v9646_v10 = vpop.f32.mrf.mxu1 }
 0x4d0   : > { %v4730_v29 = vpop.f32.mrf.mxu2 }
 0x4d1   : > { %v4743_v44 = vpop.f32.mrf.mxu3 }
 0x4d2   : > { %v4771_v35 = vpop.f32.mrf.mxu1  ;;  %v4744_v4 = vadd.f32 %v4743_v44, %v4730_v29  ;;  %v8035_v29 = vld [vmem:[#allocation10 + $0x230] sm:$0xf]  ;;  %v7772_v44 = vor.u32 %v8556_v23, %v7771_v25 }
 0x4d3   : > { %v8036_v36 = vor.u32 %v8622_v31, %v8035_v29 }
 0x4d4   : > { %5451 = vmatpush.bf16.msrb.mxu1 %v7772_v44 }
 0x4d8   : > { %v4732_v58 = vpop.f32.mrf.mxu2 }
 0x4d9   : > { %v4745_v52 = vpop.f32.mrf.mxu3  ;;  %v8616_v58 = vld [vmem:[#allocation10 + $0x208] sm:$0xf0] }
 0x4da   : > { %v9655_v19 = vpop.f32.mrf.mxu1  ;;  %v8012_v41 = vor.u32 %v8616_v58, %v8011_v55 }
 0x4dc   : > { %v4756_v50 = vpop.f32.mrf.mxu0 }
 0x4dd   : > { %v4757_v53 = vadd.f32 %v4756_v50, %v4744_v4  ;;  %v7999_v4 = vld [vmem:[#allocation10 + $0x1e8] sm:$0xf]  ;;  %v9703_v50 = vld [vmem:[#allocation12 + $0x10] sm:$0xff] }
 0x4de   : > { %v8000_v49 = vor.u32 %v8613_v20, %v7999_v4 }
 0x4df   : > { %v4838_v3 = vadd.f32 %v7452_v60, %v4757_v53 }
 0x4e0   : > { %v4782_v8 = vpop.f32.mrf.mxu2 }
 0x4e1   : > { %v4844_v0 = vadd.f32 %v4841_v38, %v4838_v3  ;;  %v4783_v16 = vadd.f32 %v4782_v8, %v9646_v10 }
 0x4e2   : > { %v4795_v21 = vpop.f32.mrf.mxu3  ;;  %v4823_v12 = vpop.f32.mrf.mxu1 }
 0x4e3   : > { %v4847_v22 = vmul.f32 0.01, %v4844_v0  ;;  %v9670_v28 = vsel %vm4856_vm6, %v4844_v0, %v9601_v61  ;;  %v4796_v24 = vadd.f32 %v4795_v21, %v4783_v16  ;;  %v8604_v21 = vld [vmem:[#allocation10 + $0x1a8] sm:$0xf0] }
 0x4e4   : > { %v4758_v42 = vpop.f32.mrf.mxu0 }
 0x4e5   : > { %v4850_v10 = vmax.f32 %v4844_v0, %v4847_v22  ;;  %v4839_v32 = vadd.f32 %v7453_v63, %v4796_v24  ;;  %v7963_v63 = vld [vmem:[#allocation10 + $0x1a0] sm:$0xf]  ;;  %v7951_v22 = vld [vmem:[#allocation10 + $0x188] sm:$0xf]  ;;  %v8601_v24 = vld [vmem:[#allocation10 + $0x190] sm:$0xf0] }
 0x4e6   : > { %v7964_v12 = vor.u32 %v8604_v21, %v7963_v63  ;;  %v7952_v27 = vor.u32 %v8601_v24, %v7951_v22 }
 0x4e7   : > { %v9679_v61 = vsel %vm4856_vm6, %v4850_v10, %v9611_v9  ;;  %7743 = vst [vmem:[%s9174_s8 + $0x90] sm:$0xff] %v4850_v10  ;;  %v4845_v35 = vadd.f32 %v4842_v13, %v4839_v32  ;;  %v7759_v9 = vld [vmem:[#allocation10 + $0x8] sm:$0xf]  ;;  %v7746_v10 = vld [vmem:[%s9160_s9 + $0xa8] sm:$0xff] }
 0x4e8   : > { %v4784_v37 = vpop.f32.mrf.mxu2  ;;  %v9684_v40 = vpack.c.bf16 %v9679_v61, %v9679_v61  ;;  %v7760_v39 = vor.u32 %v8553_v30, %v7759_v9  ;;  %v7747_v9 = vld [vmem:[%s9160_s9 + $0xb0] sm:$0xff] }
 0x4e9   : > { %v4848_v46 = vmul.f32 0.01, %v4845_v35  ;;  %v9689_v48 = vsel %vm4856_vm6, %v4845_v35, %v9606_v1 }
 0x4ea   : > { %v4797_v18 = vpop.f32.mrf.mxu3  ;;  %5375 = vmatmul.bf16.vlgmr.msrb.gmra.mxu3 %v9684_v40  ;;  %5414 = vmatmul.bf16.vlgmr.msra.gmra.mxu2 %v9684_v40 }
 0x4eb   : > { %v4851_v17 = vmax.f32 %v4845_v35, %v4848_v46  ;;  %5471 = vmatpush.bf16.msrb.mxu3 %v8036_v36  ;;  %5452 = vmatpush.bf16.msrb.mxu1 %v7760_v39  ;;  %v9723_v35 = vstv %s5500_s30 }
 0x4ec   : > { %v4808_v51 = vpop.f32.mrf.mxu0  ;;  %vm5502_vm7 = vcmp.eq.s32.totalorder %v9723_v35, 1 }
 0x4ed   : > { %v9696_v1 = vsel %vm4856_vm6, %v4851_v17, %v9617_v54  ;;  %7744 = vst [vmem:[%s9174_s8 + $0x98] sm:$0xff] %v4851_v17  ;;  %v4822_v52 = vadd.f32 %v9655_v19, %v4808_v51  ;;  %v4843_v54 = vmul.f32 %v9703_v50, %v9635_v14  ;;  %v8610_v19 = vld [vmem:[#allocation10 + $0x1d8] sm:$0xf0]  ;;  %v5488_v51 = vmul.f32 %v9672_v34, %v9689_v48 }
 0x4ee   : > { %v4885_v59 = vpack.c.bf16 %v9696_v1, %v9696_v1  ;;  %v7988_v38 = vor.u32 %v8610_v19, %v7987_v2 }
 0x4ef   : > { %5472 = vmatpush.bf16.msrb.mxu3 %v8024_v57 }
 0x4f0   : > { %v4834_v56 = vpop.f32.mrf.mxu2  ;;  %5388 = vmatmul.bf16.vlgmr.msra.gmra.mxu0 %v4885_v59 }
 0x4f1   : > { %v4835_v33 = vadd.f32 %v4834_v56, %v4822_v52 }
 0x4f3   : > { %v4840_v60 = vadd.f32 %v7454_v43, %v4835_v33  ;;  %5473 = vmatpush.bf16.msrb.mxu3 %v8012_v41  ;;  %v7748_v33 = vld [vmem:[%s9160_s9 + $0xb8] sm:$0xff]  ;;  %s5539_s9 = sshll.u32 %s9174_s8, 4  ;;  %s5540_s9 = int_to_ptr.vmem [resolvable:$true] %s5539_s9 }
 0x4f4   : > { %v4810_v53 = vpop.f32.mrf.mxu0 }
 0x4f5   : > { %v4846_v26 = vadd.f32 %v4843_v54, %v4840_v60 }
 0x4f7   : > { %v4849_v7 = vmul.f32 0.01, %v4846_v26  ;;  %v9710_v3 = vsel %vm4856_vm6, %v4846_v26, %v9635_v14  ;;  %5474 = vmatpush.bf16.msrb.mxu3 %v8000_v49 }
 0x4f8   : > { %v4836_v8 = vpop.f32.mrf.mxu2  ;;  %v5489_v49 = vmul.f32 %v9703_v50, %v9710_v3 }
 0x4f9   : > { %v4852_v0 = vmax.f32 %v4846_v26, %v4849_v7 }
 0x4fa   : > { %5427 = vmatmul.bf16.vlgmr.msra.gmra.mxu3 %v4885_v59  ;;  %5466 = vmatmul.bf16.vlgmr.msrb.gmra.mxu2 %v4885_v59 }
 0x4fb   : > { %v9715_v16 = vsel %vm4856_vm6, %v4852_v0, %v9640_v5  ;;  %7745 = vst [vmem:[%s9174_s8 + $0xa0] sm:$0xff] %v4852_v0  ;;  %5475 = vmatpush.bf16.msrb.mxu3 %v7988_v38 }
 0x4fc   : > { %v4886_v14 = vpack.c.bf16 %v9715_v16, %v9715_v16 }
 0x4fe   : > { %5401 = vmatmul.bf16.vlgmr.msra.gmra.mxu1 %v4886_v14 }
 0x4ff   : > { %5476 = vmatpush.bf16.msrb.mxu3 %v7976_v62 }
 0x500   : > { %5440 = vmatmul.bf16.vlgmr.msrb.gmra.mxu0 %v4886_v14 }
 0x503   : > { %5477 = vmatpush.bf16.msrb.mxu3 %v7964_v12 }
 0x507   : > { %5478 = vmatpush.bf16.msrb.mxu3 %v7952_v27 }
 0x50a   : > { %5479 = vmatmul.bf16.vlgmr.msrb.gmra.mxu3 %v4886_v14 }
 0x50e   : > { %5453 = vmatmul.bf16.vlgmr.msrb.gmra.mxu1 %v9684_v40  ;;  %v5487_v40 = vmul.f32 %v9660_v47, %v9670_v28 }
 0x56d   : > { %v5376_v5 = vpop.f32.mrf.mxu3  ;;  %v5389_v25 = vpop.f32.mrf.mxu0 }
 0x56e   : > { %v5415_v23 = vpop.f32.mrf.mxu2  ;;  %v5390_v44 = vadd.f32 %v5389_v25, %v5376_v5 }
 0x575   : > { %v5378_v42 = vpop.f32.mrf.mxu3  ;;  %v5391_v29 = vpop.f32.mrf.mxu0 }
 0x576   : > { %v5417_v31 = vpop.f32.mrf.mxu2 }
 0x57b   : > { %v5402_v32 = vpop.f32.mrf.mxu1 }
 0x57c   : > { %v5403_v13 = vadd.f32 %v5402_v32, %v5390_v44 }
 0x57d   : > { %v5428_v36 = vpop.f32.mrf.mxu3  ;;  %v5441_v37 = vpop.f32.mrf.mxu0 }
 0x57e   : > { %v5484_v15 = vadd.f32 %v7746_v10, %v5403_v13  ;;  %v5429_v45 = vadd.f32 %v5428_v36, %v5415_v23  ;;  %v5467_v46 = vpop.f32.mrf.mxu2 }
 0x580   : > { %v5490_v30 = vadd.f32 %v5487_v40, %v5484_v15  ;;  %v5442_v18 = vadd.f32 %v5441_v37, %v5429_v45 }
 0x582   : > { %v5493_v39 = vmul.f32 0.01, %v5490_v30  ;;  %v5503_v17 = vsel %vm5502_vm7, %v5490_v30, %v9670_v28  ;;  %v5485_v57 = vadd.f32 %v7747_v9, %v5442_v18 }
 0x583   : > { %5506 = vst [vmem:[#allocation2 + $0x10] sm:$0xff] %v5503_v17  ;;  %v5404_v55 = vpop.f32.mrf.mxu1 }
 0x584   : > { %v5496_v47 = vmax.f32 %v5490_v30, %v5493_v39  ;;  %v5491_v58 = vadd.f32 %v5488_v51, %v5485_v57  ;;  %5522 = vst [vmem:[#allocation14] sm:$0xff] %v5503_v17 }
 0x585   : > { %v5430_v59 = vpop.f32.mrf.mxu3  ;;  %v5443_v52 = vpop.f32.mrf.mxu0 }
 0x586   : > { %v5509_v41 = vsel %vm5502_vm7, %v5496_v47, %v9679_v61  ;;  %8037 = vst [vmem:[%s9174_s8 + $0xa8] sm:$0xff] %v5496_v47  ;;  %v5494_v28 = vmul.f32 0.01, %v5491_v58  ;;  %v5504_v34 = vsel %vm5502_vm7, %v5491_v58, %v9689_v48  ;;  %v5469_v43 = vpop.f32.mrf.mxu2 }
 0x587   : > { %5512 = vst [vmem:[#allocation3 + $0x8] sm:$0xff] %v5509_v41 }
 0x588   : > { %v5497_v56 = vmax.f32 %v5491_v58, %v5494_v28  ;;  %5507 = vst [vmem:[#allocation2] sm:$0xff] %v5504_v34 }
 0x589   : > { %5523 = vst [vmem:[#allocation14 + $0x8] sm:$0xff] %v5504_v34 }
 0x58a   : > { %v5510_v4 = vsel %vm5502_vm7, %v5497_v56, %v9696_v1  ;;  %8038 = vst [vmem:[%s9174_s8 + $0xb0] sm:$0xff] %v5497_v56 }
 0x58b   : > { %5513 = vst [vmem:[#allocation3] sm:$0xff] %v5510_v4  ;;  %v5454_v20 = vpop.f32.mrf.mxu1 }
 0x58c   : > { %v5468_v61 = vadd.f32 %v5467_v46, %v5454_v20 }
 0x58d   : > { %v5480_v60 = vpop.f32.mrf.mxu3 }
 0x58e   : > { %v5481_v54 = vadd.f32 %v5480_v60, %v5468_v61 }
 0x590   : > { %v5486_v48 = vadd.f32 %v7748_v33, %v5481_v54 }
 0x592   : > { %v5492_v1 = vadd.f32 %v5489_v49, %v5486_v48 }
 0x593   : > { %v5456_v53 = vpop.f32.mrf.mxu1 }
 0x594   : > { %v5495_v2 = vmul.f32 0.01, %v5492_v1  ;;  %v5505_v19 = vsel %vm5502_vm7, %v5492_v1, %v9710_v3 }
 0x595   : > { %5508 = vst [vmem:[#allocation2 + $0x8] sm:$0xff] %v5505_v19  ;;  %v5482_v50 = vpop.f32.mrf.mxu3 }
 0x596   : > { %v5498_v26 = vmax.f32 %v5492_v1, %v5495_v2  ;;  %5524 = vst [vmem:[#allocation14 + $0x10] sm:$0xff] %v5505_v19 }
 0x597   : > { %8647 = dma.vmem_to_hbm [thread:$0]  (%p9825_p3), %s5555_s7, 384, %s5557_s11, [#allocation15]  }
 0x598   : > { %v5511_v7 = vsel %vm5502_vm7, %v5498_v26, %v9715_v16  ;;  %8039 = vst [vmem:[%s9174_s8 + $0xb8] sm:$0xff] %v5498_v26 }
 0x599   : > { %5514 = vst [vmem:[#allocation3 + $0x10] sm:$0xff] %v5511_v7 }
 0x59a   : > { %8942 = shalt.err (!%p8939_p9)
}
 0x59b   : > { %s9004_s1 = smov 384   ;;  %s9005_s8 = smov 24  }
 0x59c   : > { %8645 = dma.vmem_to_hbm [thread:$0]  (%p9126_p5), %s5540_s9, 3072, %s5542_s12, %s5526_s15, %s9004_s1, %s9004_s1, %s9005_s8  }
 0x59d   : > { %p9826_p10 = pmov %p9825_p3 }
 0x59e   : > { %p9827_p12 = pmov %p9825_p3 }
 0x59f   : > { %8972 = dma.done.wait (%p9826_p10), [#allocation15], 384  }
 0x5a0   : > { %8974 = vsyncadd (%p9827_p12), [#allocation15], 4294966912 }
 0x5a1 PF: > { %s5573_s2 = sand.u32 1, %s8981_s21   ;;  %p9828_p13 = scmp.ge.s32.totalorder %s8993_s24, 2 }
 0x5a2   : > { %s5574_s7 = scalar_lea.sflag [#allocation6], %s5573_s2 }
 0x5a3   : > { %p8669_p0 = pnand %p9828_p13, %p9076_p6 }
 0x5a5   : > { %p8670_p3 = pneg %p8669_p0 }
 0x5a7   : > { %8976 = dma.done.wait (%p8670_p3), %s5574_s7, 3072  }
 0x5a8   : > { %8978 = vsyncadd (%p8670_p3), %s5574_s7, 4294964224  ;;  %p23_p5 = scmp.ge.s32.totalorder %s9116_s13, 4   ;;  %s9829_s21 = smov %s8985_s22 }
 0x5a9   : > { %s9830_s22 = smov %s8989_s23  ;;  %s9831_s23 = smov %s9132_s18 }
 0x5aa   : > { %s9832_s24 = smov %s9116_s13  ;;  %25 = sbr.rel (!%p23_p5) target bundleno = 11 (0xb), region = 127 }
 0x5af   :  { %5580 = vsyncpa [#allocation5], 1 }
 0x5b0   :  { %5582 = vsyncpa [#allocation5 + $0x1], 1 }
 0x5b1   :  { %5583 = vsyncpa [#allocation8], 1 }
 0x5b2   :  { %5584 = vsyncpa [#allocation11], 1 }
 0x5b3   :  { %5585 = vsyncpa [#allocation6], 1 }
 0x5b4   :  { %5587 = vsyncpa [#allocation6 + $0x1], 1 }
 0x5b5   :  { %5588 = vsyncpa [#allocation15], 1 }

</bundles_post_ra>
